<compile_context>
chip_gen: v5e
topology: v5e:2x2
jax: 0.10.0
libtpu: 0.0.40
codegen_flags: <defaults>
</compile_context>

<pallas_src>
import functools
import math

import jax
import jax.numpy as jnp
from jax import lax
from jax.experimental import pallas as pl
from jax.experimental.pallas import tpu as pltpu


def _round8(n):
    return ((n + 7) // 8) * 8


def _out_lanes(c):
    return ((c + 127) // 128) * 128


# ----------------------------------------------------------------------------
# Fused Pallas kernel (built per shape via closure)
# ----------------------------------------------------------------------------
def _make_birnn_kernel(num_layers, BP, T, H, LW, offsets):
    """Row layout of all activation slabs: row = t * BP + b (time-major,
    batch padded to BP sublanes).  Gate slab columns: [fwd 4H | bwd 4H],
    PyTorch gate order (i, f, g, o) inside each half; i/f/o columns are
    pre-scaled by 0.5 so one tanh covers every nonlinearity."""
    H4, H8 = 4 * H, 8 * H
    layer_offs, fcw_off, fcb_off = offsets

    def kernel(x_ref, w_ref, out_ref, g_ref, *h_refs):
        # ---- stacked bidirectional LSTM ----
        for li in range(num_layers):
            wih_off, whh_off, b_off = layer_offs[li]

            # bulk input projection for ALL time steps: one MXU matmul/layer
            if li == 0:
                xin = x_ref[...]                              # (T*BP, Din)
                kin = x_ref.shape[1]
            else:
                xin = jnp.concatenate(
                    [h_refs[2 * (li - 1)][...], h_refs[2 * (li - 1) + 1][...]],
                    axis=1)                                   # (T*BP, 2H)
                kin = 2 * H
            wih = w_ref[pl.ds(wih_off, kin), :][:, :H8]       # (kin, 8H)
            bias = w_ref[pl.ds(b_off, 1), :][:, :H8]          # (1, 8H)
            g_ref[...] = jnp.dot(xin, wih,
                                 preferred_element_type=jnp.float32) + bias

            # interleaved fwd/bwd recurrence: one block-diagonal (2H, 8H)
            # recurrent matmul + 3 EUP pushes per serial time step.
            whh = w_ref[pl.ds(whh_off, 2 * H), :][:, :H8]     # hoisted
            hf_slab = h_refs[2 * li]
            hb_slab = h_refs[2 * li + 1]

            def step(t, carry, whh=whh, hf_slab=hf_slab, hb_slab=hb_slab):
                h, c = carry                                  # (BP, 2H) each
                row_f = pl.multiple_of(t * BP, BP)            # fwd: time t
                row_b = pl.multiple_of((T - 1 - t) * BP, BP)  # bwd: time T-1-t
                blk_f = g_ref[pl.ds(row_f, BP), :]            # (BP, 8H)
                blk_b = g_ref[pl.ds(row_b, BP), :]
                gin = jnp.concatenate([blk_f[:, :H4], blk_b[:, H4:]], axis=1)
                gates = gin + jnp.dot(h, whh,
                                      preferred_element_type=jnp.float32)
                tg = jnp.tanh(gates)                          # 2 EUP pushes (8,256)
                i_f = 0.5 * tg[:, 0 * H:1 * H] + 0.5
                f_f = 0.5 * tg[:, 1 * H:2 * H] + 0.5
                g_f = tg[:, 2 * H:3 * H]
                o_f = 0.5 * tg[:, 3 * H:4 * H] + 0.5
                i_b = 0.5 * tg[:, 4 * H:5 * H] + 0.5
                f_b = 0.5 * tg[:, 5 * H:6 * H] + 0.5
                g_b = tg[:, 6 * H:7 * H]
                o_b = 0.5 * tg[:, 7 * H:8 * H] + 0.5
                c_f = f_f * c[:, :H] + i_f * g_f
                c_b = f_b * c[:, H:] + i_b * g_b
                c_new = jnp.concatenate([c_f, c_b], axis=1)   # (BP, 2H)
                tc = jnp.tanh(c_new)                          # 1 EUP push
                h_f = o_f * tc[:, :H]
                h_b = o_b * tc[:, H:]
                hf_slab[pl.ds(row_f, BP), :] = h_f
                hb_slab[pl.ds(row_b, BP), :] = h_b
                return jnp.concatenate([h_f, h_b], axis=1), c_new

            z = jnp.zeros((BP, 2 * H), jnp.float32)           # h0 = c0 = 0
            lax.fori_loop(0, T, step, (z, z), unroll=True)

        # ---- fused FC + softmax epilogue: one matmul + one softmax pass
        #      over the whole slab, one lane-dense (T*BP, LW) store ----
        hcat = jnp.concatenate(
            [h_refs[2 * (num_layers - 1)][...],
             h_refs[2 * (num_layers - 1) + 1][...]], axis=1)  # (T*BP, 2H)
        fcw = w_ref[pl.ds(fcw_off, 2 * H), :][:, :LW]         # (2H, LW)
        fcb = w_ref[pl.ds(fcb_off, 1), :][:, :LW]             # (1, LW); pad cols = -1e30
        logits = jnp.dot(hcat, fcw, preferred_element_type=jnp.float32) + fcb
        m = jnp.max(logits, axis=-1, keepdims=True)
        e = jnp.exp(logits - m)                               # pad cols -> 0
        denom = jnp.sum(e, axis=-1, keepdims=True)
        out_ref[...] = e * pl.reciprocal(denom, approx=True)

    return kernel


# ----------------------------------------------------------------------------
# Wrapper around pallas_call
# ----------------------------------------------------------------------------
@functools.partial(jax.jit, static_argnames=(
    "hidden_size", "num_layers", "num_classes", "offsets"))
def birnn_forward(x, wbuf, *, hidden_size, num_layers, num_classes, offsets):
    """x: (B, T, input_size), wbuf: packed params -> (B*T, C) softmax probs."""
    B, T, Din = x.shape
    H = hidden_size
    C = num_classes
    BP = _round8(B)                                  # pad batch to 8 sublanes
    LW = _out_lanes(C)                               # lane-dense output width

    # single tiny layout-prep op: time-major, batch padded, flattened
    x_tm = jnp.transpose(x, (1, 0, 2))               # (T, B, Din)
    if BP != B:
        x_tm = jnp.pad(x_tm, ((0, 0), (0, BP - B), (0, 0)))
    x_flat = x_tm.reshape(T * BP, Din)

    vmem = pl.BlockSpec(memory_space=pltpu.MemorySpace.VMEM)
    kernel = _make_birnn_kernel(num_layers, BP, T, H, LW, offsets)
    out_slab = pl.pallas_call(
        kernel,
        out_shape=jax.ShapeDtypeStruct((T * BP, LW), jnp.float32),
        in_specs=[vmem, vmem],                       # 2 input DMAs total
        out_specs=vmem,
        scratch_shapes=[pltpu.VMEM((T * BP, 8 * H), jnp.float32)]       # gate slab
                       + [pltpu.VMEM((T * BP, H), jnp.float32)
                          for _ in range(2 * num_layers)],              # hidden slabs
    )(x_flat, wbuf)

    # batch-major reorder + class slice of a ~KB tensor: free in XLA
    out = out_slab.reshape(T, BP, LW)[:, :B, :C]
    return jnp.transpose(out, (1, 0, 2)).reshape(B * T, C)


# ----------------------------------------------------------------------------
# Parameter init (PyTorch layout) + packing into one flat VMEM buffer
# ----------------------------------------------------------------------------
def init_params(key, input_size, hidden_size, num_layers, num_classes):
    """Raw PyTorch-layout parameters (U(-1/sqrt(H), 1/sqrt(H)))."""
    k = 1.0 / math.sqrt(hidden_size)
    layers = []
    for layer_idx in range(num_layers):
        din = input_size if layer_idx == 0 else 2 * hidden_size
        layer = {}
        for d in ("fwd", "bwd"):
            key, k1, k2, k3, k4 = jax.random.split(key, 5)
            wih = jax.random.uniform(k1, (4 * hidden_size, din), jnp.float32, -k, k)
            whh = jax.random.uniform(k2, (4 * hidden_size, hidden_size), jnp.float32, -k, k)
            bih = jax.random.uniform(k3, (4 * hidden_size,), jnp.float32, -k, k)
            bhh = jax.random.uniform(k4, (4 * hidden_size,), jnp.float32, -k, k)
            layer[d] = (wih, whh, bih, bhh)
        layers.append(layer)
    kf = 1.0 / math.sqrt(2 * hidden_size)
    key, k1, k2 = jax.random.split(key, 3)
    fc_w = jax.random.uniform(k1, (num_classes, 2 * hidden_size), jnp.float32, -kf, kf)
    fc_b = jax.random.uniform(k2, (num_classes,), jnp.float32, -kf, kf)
    return {"lstm": layers, "fc_w": fc_w, "fc_b": fc_b}


def pack_params(params, hidden_size, num_classes):
    """Pack every weight/bias into ONE (rows, max(8H,128)) f32 buffer.

    * W_ih per layer: (Kin, 8H) with [fwd 4H | bwd 4H] columns.
    * W_hh per layer: block-diagonal (2H, 8H) -> one 256-wide MXU push/step.
    * i/f/o gate columns pre-scaled by 0.5 (sigmoid(x)=0.5*tanh(x/2)+0.5).
    * fc_w padded to 128 lanes; fc_b pad columns set to -1e30 so the in-kernel
      softmax over 128 lanes ignores them.
    Each segment is padded to a multiple of 8 rows so in-kernel row slices
    stay sublane-aligned.  Returns (wbuf, offsets) with static int offsets.
    """
    H = hidden_size
    H4, H8 = 4 * H, 8 * H
    LW = _out_lanes(num_classes)
    LWBUF = max(H8, LW)

    gate_scale = jnp.concatenate([
        jnp.full((H,), 0.5, jnp.float32),   # i
        jnp.full((H,), 0.5, jnp.float32),   # f
        jnp.ones((H,), jnp.float32),        # g (true tanh gate)
        jnp.full((H,), 0.5, jnp.float32)])  # o

    segs = []

    def add_seg(mat):
        off = sum(int(s.shape[0]) for s in segs)
        rows = _round8(mat.shape[0])
        buf = jnp.zeros((rows, LWBUF), jnp.float32)
        buf = buf.at[:mat.shape[0], :mat.shape[1]].set(mat.astype(jnp.float32))
        segs.append(buf)
        return off

    layer_offs = []
    for layer in params["lstm"]:
        wih_f, whh_f, bih_f, bhh_f = layer["fwd"]
        wih_b, whh_b, bih_b, bhh_b = layer["bwd"]
        wih_pk = jnp.concatenate([wih_f.T * gate_scale, wih_b.T * gate_scale], axis=1)
        whh_bd = jnp.zeros((2 * H, H8), jnp.float32)
        whh_bd = whh_bd.at[:H, :H4].set(whh_f.T * gate_scale)
        whh_bd = whh_bd.at[H:, H4:].set(whh_b.T * gate_scale)
        b_pk = jnp.concatenate([(bih_f + bhh_f) * gate_scale,
                                (bih_b + bhh_b) * gate_scale]).reshape(1, H8)
        layer_offs.append((add_seg(wih_pk), add_seg(whh_bd), add_seg(b_pk)))

    fcw_pk = jnp.zeros((2 * H, LW), jnp.float32).at[:, :num_classes].set(params["fc_w"].T)
    fcb_pk = jnp.full((1, LW), -1e30, jnp.float32).at[0, :num_classes].set(params["fc_b"])
    off_fcw = add_seg(fcw_pk)
    off_fcb = add_seg(fcb_pk)

    wbuf = jnp.concatenate(segs, axis=0)
    offsets = (tuple(layer_offs), off_fcw, off_fcb)   # hashable -> static arg
    return wbuf, offsets


# ----------------------------------------------------------------------------
# Pure-JAX reference (for correctness check)
# ----------------------------------------------------------------------------
def _lstm_layer_ref(x_tm, wih, whh, bih, bhh, reverse):
    T, B, _ = x_tm.shape
    H = whh.shape[1]
    wih_t, whh_t, b = wih.T, whh.T, bih + bhh

    def step(carry, x_t):
        hh, cc = carry
        g = x_t @ wih_t + hh @ whh_t + b
        i = jax.nn.sigmoid(g[:, :H])
        f = jax.nn.sigmoid(g[:, H:2 * H])
        gg = jnp.tanh(g[:, 2 * H:3 * H])
        o = jax.nn.sigmoid(g[:, 3 * H:])
        cc = f * cc + i * gg
        hh = o * jnp.tanh(cc)
        return (hh, cc), hh

    xs = x_tm[::-1] if reverse else x_tm
    init = (jnp.zeros((B, H), jnp.float32), jnp.zeros((B, H), jnp.float32))
    _, hs = lax.scan(step, init, xs)
    return hs[::-1] if reverse else hs


def birnn_ref(x, params):
    B, T, _ = x.shape
    h = jnp.transpose(x, (1, 0, 2))
    for layer in params["lstm"]:
        fwd = _lstm_layer_ref(h, *layer["fwd"], reverse=False)
        bwd = _lstm_layer_ref(h, *layer["bwd"], reverse=True)
        h = jnp.concatenate([fwd, bwd], axis=-1)
    out = jnp.transpose(h, (1, 0, 2)).reshape(B * T, -1)
    logits = out @ params["fc_w"].T + params["fc_b"]
    return jax.nn.softmax(logits, axis=-1)


# ----------------------------------------------------------------------------
if __name__ == "__main__":
    INPUT_SIZE = 16
    HIDDEN_SIZE = 32
    NUM_LAYERS = 2
    NUM_CLASSES = 8
    BATCH = 4
    SEQ = 8

    key = jax.random.PRNGKey(0)
    key, pkey, xkey = jax.random.split(key, 3)
    params = init_params(pkey, INPUT_SIZE, HIDDEN_SIZE, NUM_LAYERS, NUM_CLASSES)
    x = jax.random.normal(xkey, (BATCH, SEQ, INPUT_SIZE), jnp.float32)

    wbuf, offsets = pack_params(params, HIDDEN_SIZE, NUM_CLASSES)
    out = birnn_forward(x, wbuf, hidden_size=HIDDEN_SIZE, num_layers=NUM_LAYERS,
                        num_classes=NUM_CLASSES, offsets=offsets)
    out = jax.block_until_ready(out)

    ref = birnn_ref(x, params)
    assert out.shape == (BATCH * SEQ, NUM_CLASSES), out.shape
    # tolerance slightly relaxed for the approximate EUP reciprocal in softmax
    assert jnp.allclose(out, ref, rtol=1e-3, atol=2e-3), "mismatch vs JAX reference"
    assert jnp.allclose(jnp.sum(out, axis=-1), 1.0, atol=5e-3), "softmax rows must sum to ~1"

    print("KERNEL_OK")
</pallas_src>

<mosaic_0001>
module attributes {stable_mosaic.version = 11 : i64} {
  func.func @kernel(%arg0: memref<64x16xf32, #tpu.memory_space<vmem>>, %arg1: memref<296x256xf32, #tpu.memory_space<vmem>>, %arg2: memref<64x128xf32, #tpu.memory_space<vmem>>, %arg3: memref<64x256xf32, #tpu.memory_space<vmem>>, %arg4: memref<64x32xf32, #tpu.memory_space<vmem>>, %arg5: memref<64x32xf32, #tpu.memory_space<vmem>>, %arg6: memref<64x32xf32, #tpu.memory_space<vmem>>, %arg7: memref<64x32xf32, #tpu.memory_space<vmem>>) attributes {dimension_semantics = [], scalar_prefetch = 0 : i64, scratch_operands = 5 : i64, tpu.core_type = #tpu.core_type<tc>} {
    %c0 = arith.constant 0 : index
    %c0_0 = arith.constant 0 : index
    %0 = vector.load %arg0[%c0, %c0_0] : memref<64x16xf32, #tpu.memory_space<vmem>>, vector<64x16xf32>
    %c0_1 = arith.constant 0 : index
    %c0_2 = arith.constant 0 : index
    %1 = vector.load %arg1[%c0_1, %c0_2] : memref<296x256xf32, #tpu.memory_space<vmem>>, vector<16x256xf32>
    %c80 = arith.constant 80 : index
    %c0_3 = arith.constant 0 : index
    %2 = vector.load %arg1[%c80, %c0_3] : memref<296x256xf32, #tpu.memory_space<vmem>>, vector<1x256xf32>
    %cst = arith.constant dense<0.000000e+00> : vector<64x256xf32>
    %3 = tpu.matmul %0, %1, %cst {dimension_numbers = #tpu.dot_dimension_numbers<[1], [0], [0], [1], [0, 0, 1, 1], [], []>} : vector<64x16xf32>, vector<16x256xf32>, vector<64x256xf32> -> vector<64x256xf32>
    %4 = vector.broadcast %2 : vector<1x256xf32> to vector<64x256xf32>
    %5 = arith.addf %3, %4 : vector<64x256xf32>
    %c0_4 = arith.constant 0 : index
    %c0_5 = arith.constant 0 : index
    %6 = vector.load %arg3[%c0_4, %c0_5] : memref<64x256xf32, #tpu.memory_space<vmem>>, vector<64x256xf32>
    tpu.vector_store %arg3[%c0_4, %c0_5], %5 {strides = array<i32>} : memref<64x256xf32, #tpu.memory_space<vmem>>, vector<64x256xf32>,
    %c16 = arith.constant 16 : index
    %c0_6 = arith.constant 0 : index
    %7 = vector.load %arg1[%c16, %c0_6] : memref<296x256xf32, #tpu.memory_space<vmem>>, vector<64x256xf32>
    %cst_7 = arith.constant 0.000000e+00 : f32
    %8 = vector.broadcast %cst_7 : f32 to vector<8x64xf32>
    %c0_i32 = arith.constant 0 : i32
    %c8_i32 = arith.constant 8 : i32
    %9 = arith.muli %c0_i32, %c8_i32 : i32
    %10 = tpu.assume_multiple %9, 8 : i32
    %c7_i32 = arith.constant 7 : i32
    %11 = arith.subi %c7_i32, %c0_i32 : i32
    %c8_i32_8 = arith.constant 8 : i32
    %12 = arith.muli %11, %c8_i32_8 : i32
    %13 = tpu.assume_multiple %12, 8 : i32
    %14 = arith.index_cast %10 : i32 to index
    %c0_9 = arith.constant 0 : index
    %15 = vector.load %arg3[%14, %c0_9] : memref<64x256xf32, #tpu.memory_space<vmem>>, vector<8x256xf32>
    %16 = arith.index_cast %13 : i32 to index
    %c0_10 = arith.constant 0 : index
    %17 = vector.load %arg3[%16, %c0_10] : memref<64x256xf32, #tpu.memory_space<vmem>>, vector<8x256xf32>
    %18 = vector.extract_strided_slice %15 {offsets = [0, 0], sizes = [8, 128], strides = [1, 1]} : vector<8x256xf32> to vector<8x128xf32>
    %19 = vector.extract_strided_slice %17 {offsets = [0, 128], sizes = [8, 128], strides = [1, 1]} : vector<8x256xf32> to vector<8x128xf32>
    %20 = tpu.concatenate %18, %19 in 1 : vector<8x128xf32>, vector<8x128xf32> -> vector<8x256xf32>
    %cst_11 = arith.constant dense<0.000000e+00> : vector<8x256xf32>
    %21 = tpu.matmul %8, %7, %cst_11 {dimension_numbers = #tpu.dot_dimension_numbers<[1], [0], [0], [1], [0, 0, 1, 1], [], []>} : vector<8x64xf32>, vector<64x256xf32>, vector<8x256xf32> -> vector<8x256xf32>
    %22 = arith.addf %20, %21 : vector<8x256xf32>
    %23 = math.tanh %22 : vector<8x256xf32>
    %24 = vector.extract_strided_slice %23 {offsets = [0, 0], sizes = [8, 32], strides = [1, 1]} : vector<8x256xf32> to vector<8x32xf32>
    %cst_12 = arith.constant 5.000000e-01 : f32
    %25 = vector.broadcast %cst_12 : f32 to vector<8x32xf32>
    %26 = arith.mulf %25, %24 : vector<8x32xf32>
    %cst_13 = arith.constant 5.000000e-01 : f32
    %27 = vector.broadcast %cst_13 : f32 to vector<8x32xf32>
    %28 = arith.addf %26, %27 : vector<8x32xf32>
    %29 = vector.extract_strided_slice %23 {offsets = [0, 32], sizes = [8, 32], strides = [1, 1]} : vector<8x256xf32> to vector<8x32xf32>
    %cst_14 = arith.constant 5.000000e-01 : f32
    %30 = vector.broadcast %cst_14 : f32 to vector<8x32xf32>
    %31 = arith.mulf %30, %29 : vector<8x32xf32>
    %cst_15 = arith.constant 5.000000e-01 : f32
    %32 = vector.broadcast %cst_15 : f32 to vector<8x32xf32>
    %33 = arith.addf %31, %32 : vector<8x32xf32>
    %34 = vector.extract_strided_slice %23 {offsets = [0, 64], sizes = [8, 32], strides = [1, 1]} : vector<8x256xf32> to vector<8x32xf32>
    %35 = vector.extract_strided_slice %23 {offsets = [0, 96], sizes = [8, 32], strides = [1, 1]} : vector<8x256xf32> to vector<8x32xf32>
    %cst_16 = arith.constant 5.000000e-01 : f32
    %36 = vector.broadcast %cst_16 : f32 to vector<8x32xf32>
    %37 = arith.mulf %36, %35 : vector<8x32xf32>
    %cst_17 = arith.constant 5.000000e-01 : f32
    %38 = vector.broadcast %cst_17 : f32 to vector<8x32xf32>
    %39 = arith.addf %37, %38 : vector<8x32xf32>
    %40 = vector.extract_strided_slice %23 {offsets = [0, 128], sizes = [8, 32], strides = [1, 1]} : vector<8x256xf32> to vector<8x32xf32>
    %cst_18 = arith.constant 5.000000e-01 : f32
    %41 = vector.broadcast %cst_18 : f32 to vector<8x32xf32>
    %42 = arith.mulf %41, %40 : vector<8x32xf32>
    %cst_19 = arith.constant 5.000000e-01 : f32
    %43 = vector.broadcast %cst_19 : f32 to vector<8x32xf32>
    %44 = arith.addf %42, %43 : vector<8x32xf32>
    %45 = vector.extract_strided_slice %23 {offsets = [0, 160], sizes = [8, 32], strides = [1, 1]} : vector<8x256xf32> to vector<8x32xf32>
    %cst_20 = arith.constant 5.000000e-01 : f32
    %46 = vector.broadcast %cst_20 : f32 to vector<8x32xf32>
    %47 = arith.mulf %46, %45 : vector<8x32xf32>
    %cst_21 = arith.constant 5.000000e-01 : f32
    %48 = vector.broadcast %cst_21 : f32 to vector<8x32xf32>
    %49 = arith.addf %47, %48 : vector<8x32xf32>
    %50 = vector.extract_strided_slice %23 {offsets = [0, 192], sizes = [8, 32], strides = [1, 1]} : vector<8x256xf32> to vector<8x32xf32>
    %51 = vector.extract_strided_slice %23 {offsets = [0, 224], sizes = [8, 32], strides = [1, 1]} : vector<8x256xf32> to vector<8x32xf32>
    %cst_22 = arith.constant 5.000000e-01 : f32
    %52 = vector.broadcast %cst_22 : f32 to vector<8x32xf32>
    %53 = arith.mulf %52, %51 : vector<8x32xf32>
    %cst_23 = arith.constant 5.000000e-01 : f32
    %54 = vector.broadcast %cst_23 : f32 to vector<8x32xf32>
    %55 = arith.addf %53, %54 : vector<8x32xf32>
    %56 = vector.extract_strided_slice %8 {offsets = [0, 0], sizes = [8, 32], strides = [1, 1]} : vector<8x64xf32> to vector<8x32xf32>
    %57 = arith.mulf %33, %56 : vector<8x32xf32>
    %58 = arith.mulf %28, %34 : vector<8x32xf32>
    %59 = arith.addf %57, %58 : vector<8x32xf32>
    %60 = vector.extract_strided_slice %8 {offsets = [0, 32], sizes = [8, 32], strides = [1, 1]} : vector<8x64xf32> to vector<8x32xf32>
    %61 = arith.mulf %49, %60 : vector<8x32xf32>
    %62 = arith.mulf %44, %50 : vector<8x32xf32>
    %63 = arith.addf %61, %62 : vector<8x32xf32>
    %64 = tpu.concatenate %59, %63 in 1 : vector<8x32xf32>, vector<8x32xf32> -> vector<8x64xf32>
    %65 = math.tanh %64 : vector<8x64xf32>
    %66 = vector.extract_strided_slice %65 {offsets = [0, 0], sizes = [8, 32], strides = [1, 1]} : vector<8x64xf32> to vector<8x32xf32>
    %67 = arith.mulf %39, %66 : vector<8x32xf32>
    %68 = vector.extract_strided_slice %65 {offsets = [0, 32], sizes = [8, 32], strides = [1, 1]} : vector<8x64xf32> to vector<8x32xf32>
    %69 = arith.mulf %55, %68 : vector<8x32xf32>
    %70 = arith.index_cast %10 : i32 to index
    %c0_24 = arith.constant 0 : index
    %71 = vector.load %arg4[%70, %c0_24] : memref<64x32xf32, #tpu.memory_space<vmem>>, vector<8x32xf32>
    tpu.vector_store %arg4[%70, %c0_24], %67 {strides = array<i32>} : memref<64x32xf32, #tpu.memory_space<vmem>>, vector<8x32xf32>,
    %72 = arith.index_cast %13 : i32 to index
    %c0_25 = arith.constant 0 : index
    %73 = vector.load %arg5[%72, %c0_25] : memref<64x32xf32, #tpu.memory_space<vmem>>, vector<8x32xf32>
    tpu.vector_store %arg5[%72, %c0_25], %69 {strides = array<i32>} : memref<64x32xf32, #tpu.memory_space<vmem>>, vector<8x32xf32>,
    %74 = tpu.concatenate %67, %69 in 1 : vector<8x32xf32>, vector<8x32xf32> -> vector<8x64xf32>
    %c1_i32 = arith.constant 1 : i32
    %c8_i32_26 = arith.constant 8 : i32
    %75 = arith.muli %c1_i32, %c8_i32_26 : i32
    %76 = tpu.assume_multiple %75, 8 : i32
    %c7_i32_27 = arith.constant 7 : i32
    %77 = arith.subi %c7_i32_27, %c1_i32 : i32
    %c8_i32_28 = arith.constant 8 : i32
    %78 = arith.muli %77, %c8_i32_28 : i32
    %79 = tpu.assume_multiple %78, 8 : i32
    %80 = arith.index_cast %76 : i32 to index
    %c0_29 = arith.constant 0 : index
    %81 = vector.load %arg3[%80, %c0_29] : memref<64x256xf32, #tpu.memory_space<vmem>>, vector<8x256xf32>
    %82 = arith.index_cast %79 : i32 to index
    %c0_30 = arith.constant 0 : index
    %83 = vector.load %arg3[%82, %c0_30] : memref<64x256xf32, #tpu.memory_space<vmem>>, vector<8x256xf32>
    %84 = vector.extract_strided_slice %81 {offsets = [0, 0], sizes = [8, 128], strides = [1, 1]} : vector<8x256xf32> to vector<8x128xf32>
    %85 = vector.extract_strided_slice %83 {offsets = [0, 128], sizes = [8, 128], strides = [1, 1]} : vector<8x256xf32> to vector<8x128xf32>
    %86 = tpu.concatenate %84, %85 in 1 : vector<8x128xf32>, vector<8x128xf32> -> vector<8x256xf32>
    %cst_31 = arith.constant dense<0.000000e+00> : vector<8x256xf32>
    %87 = tpu.matmul %74, %7, %cst_31 {dimension_numbers = #tpu.dot_dimension_numbers<[1], [0], [0], [1], [0, 0, 1, 1], [], []>} : vector<8x64xf32>, vector<64x256xf32>, vector<8x256xf32> -> vector<8x256xf32>
    %88 = arith.addf %86, %87 : vector<8x256xf32>
    %89 = math.tanh %88 : vector<8x256xf32>
    %90 = vector.extract_strided_slice %89 {offsets = [0, 0], sizes = [8, 32], strides = [1, 1]} : vector<8x256xf32> to vector<8x32xf32>
    %cst_32 = arith.constant 5.000000e-01 : f32
    %91 = vector.broadcast %cst_32 : f32 to vector<8x32xf32>
    %92 = arith.mulf %91, %90 : vector<8x32xf32>
    %cst_33 = arith.constant 5.000000e-01 : f32
    %93 = vector.broadcast %cst_33 : f32 to vector<8x32xf32>
    %94 = arith.addf %92, %93 : vector<8x32xf32>
    %95 = vector.extract_strided_slice %89 {offsets = [0, 32], sizes = [8, 32], strides = [1, 1]} : vector<8x256xf32> to vector<8x32xf32>
    %cst_34 = arith.constant 5.000000e-01 : f32
    %96 = vector.broadcast %cst_34 : f32 to vector<8x32xf32>
    %97 = arith.mulf %96, %95 : vector<8x32xf32>
    %cst_35 = arith.constant 5.000000e-01 : f32
    %98 = vector.broadcast %cst_35 : f32 to vector<8x32xf32>
    %99 = arith.addf %97, %98 : vector<8x32xf32>
    %100 = vector.extract_strided_slice %89 {offsets = [0, 64], sizes = [8, 32], strides = [1, 1]} : vector<8x256xf32> to vector<8x32xf32>
    %101 = vector.extract_strided_slice %89 {offsets = [0, 96], sizes = [8, 32], strides = [1, 1]} : vector<8x256xf32> to vector<8x32xf32>
    %cst_36 = arith.constant 5.000000e-01 : f32
    %102 = vector.broadcast %cst_36 : f32 to vector<8x32xf32>
    %103 = arith.mulf %102, %101 : vector<8x32xf32>
    %cst_37 = arith.constant 5.000000e-01 : f32
    %104 = vector.broadcast %cst_37 : f32 to vector<8x32xf32>
    %105 = arith.addf %103, %104 : vector<8x32xf32>
    %106 = vector.extract_strided_slice %89 {offsets = [0, 128], sizes = [8, 32], strides = [1, 1]} : vector<8x256xf32> to vector<8x32xf32>
    %cst_38 = arith.constant 5.000000e-01 : f32
    %107 = vector.broadcast %cst_38 : f32 to vector<8x32xf32>
    %108 = arith.mulf %107, %106 : vector<8x32xf32>
    %cst_39 = arith.constant 5.000000e-01 : f32
    %109 = vector.broadcast %cst_39 : f32 to vector<8x32xf32>
    %110 = arith.addf %108, %109 : vector<8x32xf32>
    %111 = vector.extract_strided_slice %89 {offsets = [0, 160], sizes = [8, 32], strides = [1, 1]} : vector<8x256xf32> to vector<8x32xf32>
    %cst_40 = arith.constant 5.000000e-01 : f32
    %112 = vector.broadcast %cst_40 : f32 to vector<8x32xf32>
    %113 = arith.mulf %112, %111 : vector<8x32xf32>
    %cst_41 = arith.constant 5.000000e-01 : f32
    %114 = vector.broadcast %cst_41 : f32 to vector<8x32xf32>
    %115 = arith.addf %113, %114 : vector<8x32xf32>
    %116 = vector.extract_strided_slice %89 {offsets = [0, 192], sizes = [8, 32], strides = [1, 1]} : vector<8x256xf32> to vector<8x32xf32>
    %117 = vector.extract_strided_slice %89 {offsets = [0, 224], sizes = [8, 32], strides = [1, 1]} : vector<8x256xf32> to vector<8x32xf32>
    %cst_42 = arith.constant 5.000000e-01 : f32
    %118 = vector.broadcast %cst_42 : f32 to vector<8x32xf32>
    %119 = arith.mulf %118, %117 : vector<8x32xf32>
    %cst_43 = arith.constant 5.000000e-01 : f32
    %120 = vector.broadcast %cst_43 : f32 to vector<8x32xf32>
    %121 = arith.addf %119, %120 : vector<8x32xf32>
    %122 = vector.extract_strided_slice %64 {offsets = [0, 0], sizes = [8, 32], strides = [1, 1]} : vector<8x64xf32> to vector<8x32xf32>
    %123 = arith.mulf %99, %122 : vector<8x32xf32>
    %124 = arith.mulf %94, %100 : vector<8x32xf32>
    %125 = arith.addf %123, %124 : vector<8x32xf32>
    %126 = vector.extract_strided_slice %64 {offsets = [0, 32], sizes = [8, 32], strides = [1, 1]} : vector<8x64xf32> to vector<8x32xf32>
    %127 = arith.mulf %115, %126 : vector<8x32xf32>
    %128 = arith.mulf %110, %116 : vector<8x32xf32>
    %129 = arith.addf %127, %128 : vector<8x32xf32>
    %130 = tpu.concatenate %125, %129 in 1 : vector<8x32xf32>, vector<8x32xf32> -> vector<8x64xf32>
    %131 = math.tanh %130 : vector<8x64xf32>
    %132 = vector.extract_strided_slice %131 {offsets = [0, 0], sizes = [8, 32], strides = [1, 1]} : vector<8x64xf32> to vector<8x32xf32>
    %133 = arith.mulf %105, %132 : vector<8x32xf32>
    %134 = vector.extract_strided_slice %131 {offsets = [0, 32], sizes = [8, 32], strides = [1, 1]} : vector<8x64xf32> to vector<8x32xf32>
    %135 = arith.mulf %121, %134 : vector<8x32xf32>
    %136 = arith.index_cast %76 : i32 to index
    %c0_44 = arith.constant 0 : index
    %137 = vector.load %arg4[%136, %c0_44] : memref<64x32xf32, #tpu.memory_space<vmem>>, vector<8x32xf32>
    tpu.vector_store %arg4[%136, %c0_44], %133 {strides = array<i32>} : memref<64x32xf32, #tpu.memory_space<vmem>>, vector<8x32xf32>,
    %138 = arith.index_cast %79 : i32 to index
    %c0_45 = arith.constant 0 : index
    %139 = vector.load %arg5[%138, %c0_45] : memref<64x32xf32, #tpu.memory_space<vmem>>, vector<8x32xf32>
    tpu.vector_store %arg5[%138, %c0_45], %135 {strides = array<i32>} : memref<64x32xf32, #tpu.memory_space<vmem>>, vector<8x32xf32>,
    %140 = tpu.concatenate %133, %135 in 1 : vector<8x32xf32>, vector<8x32xf32> -> vector<8x64xf32>
    %c2_i32 = arith.constant 2 : i32
    %c8_i32_46 = arith.constant 8 : i32
    %141 = arith.muli %c2_i32, %c8_i32_46 : i32
    %142 = tpu.assume_multiple %141, 8 : i32
    %c7_i32_47 = arith.constant 7 : i32
    %143 = arith.subi %c7_i32_47, %c2_i32 : i32
    %c8_i32_48 = arith.constant 8 : i32
    %144 = arith.muli %143, %c8_i32_48 : i32
    %145 = tpu.assume_multiple %144, 8 : i32
    %146 = arith.index_cast %142 : i32 to index
    %c0_49 = arith.constant 0 : index
    %147 = vector.load %arg3[%146, %c0_49] : memref<64x256xf32, #tpu.memory_space<vmem>>, vector<8x256xf32>
    %148 = arith.index_cast %145 : i32 to index
    %c0_50 = arith.constant 0 : index
    %149 = vector.load %arg3[%148, %c0_50] : memref<64x256xf32, #tpu.memory_space<vmem>>, vector<8x256xf32>
    %150 = vector.extract_strided_slice %147 {offsets = [0, 0], sizes = [8, 128], strides = [1, 1]} : vector<8x256xf32> to vector<8x128xf32>
    %151 = vector.extract_strided_slice %149 {offsets = [0, 128], sizes = [8, 128], strides = [1, 1]} : vector<8x256xf32> to vector<8x128xf32>
    %152 = tpu.concatenate %150, %151 in 1 : vector<8x128xf32>, vector<8x128xf32> -> vector<8x256xf32>
    %cst_51 = arith.constant dense<0.000000e+00> : vector<8x256xf32>
    %153 = tpu.matmul %140, %7, %cst_51 {dimension_numbers = #tpu.dot_dimension_numbers<[1], [0], [0], [1], [0, 0, 1, 1], [], []>} : vector<8x64xf32>, vector<64x256xf32>, vector<8x256xf32> -> vector<8x256xf32>
    %154 = arith.addf %152, %153 : vector<8x256xf32>
    %155 = math.tanh %154 : vector<8x256xf32>
    %156 = vector.extract_strided_slice %155 {offsets = [0, 0], sizes = [8, 32], strides = [1, 1]} : vector<8x256xf32> to vector<8x32xf32>
    %cst_52 = arith.constant 5.000000e-01 : f32
    %157 = vector.broadcast %cst_52 : f32 to vector<8x32xf32>
    %158 = arith.mulf %157, %156 : vector<8x32xf32>
    %cst_53 = arith.constant 5.000000e-01 : f32
    %159 = vector.broadcast %cst_53 : f32 to vector<8x32xf32>
    %160 = arith.addf %158, %159 : vector<8x32xf32>
    %161 = vector.extract_strided_slice %155 {offsets = [0, 32], sizes = [8, 32], strides = [1, 1]} : vector<8x256xf32> to vector<8x32xf32>
    %cst_54 = arith.constant 5.000000e-01 : f32
    %162 = vector.broadcast %cst_54 : f32 to vector<8x32xf32>
    %163 = arith.mulf %162, %161 : vector<8x32xf32>
    %cst_55 = arith.constant 5.000000e-01 : f32
    %164 = vector.broadcast %cst_55 : f32 to vector<8x32xf32>
    %165 = arith.addf %163, %164 : vector<8x32xf32>
    %166 = vector.extract_strided_slice %155 {offsets = [0, 64], sizes = [8, 32], strides = [1, 1]} : vector<8x256xf32> to vector<8x32xf32>
    %167 = vector.extract_strided_slice %155 {offsets = [0, 96], sizes = [8, 32], strides = [1, 1]} : vector<8x256xf32> to vector<8x32xf32>
    %cst_56 = arith.constant 5.000000e-01 : f32
    %168 = vector.broadcast %cst_56 : f32 to vector<8x32xf32>
    %169 = arith.mulf %168, %167 : vector<8x32xf32>
    %cst_57 = arith.constant 5.000000e-01 : f32
    %170 = vector.broadcast %cst_57 : f32 to vector<8x32xf32>
    %171 = arith.addf %169, %170 : vector<8x32xf32>
    %172 = vector.extract_strided_slice %155 {offsets = [0, 128], sizes = [8, 32], strides = [1, 1]} : vector<8x256xf32> to vector<8x32xf32>
    %cst_58 = arith.constant 5.000000e-01 : f32
    %173 = vector.broadcast %cst_58 : f32 to vector<8x32xf32>
    %174 = arith.mulf %173, %172 : vector<8x32xf32>
    %cst_59 = arith.constant 5.000000e-01 : f32
    %175 = vector.broadcast %cst_59 : f32 to vector<8x32xf32>
    %176 = arith.addf %174, %175 : vector<8x32xf32>
    %177 = vector.extract_strided_slice %155 {offsets = [0, 160], sizes = [8, 32], strides = [1, 1]} : vector<8x256xf32> to vector<8x32xf32>
    %cst_60 = arith.constant 5.000000e-01 : f32
    %178 = vector.broadcast %cst_60 : f32 to vector<8x32xf32>
    %179 = arith.mulf %178, %177 : vector<8x32xf32>
    %cst_61 = arith.constant 5.000000e-01 : f32
    %180 = vector.broadcast %cst_61 : f32 to vector<8x32xf32>
    %181 = arith.addf %179, %180 : vector<8x32xf32>
    %182 = vector.extract_strided_slice %155 {offsets = [0, 192], sizes = [8, 32], strides = [1, 1]} : vector<8x256xf32> to vector<8x32xf32>
    %183 = vector.extract_strided_slice %155 {offsets = [0, 224], sizes = [8, 32], strides = [1, 1]} : vector<8x256xf32> to vector<8x32xf32>
    %cst_62 = arith.constant 5.000000e-01 : f32
    %184 = vector.broadcast %cst_62 : f32 to vector<8x32xf32>
    %185 = arith.mulf %184, %183 : vector<8x32xf32>
    %cst_63 = arith.constant 5.000000e-01 : f32
    %186 = vector.broadcast %cst_63 : f32 to vector<8x32xf32>
    %187 = arith.addf %185, %186 : vector<8x32xf32>
    %188 = vector.extract_strided_slice %130 {offsets = [0, 0], sizes = [8, 32], strides = [1, 1]} : vector<8x64xf32> to vector<8x32xf32>
    %189 = arith.mulf %165, %188 : vector<8x32xf32>
    %190 = arith.mulf %160, %166 : vector<8x32xf32>
    %191 = arith.addf %189, %190 : vector<8x32xf32>
    %192 = vector.extract_strided_slice %130 {offsets = [0, 32], sizes = [8, 32], strides = [1, 1]} : vector<8x64xf32> to vector<8x32xf32>
    %193 = arith.mulf %181, %192 : vector<8x32xf32>
    %194 = arith.mulf %176, %182 : vector<8x32xf32>
    %195 = arith.addf %193, %194 : vector<8x32xf32>
    %196 = tpu.concatenate %191, %195 in 1 : vector<8x32xf32>, vector<8x32xf32> -> vector<8x64xf32>
    %197 = math.tanh %196 : vector<8x64xf32>
    %198 = vector.extract_strided_slice %197 {offsets = [0, 0], sizes = [8, 32], strides = [1, 1]} : vector<8x64xf32> to vector<8x32xf32>
    %199 = arith.mulf %171, %198 : vector<8x32xf32>
    %200 = vector.extract_strided_slice %197 {offsets = [0, 32], sizes = [8, 32], strides = [1, 1]} : vector<8x64xf32> to vector<8x32xf32>
    %201 = arith.mulf %187, %200 : vector<8x32xf32>
    %202 = arith.index_cast %142 : i32 to index
    %c0_64 = arith.constant 0 : index
    %203 = vector.load %arg4[%202, %c0_64] : memref<64x32xf32, #tpu.memory_space<vmem>>, vector<8x32xf32>
    tpu.vector_store %arg4[%202, %c0_64], %199 {strides = array<i32>} : memref<64x32xf32, #tpu.memory_space<vmem>>, vector<8x32xf32>,
    %204 = arith.index_cast %145 : i32 to index
    %c0_65 = arith.constant 0 : index
    %205 = vector.load %arg5[%204, %c0_65] : memref<64x32xf32, #tpu.memory_space<vmem>>, vector<8x32xf32>
    tpu.vector_store %arg5[%204, %c0_65], %201 {strides = array<i32>} : memref<64x32xf32, #tpu.memory_space<vmem>>, vector<8x32xf32>,
    %206 = tpu.concatenate %199, %201 in 1 : vector<8x32xf32>, vector<8x32xf32> -> vector<8x64xf32>
    %c3_i32 = arith.constant 3 : i32
    %c8_i32_66 = arith.constant 8 : i32
    %207 = arith.muli %c3_i32, %c8_i32_66 : i32
    %208 = tpu.assume_multiple %207, 8 : i32
    %c7_i32_67 = arith.constant 7 : i32
    %209 = arith.subi %c7_i32_67, %c3_i32 : i32
    %c8_i32_68 = arith.constant 8 : i32
    %210 = arith.muli %209, %c8_i32_68 : i32
    %211 = tpu.assume_multiple %210, 8 : i32
    %212 = arith.index_cast %208 : i32 to index
    %c0_69 = arith.constant 0 : index
    %213 = vector.load %arg3[%212, %c0_69] : memref<64x256xf32, #tpu.memory_space<vmem>>, vector<8x256xf32>
    %214 = arith.index_cast %211 : i32 to index
    %c0_70 = arith.constant 0 : index
    %215 = vector.load %arg3[%214, %c0_70] : memref<64x256xf32, #tpu.memory_space<vmem>>, vector<8x256xf32>
    %216 = vector.extract_strided_slice %213 {offsets = [0, 0], sizes = [8, 128], strides = [1, 1]} : vector<8x256xf32> to vector<8x128xf32>
    %217 = vector.extract_strided_slice %215 {offsets = [0, 128], sizes = [8, 128], strides = [1, 1]} : vector<8x256xf32> to vector<8x128xf32>
    %218 = tpu.concatenate %216, %217 in 1 : vector<8x128xf32>, vector<8x128xf32> -> vector<8x256xf32>
    %cst_71 = arith.constant dense<0.000000e+00> : vector<8x256xf32>
    %219 = tpu.matmul %206, %7, %cst_71 {dimension_numbers = #tpu.dot_dimension_numbers<[1], [0], [0], [1], [0, 0, 1, 1], [], []>} : vector<8x64xf32>, vector<64x256xf32>, vector<8x256xf32> -> vector<8x256xf32>
    %220 = arith.addf %218, %219 : vector<8x256xf32>
    %221 = math.tanh %220 : vector<8x256xf32>
    %222 = vector.extract_strided_slice %221 {offsets = [0, 0], sizes = [8, 32], strides = [1, 1]} : vector<8x256xf32> to vector<8x32xf32>
    %cst_72 = arith.constant 5.000000e-01 : f32
    %223 = vector.broadcast %cst_72 : f32 to vector<8x32xf32>
    %224 = arith.mulf %223, %222 : vector<8x32xf32>
    %cst_73 = arith.constant 5.000000e-01 : f32
    %225 = vector.broadcast %cst_73 : f32 to vector<8x32xf32>
    %226 = arith.addf %224, %225 : vector<8x32xf32>
    %227 = vector.extract_strided_slice %221 {offsets = [0, 32], sizes = [8, 32], strides = [1, 1]} : vector<8x256xf32> to vector<8x32xf32>
    %cst_74 = arith.constant 5.000000e-01 : f32
    %228 = vector.broadcast %cst_74 : f32 to vector<8x32xf32>
    %229 = arith.mulf %228, %227 : vector<8x32xf32>
    %cst_75 = arith.constant 5.000000e-01 : f32
    %230 = vector.broadcast %cst_75 : f32 to vector<8x32xf32>
    %231 = arith.addf %229, %230 : vector<8x32xf32>
    %232 = vector.extract_strided_slice %221 {offsets = [0, 64], sizes = [8, 32], strides = [1, 1]} : vector<8x256xf32> to vector<8x32xf32>
    %233 = vector.extract_strided_slice %221 {offsets = [0, 96], sizes = [8, 32], strides = [1, 1]} : vector<8x256xf32> to vector<8x32xf32>
    %cst_76 = arith.constant 5.000000e-01 : f32
    %234 = vector.broadcast %cst_76 : f32 to vector<8x32xf32>
    %235 = arith.mulf %234, %233 : vector<8x32xf32>
    %cst_77 = arith.constant 5.000000e-01 : f32
    %236 = vector.broadcast %cst_77 : f32 to vector<8x32xf32>
    %237 = arith.addf %235, %236 : vector<8x32xf32>
    %238 = vector.extract_strided_slice %221 {offsets = [0, 128], sizes = [8, 32], strides = [1, 1]} : vector<8x256xf32> to vector<8x32xf32>
    %cst_78 = arith.constant 5.000000e-01 : f32
    %239 = vector.broadcast %cst_78 : f32 to vector<8x32xf32>
    %240 = arith.mulf %239, %238 : vector<8x32xf32>
    %cst_79 = arith.constant 5.000000e-01 : f32
    %241 = vector.broadcast %cst_79 : f32 to vector<8x32xf32>
    %242 = arith.addf %240, %241 : vector<8x32xf32>
    %243 = vector.extract_strided_slice %221 {offsets = [0, 160], sizes = [8, 32], strides = [1, 1]} : vector<8x256xf32> to vector<8x32xf32>
    %cst_80 = arith.constant 5.000000e-01 : f32
    %244 = vector.broadcast %cst_80 : f32 to vector<8x32xf32>
    %245 = arith.mulf %244, %243 : vector<8x32xf32>
    %cst_81 = arith.constant 5.000000e-01 : f32
    %246 = vector.broadcast %cst_81 : f32 to vector<8x32xf32>
    %247 = arith.addf %245, %246 : vector<8x32xf32>
    %248 = vector.extract_strided_slice %221 {offsets = [0, 192], sizes = [8, 32], strides = [1, 1]} : vector<8x256xf32> to vector<8x32xf32>
    %249 = vector.extract_strided_slice %221 {offsets = [0, 224], sizes = [8, 32], strides = [1, 1]} : vector<8x256xf32> to vector<8x32xf32>
    %cst_82 = arith.constant 5.000000e-01 : f32
    %250 = vector.broadcast %cst_82 : f32 to vector<8x32xf32>
    %251 = arith.mulf %250, %249 : vector<8x32xf32>
    %cst_83 = arith.constant 5.000000e-01 : f32
    %252 = vector.broadcast %cst_83 : f32 to vector<8x32xf32>
    %253 = arith.addf %251, %252 : vector<8x32xf32>
    %254 = vector.extract_strided_slice %196 {offsets = [0, 0], sizes = [8, 32], strides = [1, 1]} : vector<8x64xf32> to vector<8x32xf32>
    %255 = arith.mulf %231, %254 : vector<8x32xf32>
    %256 = arith.mulf %226, %232 : vector<8x32xf32>
    %257 = arith.addf %255, %256 : vector<8x32xf32>
    %258 = vector.extract_strided_slice %196 {offsets = [0, 32], sizes = [8, 32], strides = [1, 1]} : vector<8x64xf32> to vector<8x32xf32>
    %259 = arith.mulf %247, %258 : vector<8x32xf32>
    %260 = arith.mulf %242, %248 : vector<8x32xf32>
    %261 = arith.addf %259, %260 : vector<8x32xf32>
    %262 = tpu.concatenate %257, %261 in 1 : vector<8x32xf32>, vector<8x32xf32> -> vector<8x64xf32>
    %263 = math.tanh %262 : vector<8x64xf32>
    %264 = vector.extract_strided_slice %263 {offsets = [0, 0], sizes = [8, 32], strides = [1, 1]} : vector<8x64xf32> to vector<8x32xf32>
    %265 = arith.mulf %237, %264 : vector<8x32xf32>
    %266 = vector.extract_strided_slice %263 {offsets = [0, 32], sizes = [8, 32], strides = [1, 1]} : vector<8x64xf32> to vector<8x32xf32>
    %267 = arith.mulf %253, %266 : vector<8x32xf32>
    %268 = arith.index_cast %208 : i32 to index
    %c0_84 = arith.constant 0 : index
    %269 = vector.load %arg4[%268, %c0_84] : memref<64x32xf32, #tpu.memory_space<vmem>>, vector<8x32xf32>
    tpu.vector_store %arg4[%268, %c0_84], %265 {strides = array<i32>} : memref<64x32xf32, #tpu.memory_space<vmem>>, vector<8x32xf32>,
    %270 = arith.index_cast %211 : i32 to index
    %c0_85 = arith.constant 0 : index
    %271 = vector.load %arg5[%270, %c0_85] : memref<64x32xf32, #tpu.memory_space<vmem>>, vector<8x32xf32>
    tpu.vector_store %arg5[%270, %c0_85], %267 {strides = array<i32>} : memref<64x32xf32, #tpu.memory_space<vmem>>, vector<8x32xf32>,
    %272 = tpu.concatenate %265, %267 in 1 : vector<8x32xf32>, vector<8x32xf32> -> vector<8x64xf32>
    %c4_i32 = arith.constant 4 : i32
    %c8_i32_86 = arith.constant 8 : i32
    %273 = arith.muli %c4_i32, %c8_i32_86 : i32
    %274 = tpu.assume_multiple %273, 8 : i32
    %c7_i32_87 = arith.constant 7 : i32
    %275 = arith.subi %c7_i32_87, %c4_i32 : i32
    %c8_i32_88 = arith.constant 8 : i32
    %276 = arith.muli %275, %c8_i32_88 : i32
    %277 = tpu.assume_multiple %276, 8 : i32
    %278 = arith.index_cast %274 : i32 to index
    %c0_89 = arith.constant 0 : index
    %279 = vector.load %arg3[%278, %c0_89] : memref<64x256xf32, #tpu.memory_space<vmem>>, vector<8x256xf32>
    %280 = arith.index_cast %277 : i32 to index
    %c0_90 = arith.constant 0 : index
    %281 = vector.load %arg3[%280, %c0_90] : memref<64x256xf32, #tpu.memory_space<vmem>>, vector<8x256xf32>
    %282 = vector.extract_strided_slice %279 {offsets = [0, 0], sizes = [8, 128], strides = [1, 1]} : vector<8x256xf32> to vector<8x128xf32>
    %283 = vector.extract_strided_slice %281 {offsets = [0, 128], sizes = [8, 128], strides = [1, 1]} : vector<8x256xf32> to vector<8x128xf32>
    %284 = tpu.concatenate %282, %283 in 1 : vector<8x128xf32>, vector<8x128xf32> -> vector<8x256xf32>
    %cst_91 = arith.constant dense<0.000000e+00> : vector<8x256xf32>
    %285 = tpu.matmul %272, %7, %cst_91 {dimension_numbers = #tpu.dot_dimension_numbers<[1], [0], [0], [1], [0, 0, 1, 1], [], []>} : vector<8x64xf32>, vector<64x256xf32>, vector<8x256xf32> -> vector<8x256xf32>
    %286 = arith.addf %284, %285 : vector<8x256xf32>
    %287 = math.tanh %286 : vector<8x256xf32>
    %288 = vector.extract_strided_slice %287 {offsets = [0, 0], sizes = [8, 32], strides = [1, 1]} : vector<8x256xf32> to vector<8x32xf32>
    %cst_92 = arith.constant 5.000000e-01 : f32
    %289 = vector.broadcast %cst_92 : f32 to vector<8x32xf32>
    %290 = arith.mulf %289, %288 : vector<8x32xf32>
    %cst_93 = arith.constant 5.000000e-01 : f32
    %291 = vector.broadcast %cst_93 : f32 to vector<8x32xf32>
    %292 = arith.addf %290, %291 : vector<8x32xf32>
    %293 = vector.extract_strided_slice %287 {offsets = [0, 32], sizes = [8, 32], strides = [1, 1]} : vector<8x256xf32> to vector<8x32xf32>
    %cst_94 = arith.constant 5.000000e-01 : f32
    %294 = vector.broadcast %cst_94 : f32 to vector<8x32xf32>
    %295 = arith.mulf %294, %293 : vector<8x32xf32>
    %cst_95 = arith.constant 5.000000e-01 : f32
    %296 = vector.broadcast %cst_95 : f32 to vector<8x32xf32>
    %297 = arith.addf %295, %296 : vector<8x32xf32>
    %298 = vector.extract_strided_slice %287 {offsets = [0, 64], sizes = [8, 32], strides = [1, 1]} : vector<8x256xf32> to vector<8x32xf32>
    %299 = vector.extract_strided_slice %287 {offsets = [0, 96], sizes = [8, 32], strides = [1, 1]} : vector<8x256xf32> to vector<8x32xf32>
    %cst_96 = arith.constant 5.000000e-01 : f32
    %300 = vector.broadcast %cst_96 : f32 to vector<8x32xf32>
    %301 = arith.mulf %300, %299 : vector<8x32xf32>
    %cst_97 = arith.constant 5.000000e-01 : f32
    %302 = vector.broadcast %cst_97 : f32 to vector<8x32xf32>
    %303 = arith.addf %301, %302 : vector<8x32xf32>
    %304 = vector.extract_strided_slice %287 {offsets = [0, 128], sizes = [8, 32], strides = [1, 1]} : vector<8x256xf32> to vector<8x32xf32>
    %cst_98 = arith.constant 5.000000e-01 : f32
    %305 = vector.broadcast %cst_98 : f32 to vector<8x32xf32>
    %306 = arith.mulf %305, %304 : vector<8x32xf32>
    %cst_99 = arith.constant 5.000000e-01 : f32
    %307 = vector.broadcast %cst_99 : f32 to vector<8x32xf32>
    %308 = arith.addf %306, %307 : vector<8x32xf32>
    %309 = vector.extract_strided_slice %287 {offsets = [0, 160], sizes = [8, 32], strides = [1, 1]} : vector<8x256xf32> to vector<8x32xf32>
    %cst_100 = arith.constant 5.000000e-01 : f32
    %310 = vector.broadcast %cst_100 : f32 to vector<8x32xf32>
    %311 = arith.mulf %310, %309 : vector<8x32xf32>
    %cst_101 = arith.constant 5.000000e-01 : f32
    %312 = vector.broadcast %cst_101 : f32 to vector<8x32xf32>
    %313 = arith.addf %311, %312 : vector<8x32xf32>
    %314 = vector.extract_strided_slice %287 {offsets = [0, 192], sizes = [8, 32], strides = [1, 1]} : vector<8x256xf32> to vector<8x32xf32>
    %315 = vector.extract_strided_slice %287 {offsets = [0, 224], sizes = [8, 32], strides = [1, 1]} : vector<8x256xf32> to vector<8x32xf32>
    %cst_102 = arith.constant 5.000000e-01 : f32
    %316 = vector.broadcast %cst_102 : f32 to vector<8x32xf32>
    %317 = arith.mulf %316, %315 : vector<8x32xf32>
    %cst_103 = arith.constant 5.000000e-01 : f32
    %318 = vector.broadcast %cst_103 : f32 to vector<8x32xf32>
    %319 = arith.addf %317, %318 : vector<8x32xf32>
    %320 = vector.extract_strided_slice %262 {offsets = [0, 0], sizes = [8, 32], strides = [1, 1]} : vector<8x64xf32> to vector<8x32xf32>
    %321 = arith.mulf %297, %320 : vector<8x32xf32>
    %322 = arith.mulf %292, %298 : vector<8x32xf32>
    %323 = arith.addf %321, %322 : vector<8x32xf32>
    %324 = vector.extract_strided_slice %262 {offsets = [0, 32], sizes = [8, 32], strides = [1, 1]} : vector<8x64xf32> to vector<8x32xf32>
    %325 = arith.mulf %313, %324 : vector<8x32xf32>
    %326 = arith.mulf %308, %314 : vector<8x32xf32>
    %327 = arith.addf %325, %326 : vector<8x32xf32>
    %328 = tpu.concatenate %323, %327 in 1 : vector<8x32xf32>, vector<8x32xf32> -> vector<8x64xf32>
    %329 = math.tanh %328 : vector<8x64xf32>
    %330 = vector.extract_strided_slice %329 {offsets = [0, 0], sizes = [8, 32], strides = [1, 1]} : vector<8x64xf32> to vector<8x32xf32>
    %331 = arith.mulf %303, %330 : vector<8x32xf32>
    %332 = vector.extract_strided_slice %329 {offsets = [0, 32], sizes = [8, 32], strides = [1, 1]} : vector<8x64xf32> to vector<8x32xf32>
    %333 = arith.mulf %319, %332 : vector<8x32xf32>
    %334 = arith.index_cast %274 : i32 to index
    %c0_104 = arith.constant 0 : index
    %335 = vector.load %arg4[%334, %c0_104] : memref<64x32xf32, #tpu.memory_space<vmem>>, vector<8x32xf32>
    tpu.vector_store %arg4[%334, %c0_104], %331 {strides = array<i32>} : memref<64x32xf32, #tpu.memory_space<vmem>>, vector<8x32xf32>,
    %336 = arith.index_cast %277 : i32 to index
    %c0_105 = arith.constant 0 : index
    %337 = vector.load %arg5[%336, %c0_105] : memref<64x32xf32, #tpu.memory_space<vmem>>, vector<8x32xf32>
    tpu.vector_store %arg5[%336, %c0_105], %333 {strides = array<i32>} : memref<64x32xf32, #tpu.memory_space<vmem>>, vector<8x32xf32>,
    %338 = tpu.concatenate %331, %333 in 1 : vector<8x32xf32>, vector<8x32xf32> -> vector<8x64xf32>
    %c5_i32 = arith.constant 5 : i32
    %c8_i32_106 = arith.constant 8 : i32
    %339 = arith.muli %c5_i32, %c8_i32_106 : i32
    %340 = tpu.assume_multiple %339, 8 : i32
    %c7_i32_107 = arith.constant 7 : i32
    %341 = arith.subi %c7_i32_107, %c5_i32 : i32
    %c8_i32_108 = arith.constant 8 : i32
    %342 = arith.muli %341, %c8_i32_108 : i32
    %343 = tpu.assume_multiple %342, 8 : i32
    %344 = arith.index_cast %340 : i32 to index
    %c0_109 = arith.constant 0 : index
    %345 = vector.load %arg3[%344, %c0_109] : memref<64x256xf32, #tpu.memory_space<vmem>>, vector<8x256xf32>
    %346 = arith.index_cast %343 : i32 to index
    %c0_110 = arith.constant 0 : index
    %347 = vector.load %arg3[%346, %c0_110] : memref<64x256xf32, #tpu.memory_space<vmem>>, vector<8x256xf32>
    %348 = vector.extract_strided_slice %345 {offsets = [0, 0], sizes = [8, 128], strides = [1, 1]} : vector<8x256xf32> to vector<8x128xf32>
    %349 = vector.extract_strided_slice %347 {offsets = [0, 128], sizes = [8, 128], strides = [1, 1]} : vector<8x256xf32> to vector<8x128xf32>
    %350 = tpu.concatenate %348, %349 in 1 : vector<8x128xf32>, vector<8x128xf32> -> vector<8x256xf32>
    %cst_111 = arith.constant dense<0.000000e+00> : vector<8x256xf32>
    %351 = tpu.matmul %338, %7, %cst_111 {dimension_numbers = #tpu.dot_dimension_numbers<[1], [0], [0], [1], [0, 0, 1, 1], [], []>} : vector<8x64xf32>, vector<64x256xf32>, vector<8x256xf32> -> vector<8x256xf32>
    %352 = arith.addf %350, %351 : vector<8x256xf32>
    %353 = math.tanh %352 : vector<8x256xf32>
    %354 = vector.extract_strided_slice %353 {offsets = [0, 0], sizes = [8, 32], strides = [1, 1]} : vector<8x256xf32> to vector<8x32xf32>
    %cst_112 = arith.constant 5.000000e-01 : f32
    %355 = vector.broadcast %cst_112 : f32 to vector<8x32xf32>
    %356 = arith.mulf %355, %354 : vector<8x32xf32>
    %cst_113 = arith.constant 5.000000e-01 : f32
    %357 = vector.broadcast %cst_113 : f32 to vector<8x32xf32>
    %358 = arith.addf %356, %357 : vector<8x32xf32>
    %359 = vector.extract_strided_slice %353 {offsets = [0, 32], sizes = [8, 32], strides = [1, 1]} : vector<8x256xf32> to vector<8x32xf32>
    %cst_114 = arith.constant 5.000000e-01 : f32
    %360 = vector.broadcast %cst_114 : f32 to vector<8x32xf32>
    %361 = arith.mulf %360, %359 : vector<8x32xf32>
    %cst_115 = arith.constant 5.000000e-01 : f32
    %362 = vector.broadcast %cst_115 : f32 to vector<8x32xf32>
    %363 = arith.addf %361, %362 : vector<8x32xf32>
    %364 = vector.extract_strided_slice %353 {offsets = [0, 64], sizes = [8, 32], strides = [1, 1]} : vector<8x256xf32> to vector<8x32xf32>
    %365 = vector.extract_strided_slice %353 {offsets = [0, 96], sizes = [8, 32], strides = [1, 1]} : vector<8x256xf32> to vector<8x32xf32>
    %cst_116 = arith.constant 5.000000e-01 : f32
    %366 = vector.broadcast %cst_116 : f32 to vector<8x32xf32>
    %367 = arith.mulf %366, %365 : vector<8x32xf32>
    %cst_117 = arith.constant 5.000000e-01 : f32
    %368 = vector.broadcast %cst_117 : f32 to vector<8x32xf32>
    %369 = arith.addf %367, %368 : vector<8x32xf32>
    %370 = vector.extract_strided_slice %353 {offsets = [0, 128], sizes = [8, 32], strides = [1, 1]} : vector<8x256xf32> to vector<8x32xf32>
    %cst_118 = arith.constant 5.000000e-01 : f32
    %371 = vector.broadcast %cst_118 : f32 to vector<8x32xf32>
    %372 = arith.mulf %371, %370 : vector<8x32xf32>
    %cst_119 = arith.constant 5.000000e-01 : f32
    %373 = vector.broadcast %cst_119 : f32 to vector<8x32xf32>
    %374 = arith.addf %372, %373 : vector<8x32xf32>
    %375 = vector.extract_strided_slice %353 {offsets = [0, 160], sizes = [8, 32], strides = [1, 1]} : vector<8x256xf32> to vector<8x32xf32>
    %cst_120 = arith.constant 5.000000e-01 : f32
    %376 = vector.broadcast %cst_120 : f32 to vector<8x32xf32>
    %377 = arith.mulf %376, %375 : vector<8x32xf32>
    %cst_121 = arith.constant 5.000000e-01 : f32
    %378 = vector.broadcast %cst_121 : f32 to vector<8x32xf32>
    %379 = arith.addf %377, %378 : vector<8x32xf32>
    %380 = vector.extract_strided_slice %353 {offsets = [0, 192], sizes = [8, 32], strides = [1, 1]} : vector<8x256xf32> to vector<8x32xf32>
    %381 = vector.extract_strided_slice %353 {offsets = [0, 224], sizes = [8, 32], strides = [1, 1]} : vector<8x256xf32> to vector<8x32xf32>
    %cst_122 = arith.constant 5.000000e-01 : f32
    %382 = vector.broadcast %cst_122 : f32 to vector<8x32xf32>
    %383 = arith.mulf %382, %381 : vector<8x32xf32>
    %cst_123 = arith.constant 5.000000e-01 : f32
    %384 = vector.broadcast %cst_123 : f32 to vector<8x32xf32>
    %385 = arith.addf %383, %384 : vector<8x32xf32>
    %386 = vector.extract_strided_slice %328 {offsets = [0, 0], sizes = [8, 32], strides = [1, 1]} : vector<8x64xf32> to vector<8x32xf32>
    %387 = arith.mulf %363, %386 : vector<8x32xf32>
    %388 = arith.mulf %358, %364 : vector<8x32xf32>
    %389 = arith.addf %387, %388 : vector<8x32xf32>
    %390 = vector.extract_strided_slice %328 {offsets = [0, 32], sizes = [8, 32], strides = [1, 1]} : vector<8x64xf32> to vector<8x32xf32>
    %391 = arith.mulf %379, %390 : vector<8x32xf32>
    %392 = arith.mulf %374, %380 : vector<8x32xf32>
    %393 = arith.addf %391, %392 : vector<8x32xf32>
    %394 = tpu.concatenate %389, %393 in 1 : vector<8x32xf32>, vector<8x32xf32> -> vector<8x64xf32>
    %395 = math.tanh %394 : vector<8x64xf32>
    %396 = vector.extract_strided_slice %395 {offsets = [0, 0], sizes = [8, 32], strides = [1, 1]} : vector<8x64xf32> to vector<8x32xf32>
    %397 = arith.mulf %369, %396 : vector<8x32xf32>
    %398 = vector.extract_strided_slice %395 {offsets = [0, 32], sizes = [8, 32], strides = [1, 1]} : vector<8x64xf32> to vector<8x32xf32>
    %399 = arith.mulf %385, %398 : vector<8x32xf32>
    %400 = arith.index_cast %340 : i32 to index
    %c0_124 = arith.constant 0 : index
    %401 = vector.load %arg4[%400, %c0_124] : memref<64x32xf32, #tpu.memory_space<vmem>>, vector<8x32xf32>
    tpu.vector_store %arg4[%400, %c0_124], %397 {strides = array<i32>} : memref<64x32xf32, #tpu.memory_space<vmem>>, vector<8x32xf32>,
    %402 = arith.index_cast %343 : i32 to index
    %c0_125 = arith.constant 0 : index
    %403 = vector.load %arg5[%402, %c0_125] : memref<64x32xf32, #tpu.memory_space<vmem>>, vector<8x32xf32>
    tpu.vector_store %arg5[%402, %c0_125], %399 {strides = array<i32>} : memref<64x32xf32, #tpu.memory_space<vmem>>, vector<8x32xf32>,
    %404 = tpu.concatenate %397, %399 in 1 : vector<8x32xf32>, vector<8x32xf32> -> vector<8x64xf32>
    %c6_i32 = arith.constant 6 : i32
    %c8_i32_126 = arith.constant 8 : i32
    %405 = arith.muli %c6_i32, %c8_i32_126 : i32
    %406 = tpu.assume_multiple %405, 8 : i32
    %c7_i32_127 = arith.constant 7 : i32
    %407 = arith.subi %c7_i32_127, %c6_i32 : i32
    %c8_i32_128 = arith.constant 8 : i32
    %408 = arith.muli %407, %c8_i32_128 : i32
    %409 = tpu.assume_multiple %408, 8 : i32
    %410 = arith.index_cast %406 : i32 to index
    %c0_129 = arith.constant 0 : index
    %411 = vector.load %arg3[%410, %c0_129] : memref<64x256xf32, #tpu.memory_space<vmem>>, vector<8x256xf32>
    %412 = arith.index_cast %409 : i32 to index
    %c0_130 = arith.constant 0 : index
    %413 = vector.load %arg3[%412, %c0_130] : memref<64x256xf32, #tpu.memory_space<vmem>>, vector<8x256xf32>
    %414 = vector.extract_strided_slice %411 {offsets = [0, 0], sizes = [8, 128], strides = [1, 1]} : vector<8x256xf32> to vector<8x128xf32>
    %415 = vector.extract_strided_slice %413 {offsets = [0, 128], sizes = [8, 128], strides = [1, 1]} : vector<8x256xf32> to vector<8x128xf32>
    %416 = tpu.concatenate %414, %415 in 1 : vector<8x128xf32>, vector<8x128xf32> -> vector<8x256xf32>
    %cst_131 = arith.constant dense<0.000000e+00> : vector<8x256xf32>
    %417 = tpu.matmul %404, %7, %cst_131 {dimension_numbers = #tpu.dot_dimension_numbers<[1], [0], [0], [1], [0, 0, 1, 1], [], []>} : vector<8x64xf32>, vector<64x256xf32>, vector<8x256xf32> -> vector<8x256xf32>
    %418 = arith.addf %416, %417 : vector<8x256xf32>
    %419 = math.tanh %418 : vector<8x256xf32>
    %420 = vector.extract_strided_slice %419 {offsets = [0, 0], sizes = [8, 32], strides = [1, 1]} : vector<8x256xf32> to vector<8x32xf32>
    %cst_132 = arith.constant 5.000000e-01 : f32
    %421 = vector.broadcast %cst_132 : f32 to vector<8x32xf32>
    %422 = arith.mulf %421, %420 : vector<8x32xf32>
    %cst_133 = arith.constant 5.000000e-01 : f32
    %423 = vector.broadcast %cst_133 : f32 to vector<8x32xf32>
    %424 = arith.addf %422, %423 : vector<8x32xf32>
    %425 = vector.extract_strided_slice %419 {offsets = [0, 32], sizes = [8, 32], strides = [1, 1]} : vector<8x256xf32> to vector<8x32xf32>
    %cst_134 = arith.constant 5.000000e-01 : f32
    %426 = vector.broadcast %cst_134 : f32 to vector<8x32xf32>
    %427 = arith.mulf %426, %425 : vector<8x32xf32>
    %cst_135 = arith.constant 5.000000e-01 : f32
    %428 = vector.broadcast %cst_135 : f32 to vector<8x32xf32>
    %429 = arith.addf %427, %428 : vector<8x32xf32>
    %430 = vector.extract_strided_slice %419 {offsets = [0, 64], sizes = [8, 32], strides = [1, 1]} : vector<8x256xf32> to vector<8x32xf32>
    %431 = vector.extract_strided_slice %419 {offsets = [0, 96], sizes = [8, 32], strides = [1, 1]} : vector<8x256xf32> to vector<8x32xf32>
    %cst_136 = arith.constant 5.000000e-01 : f32
    %432 = vector.broadcast %cst_136 : f32 to vector<8x32xf32>
    %433 = arith.mulf %432, %431 : vector<8x32xf32>
    %cst_137 = arith.constant 5.000000e-01 : f32
    %434 = vector.broadcast %cst_137 : f32 to vector<8x32xf32>
    %435 = arith.addf %433, %434 : vector<8x32xf32>
    %436 = vector.extract_strided_slice %419 {offsets = [0, 128], sizes = [8, 32], strides = [1, 1]} : vector<8x256xf32> to vector<8x32xf32>
    %cst_138 = arith.constant 5.000000e-01 : f32
    %437 = vector.broadcast %cst_138 : f32 to vector<8x32xf32>
    %438 = arith.mulf %437, %436 : vector<8x32xf32>
    %cst_139 = arith.constant 5.000000e-01 : f32
    %439 = vector.broadcast %cst_139 : f32 to vector<8x32xf32>
    %440 = arith.addf %438, %439 : vector<8x32xf32>
    %441 = vector.extract_strided_slice %419 {offsets = [0, 160], sizes = [8, 32], strides = [1, 1]} : vector<8x256xf32> to vector<8x32xf32>
    %cst_140 = arith.constant 5.000000e-01 : f32
    %442 = vector.broadcast %cst_140 : f32 to vector<8x32xf32>
    %443 = arith.mulf %442, %441 : vector<8x32xf32>
    %cst_141 = arith.constant 5.000000e-01 : f32
    %444 = vector.broadcast %cst_141 : f32 to vector<8x32xf32>
    %445 = arith.addf %443, %444 : vector<8x32xf32>
    %446 = vector.extract_strided_slice %419 {offsets = [0, 192], sizes = [8, 32], strides = [1, 1]} : vector<8x256xf32> to vector<8x32xf32>
    %447 = vector.extract_strided_slice %419 {offsets = [0, 224], sizes = [8, 32], strides = [1, 1]} : vector<8x256xf32> to vector<8x32xf32>
    %cst_142 = arith.constant 5.000000e-01 : f32
    %448 = vector.broadcast %cst_142 : f32 to vector<8x32xf32>
    %449 = arith.mulf %448, %447 : vector<8x32xf32>
    %cst_143 = arith.constant 5.000000e-01 : f32
    %450 = vector.broadcast %cst_143 : f32 to vector<8x32xf32>
    %451 = arith.addf %449, %450 : vector<8x32xf32>
    %452 = vector.extract_strided_slice %394 {offsets = [0, 0], sizes = [8, 32], strides = [1, 1]} : vector<8x64xf32> to vector<8x32xf32>
    %453 = arith.mulf %429, %452 : vector<8x32xf32>
    %454 = arith.mulf %424, %430 : vector<8x32xf32>
    %455 = arith.addf %453, %454 : vector<8x32xf32>
    %456 = vector.extract_strided_slice %394 {offsets = [0, 32], sizes = [8, 32], strides = [1, 1]} : vector<8x64xf32> to vector<8x32xf32>
    %457 = arith.mulf %445, %456 : vector<8x32xf32>
    %458 = arith.mulf %440, %446 : vector<8x32xf32>
    %459 = arith.addf %457, %458 : vector<8x32xf32>
    %460 = tpu.concatenate %455, %459 in 1 : vector<8x32xf32>, vector<8x32xf32> -> vector<8x64xf32>
    %461 = math.tanh %460 : vector<8x64xf32>
    %462 = vector.extract_strided_slice %461 {offsets = [0, 0], sizes = [8, 32], strides = [1, 1]} : vector<8x64xf32> to vector<8x32xf32>
    %463 = arith.mulf %435, %462 : vector<8x32xf32>
    %464 = vector.extract_strided_slice %461 {offsets = [0, 32], sizes = [8, 32], strides = [1, 1]} : vector<8x64xf32> to vector<8x32xf32>
    %465 = arith.mulf %451, %464 : vector<8x32xf32>
    %466 = arith.index_cast %406 : i32 to index
    %c0_144 = arith.constant 0 : index
    %467 = vector.load %arg4[%466, %c0_144] : memref<64x32xf32, #tpu.memory_space<vmem>>, vector<8x32xf32>
    tpu.vector_store %arg4[%466, %c0_144], %463 {strides = array<i32>} : memref<64x32xf32, #tpu.memory_space<vmem>>, vector<8x32xf32>,
    %468 = arith.index_cast %409 : i32 to index
    %c0_145 = arith.constant 0 : index
    %469 = vector.load %arg5[%468, %c0_145] : memref<64x32xf32, #tpu.memory_space<vmem>>, vector<8x32xf32>
    tpu.vector_store %arg5[%468, %c0_145], %465 {strides = array<i32>} : memref<64x32xf32, #tpu.memory_space<vmem>>, vector<8x32xf32>,
    %470 = tpu.concatenate %463, %465 in 1 : vector<8x32xf32>, vector<8x32xf32> -> vector<8x64xf32>
    %c7_i32_146 = arith.constant 7 : i32
    %c8_i32_147 = arith.constant 8 : i32
    %471 = arith.muli %c7_i32_146, %c8_i32_147 : i32
    %472 = tpu.assume_multiple %471, 8 : i32
    %c7_i32_148 = arith.constant 7 : i32
    %473 = arith.subi %c7_i32_148, %c7_i32_146 : i32
    %c8_i32_149 = arith.constant 8 : i32
    %474 = arith.muli %473, %c8_i32_149 : i32
    %475 = tpu.assume_multiple %474, 8 : i32
    %476 = arith.index_cast %472 : i32 to index
    %c0_150 = arith.constant 0 : index
    %477 = vector.load %arg3[%476, %c0_150] : memref<64x256xf32, #tpu.memory_space<vmem>>, vector<8x256xf32>
    %478 = arith.index_cast %475 : i32 to index
    %c0_151 = arith.constant 0 : index
    %479 = vector.load %arg3[%478, %c0_151] : memref<64x256xf32, #tpu.memory_space<vmem>>, vector<8x256xf32>
    %480 = vector.extract_strided_slice %477 {offsets = [0, 0], sizes = [8, 128], strides = [1, 1]} : vector<8x256xf32> to vector<8x128xf32>
    %481 = vector.extract_strided_slice %479 {offsets = [0, 128], sizes = [8, 128], strides = [1, 1]} : vector<8x256xf32> to vector<8x128xf32>
    %482 = tpu.concatenate %480, %481 in 1 : vector<8x128xf32>, vector<8x128xf32> -> vector<8x256xf32>
    %cst_152 = arith.constant dense<0.000000e+00> : vector<8x256xf32>
    %483 = tpu.matmul %470, %7, %cst_152 {dimension_numbers = #tpu.dot_dimension_numbers<[1], [0], [0], [1], [0, 0, 1, 1], [], []>} : vector<8x64xf32>, vector<64x256xf32>, vector<8x256xf32> -> vector<8x256xf32>
    %484 = arith.addf %482, %483 : vector<8x256xf32>
    %485 = math.tanh %484 : vector<8x256xf32>
    %486 = vector.extract_strided_slice %485 {offsets = [0, 0], sizes = [8, 32], strides = [1, 1]} : vector<8x256xf32> to vector<8x32xf32>
    %cst_153 = arith.constant 5.000000e-01 : f32
    %487 = vector.broadcast %cst_153 : f32 to vector<8x32xf32>
    %488 = arith.mulf %487, %486 : vector<8x32xf32>
    %cst_154 = arith.constant 5.000000e-01 : f32
    %489 = vector.broadcast %cst_154 : f32 to vector<8x32xf32>
    %490 = arith.addf %488, %489 : vector<8x32xf32>
    %491 = vector.extract_strided_slice %485 {offsets = [0, 32], sizes = [8, 32], strides = [1, 1]} : vector<8x256xf32> to vector<8x32xf32>
    %cst_155 = arith.constant 5.000000e-01 : f32
    %492 = vector.broadcast %cst_155 : f32 to vector<8x32xf32>
    %493 = arith.mulf %492, %491 : vector<8x32xf32>
    %cst_156 = arith.constant 5.000000e-01 : f32
    %494 = vector.broadcast %cst_156 : f32 to vector<8x32xf32>
    %495 = arith.addf %493, %494 : vector<8x32xf32>
    %496 = vector.extract_strided_slice %485 {offsets = [0, 64], sizes = [8, 32], strides = [1, 1]} : vector<8x256xf32> to vector<8x32xf32>
    %497 = vector.extract_strided_slice %485 {offsets = [0, 96], sizes = [8, 32], strides = [1, 1]} : vector<8x256xf32> to vector<8x32xf32>
    %cst_157 = arith.constant 5.000000e-01 : f32
    %498 = vector.broadcast %cst_157 : f32 to vector<8x32xf32>
    %499 = arith.mulf %498, %497 : vector<8x32xf32>
    %cst_158 = arith.constant 5.000000e-01 : f32
    %500 = vector.broadcast %cst_158 : f32 to vector<8x32xf32>
    %501 = arith.addf %499, %500 : vector<8x32xf32>
    %502 = vector.extract_strided_slice %485 {offsets = [0, 128], sizes = [8, 32], strides = [1, 1]} : vector<8x256xf32> to vector<8x32xf32>
    %cst_159 = arith.constant 5.000000e-01 : f32
    %503 = vector.broadcast %cst_159 : f32 to vector<8x32xf32>
    %504 = arith.mulf %503, %502 : vector<8x32xf32>
    %cst_160 = arith.constant 5.000000e-01 : f32
    %505 = vector.broadcast %cst_160 : f32 to vector<8x32xf32>
    %506 = arith.addf %504, %505 : vector<8x32xf32>
    %507 = vector.extract_strided_slice %485 {offsets = [0, 160], sizes = [8, 32], strides = [1, 1]} : vector<8x256xf32> to vector<8x32xf32>
    %cst_161 = arith.constant 5.000000e-01 : f32
    %508 = vector.broadcast %cst_161 : f32 to vector<8x32xf32>
    %509 = arith.mulf %508, %507 : vector<8x32xf32>
    %cst_162 = arith.constant 5.000000e-01 : f32
    %510 = vector.broadcast %cst_162 : f32 to vector<8x32xf32>
    %511 = arith.addf %509, %510 : vector<8x32xf32>
    %512 = vector.extract_strided_slice %485 {offsets = [0, 192], sizes = [8, 32], strides = [1, 1]} : vector<8x256xf32> to vector<8x32xf32>
    %513 = vector.extract_strided_slice %485 {offsets = [0, 224], sizes = [8, 32], strides = [1, 1]} : vector<8x256xf32> to vector<8x32xf32>
    %cst_163 = arith.constant 5.000000e-01 : f32
    %514 = vector.broadcast %cst_163 : f32 to vector<8x32xf32>
    %515 = arith.mulf %514, %513 : vector<8x32xf32>
    %cst_164 = arith.constant 5.000000e-01 : f32
    %516 = vector.broadcast %cst_164 : f32 to vector<8x32xf32>
    %517 = arith.addf %515, %516 : vector<8x32xf32>
    %518 = vector.extract_strided_slice %460 {offsets = [0, 0], sizes = [8, 32], strides = [1, 1]} : vector<8x64xf32> to vector<8x32xf32>
    %519 = arith.mulf %495, %518 : vector<8x32xf32>
    %520 = arith.mulf %490, %496 : vector<8x32xf32>
    %521 = arith.addf %519, %520 : vector<8x32xf32>
    %522 = vector.extract_strided_slice %460 {offsets = [0, 32], sizes = [8, 32], strides = [1, 1]} : vector<8x64xf32> to vector<8x32xf32>
    %523 = arith.mulf %511, %522 : vector<8x32xf32>
    %524 = arith.mulf %506, %512 : vector<8x32xf32>
    %525 = arith.addf %523, %524 : vector<8x32xf32>
    %526 = tpu.concatenate %521, %525 in 1 : vector<8x32xf32>, vector<8x32xf32> -> vector<8x64xf32>
    %527 = math.tanh %526 : vector<8x64xf32>
    %528 = vector.extract_strided_slice %527 {offsets = [0, 0], sizes = [8, 32], strides = [1, 1]} : vector<8x64xf32> to vector<8x32xf32>
    %529 = arith.mulf %501, %528 : vector<8x32xf32>
    %530 = vector.extract_strided_slice %527 {offsets = [0, 32], sizes = [8, 32], strides = [1, 1]} : vector<8x64xf32> to vector<8x32xf32>
    %531 = arith.mulf %517, %530 : vector<8x32xf32>
    %532 = arith.index_cast %472 : i32 to index
    %c0_165 = arith.constant 0 : index
    %533 = vector.load %arg4[%532, %c0_165] : memref<64x32xf32, #tpu.memory_space<vmem>>, vector<8x32xf32>
    tpu.vector_store %arg4[%532, %c0_165], %529 {strides = array<i32>} : memref<64x32xf32, #tpu.memory_space<vmem>>, vector<8x32xf32>,
    %534 = arith.index_cast %475 : i32 to index
    %c0_166 = arith.constant 0 : index
    %535 = vector.load %arg5[%534, %c0_166] : memref<64x32xf32, #tpu.memory_space<vmem>>, vector<8x32xf32>
    tpu.vector_store %arg5[%534, %c0_166], %531 {strides = array<i32>} : memref<64x32xf32, #tpu.memory_space<vmem>>, vector<8x32xf32>,
    %536 = tpu.concatenate %529, %531 in 1 : vector<8x32xf32>, vector<8x32xf32> -> vector<8x64xf32>
    %c8_i32_167 = arith.constant 8 : i32
    %c0_168 = arith.constant 0 : index
    %c0_169 = arith.constant 0 : index
    %537 = vector.load %arg4[%c0_168, %c0_169] : memref<64x32xf32, #tpu.memory_space<vmem>>, vector<64x32xf32>
    %c0_170 = arith.constant 0 : index
    %c0_171 = arith.constant 0 : index
    %538 = vector.load %arg5[%c0_170, %c0_171] : memref<64x32xf32, #tpu.memory_space<vmem>>, vector<64x32xf32>
    %539 = tpu.concatenate %537, %538 in 1 : vector<64x32xf32>, vector<64x32xf32> -> vector<64x64xf32>
    %c88 = arith.constant 88 : index
    %c0_172 = arith.constant 0 : index
    %540 = vector.load %arg1[%c88, %c0_172] : memref<296x256xf32, #tpu.memory_space<vmem>>, vector<64x256xf32>
    %c216 = arith.constant 216 : index
    %c0_173 = arith.constant 0 : index
    %541 = vector.load %arg1[%c216, %c0_173] : memref<296x256xf32, #tpu.memory_space<vmem>>, vector<1x256xf32>
    %cst_174 = arith.constant dense<0.000000e+00> : vector<64x256xf32>
    %542 = tpu.matmul %539, %540, %cst_174 {dimension_numbers = #tpu.dot_dimension_numbers<[1], [0], [0], [1], [0, 0, 1, 1], [], []>} : vector<64x64xf32>, vector<64x256xf32>, vector<64x256xf32> -> vector<64x256xf32>
    %543 = vector.broadcast %541 : vector<1x256xf32> to vector<64x256xf32>
    %544 = arith.addf %542, %543 : vector<64x256xf32>
    %c0_175 = arith.constant 0 : index
    %c0_176 = arith.constant 0 : index
    %545 = vector.load %arg3[%c0_175, %c0_176] : memref<64x256xf32, #tpu.memory_space<vmem>>, vector<64x256xf32>
    tpu.vector_store %arg3[%c0_175, %c0_176], %544 {strides = array<i32>} : memref<64x256xf32, #tpu.memory_space<vmem>>, vector<64x256xf32>,
    %c152 = arith.constant 152 : index
    %c0_177 = arith.constant 0 : index
    %546 = vector.load %arg1[%c152, %c0_177] : memref<296x256xf32, #tpu.memory_space<vmem>>, vector<64x256xf32>
    %cst_178 = arith.constant 0.000000e+00 : f32
    %547 = vector.broadcast %cst_178 : f32 to vector<8x64xf32>
    %c0_i32_179 = arith.constant 0 : i32
    %c8_i32_180 = arith.constant 8 : i32
    %548 = arith.muli %c0_i32_179, %c8_i32_180 : i32
    %549 = tpu.assume_multiple %548, 8 : i32
    %c7_i32_181 = arith.constant 7 : i32
    %550 = arith.subi %c7_i32_181, %c0_i32_179 : i32
    %c8_i32_182 = arith.constant 8 : i32
    %551 = arith.muli %550, %c8_i32_182 : i32
    %552 = tpu.assume_multiple %551, 8 : i32
    %553 = arith.index_cast %549 : i32 to index
    %c0_183 = arith.constant 0 : index
    %554 = vector.load %arg3[%553, %c0_183] : memref<64x256xf32, #tpu.memory_space<vmem>>, vector<8x256xf32>
    %555 = arith.index_cast %552 : i32 to index
    %c0_184 = arith.constant 0 : index
    %556 = vector.load %arg3[%555, %c0_184] : memref<64x256xf32, #tpu.memory_space<vmem>>, vector<8x256xf32>
    %557 = vector.extract_strided_slice %554 {offsets = [0, 0], sizes = [8, 128], strides = [1, 1]} : vector<8x256xf32> to vector<8x128xf32>
    %558 = vector.extract_strided_slice %556 {offsets = [0, 128], sizes = [8, 128], strides = [1, 1]} : vector<8x256xf32> to vector<8x128xf32>
    %559 = tpu.concatenate %557, %558 in 1 : vector<8x128xf32>, vector<8x128xf32> -> vector<8x256xf32>
    %cst_185 = arith.constant dense<0.000000e+00> : vector<8x256xf32>
    %560 = tpu.matmul %547, %546, %cst_185 {dimension_numbers = #tpu.dot_dimension_numbers<[1], [0], [0], [1], [0, 0, 1, 1], [], []>} : vector<8x64xf32>, vector<64x256xf32>, vector<8x256xf32> -> vector<8x256xf32>
    %561 = arith.addf %559, %560 : vector<8x256xf32>
    %562 = math.tanh %561 : vector<8x256xf32>
    %563 = vector.extract_strided_slice %562 {offsets = [0, 0], sizes = [8, 32], strides = [1, 1]} : vector<8x256xf32> to vector<8x32xf32>
    %cst_186 = arith.constant 5.000000e-01 : f32
    %564 = vector.broadcast %cst_186 : f32 to vector<8x32xf32>
    %565 = arith.mulf %564, %563 : vector<8x32xf32>
    %cst_187 = arith.constant 5.000000e-01 : f32
    %566 = vector.broadcast %cst_187 : f32 to vector<8x32xf32>
    %567 = arith.addf %565, %566 : vector<8x32xf32>
    %568 = vector.extract_strided_slice %562 {offsets = [0, 32], sizes = [8, 32], strides = [1, 1]} : vector<8x256xf32> to vector<8x32xf32>
    %cst_188 = arith.constant 5.000000e-01 : f32
    %569 = vector.broadcast %cst_188 : f32 to vector<8x32xf32>
    %570 = arith.mulf %569, %568 : vector<8x32xf32>
    %cst_189 = arith.constant 5.000000e-01 : f32
    %571 = vector.broadcast %cst_189 : f32 to vector<8x32xf32>
    %572 = arith.addf %570, %571 : vector<8x32xf32>
    %573 = vector.extract_strided_slice %562 {offsets = [0, 64], sizes = [8, 32], strides = [1, 1]} : vector<8x256xf32> to vector<8x32xf32>
    %574 = vector.extract_strided_slice %562 {offsets = [0, 96], sizes = [8, 32], strides = [1, 1]} : vector<8x256xf32> to vector<8x32xf32>
    %cst_190 = arith.constant 5.000000e-01 : f32
    %575 = vector.broadcast %cst_190 : f32 to vector<8x32xf32>
    %576 = arith.mulf %575, %574 : vector<8x32xf32>
    %cst_191 = arith.constant 5.000000e-01 : f32
    %577 = vector.broadcast %cst_191 : f32 to vector<8x32xf32>
    %578 = arith.addf %576, %577 : vector<8x32xf32>
    %579 = vector.extract_strided_slice %562 {offsets = [0, 128], sizes = [8, 32], strides = [1, 1]} : vector<8x256xf32> to vector<8x32xf32>
    %cst_192 = arith.constant 5.000000e-01 : f32
    %580 = vector.broadcast %cst_192 : f32 to vector<8x32xf32>
    %581 = arith.mulf %580, %579 : vector<8x32xf32>
    %cst_193 = arith.constant 5.000000e-01 : f32
    %582 = vector.broadcast %cst_193 : f32 to vector<8x32xf32>
    %583 = arith.addf %581, %582 : vector<8x32xf32>
    %584 = vector.extract_strided_slice %562 {offsets = [0, 160], sizes = [8, 32], strides = [1, 1]} : vector<8x256xf32> to vector<8x32xf32>
    %cst_194 = arith.constant 5.000000e-01 : f32
    %585 = vector.broadcast %cst_194 : f32 to vector<8x32xf32>
    %586 = arith.mulf %585, %584 : vector<8x32xf32>
    %cst_195 = arith.constant 5.000000e-01 : f32
    %587 = vector.broadcast %cst_195 : f32 to vector<8x32xf32>
    %588 = arith.addf %586, %587 : vector<8x32xf32>
    %589 = vector.extract_strided_slice %562 {offsets = [0, 192], sizes = [8, 32], strides = [1, 1]} : vector<8x256xf32> to vector<8x32xf32>
    %590 = vector.extract_strided_slice %562 {offsets = [0, 224], sizes = [8, 32], strides = [1, 1]} : vector<8x256xf32> to vector<8x32xf32>
    %cst_196 = arith.constant 5.000000e-01 : f32
    %591 = vector.broadcast %cst_196 : f32 to vector<8x32xf32>
    %592 = arith.mulf %591, %590 : vector<8x32xf32>
    %cst_197 = arith.constant 5.000000e-01 : f32
    %593 = vector.broadcast %cst_197 : f32 to vector<8x32xf32>
    %594 = arith.addf %592, %593 : vector<8x32xf32>
    %595 = vector.extract_strided_slice %547 {offsets = [0, 0], sizes = [8, 32], strides = [1, 1]} : vector<8x64xf32> to vector<8x32xf32>
    %596 = arith.mulf %572, %595 : vector<8x32xf32>
    %597 = arith.mulf %567, %573 : vector<8x32xf32>
    %598 = arith.addf %596, %597 : vector<8x32xf32>
    %599 = vector.extract_strided_slice %547 {offsets = [0, 32], sizes = [8, 32], strides = [1, 1]} : vector<8x64xf32> to vector<8x32xf32>
    %600 = arith.mulf %588, %599 : vector<8x32xf32>
    %601 = arith.mulf %583, %589 : vector<8x32xf32>
    %602 = arith.addf %600, %601 : vector<8x32xf32>
    %603 = tpu.concatenate %598, %602 in 1 : vector<8x32xf32>, vector<8x32xf32> -> vector<8x64xf32>
    %604 = math.tanh %603 : vector<8x64xf32>
    %605 = vector.extract_strided_slice %604 {offsets = [0, 0], sizes = [8, 32], strides = [1, 1]} : vector<8x64xf32> to vector<8x32xf32>
    %606 = arith.mulf %578, %605 : vector<8x32xf32>
    %607 = vector.extract_strided_slice %604 {offsets = [0, 32], sizes = [8, 32], strides = [1, 1]} : vector<8x64xf32> to vector<8x32xf32>
    %608 = arith.mulf %594, %607 : vector<8x32xf32>
    %609 = arith.index_cast %549 : i32 to index
    %c0_198 = arith.constant 0 : index
    %610 = vector.load %arg6[%609, %c0_198] : memref<64x32xf32, #tpu.memory_space<vmem>>, vector<8x32xf32>
    tpu.vector_store %arg6[%609, %c0_198], %606 {strides = array<i32>} : memref<64x32xf32, #tpu.memory_space<vmem>>, vector<8x32xf32>,
    %611 = arith.index_cast %552 : i32 to index
    %c0_199 = arith.constant 0 : index
    %612 = vector.load %arg7[%611, %c0_199] : memref<64x32xf32, #tpu.memory_space<vmem>>, vector<8x32xf32>
    tpu.vector_store %arg7[%611, %c0_199], %608 {strides = array<i32>} : memref<64x32xf32, #tpu.memory_space<vmem>>, vector<8x32xf32>,
    %613 = tpu.concatenate %606, %608 in 1 : vector<8x32xf32>, vector<8x32xf32> -> vector<8x64xf32>
    %c1_i32_200 = arith.constant 1 : i32
    %c8_i32_201 = arith.constant 8 : i32
    %614 = arith.muli %c1_i32_200, %c8_i32_201 : i32
    %615 = tpu.assume_multiple %614, 8 : i32
    %c7_i32_202 = arith.constant 7 : i32
    %616 = arith.subi %c7_i32_202, %c1_i32_200 : i32
    %c8_i32_203 = arith.constant 8 : i32
    %617 = arith.muli %616, %c8_i32_203 : i32
    %618 = tpu.assume_multiple %617, 8 : i32
    %619 = arith.index_cast %615 : i32 to index
    %c0_204 = arith.constant 0 : index
    %620 = vector.load %arg3[%619, %c0_204] : memref<64x256xf32, #tpu.memory_space<vmem>>, vector<8x256xf32>
    %621 = arith.index_cast %618 : i32 to index
    %c0_205 = arith.constant 0 : index
    %622 = vector.load %arg3[%621, %c0_205] : memref<64x256xf32, #tpu.memory_space<vmem>>, vector<8x256xf32>
    %623 = vector.extract_strided_slice %620 {offsets = [0, 0], sizes = [8, 128], strides = [1, 1]} : vector<8x256xf32> to vector<8x128xf32>
    %624 = vector.extract_strided_slice %622 {offsets = [0, 128], sizes = [8, 128], strides = [1, 1]} : vector<8x256xf32> to vector<8x128xf32>
    %625 = tpu.concatenate %623, %624 in 1 : vector<8x128xf32>, vector<8x128xf32> -> vector<8x256xf32>
    %cst_206 = arith.constant dense<0.000000e+00> : vector<8x256xf32>
    %626 = tpu.matmul %613, %546, %cst_206 {dimension_numbers = #tpu.dot_dimension_numbers<[1], [0], [0], [1], [0, 0, 1, 1], [], []>} : vector<8x64xf32>, vector<64x256xf32>, vector<8x256xf32> -> vector<8x256xf32>
    %627 = arith.addf %625, %626 : vector<8x256xf32>
    %628 = math.tanh %627 : vector<8x256xf32>
    %629 = vector.extract_strided_slice %628 {offsets = [0, 0], sizes = [8, 32], strides = [1, 1]} : vector<8x256xf32> to vector<8x32xf32>
    %cst_207 = arith.constant 5.000000e-01 : f32
    %630 = vector.broadcast %cst_207 : f32 to vector<8x32xf32>
    %631 = arith.mulf %630, %629 : vector<8x32xf32>
    %cst_208 = arith.constant 5.000000e-01 : f32
    %632 = vector.broadcast %cst_208 : f32 to vector<8x32xf32>
    %633 = arith.addf %631, %632 : vector<8x32xf32>
    %634 = vector.extract_strided_slice %628 {offsets = [0, 32], sizes = [8, 32], strides = [1, 1]} : vector<8x256xf32> to vector<8x32xf32>
    %cst_209 = arith.constant 5.000000e-01 : f32
    %635 = vector.broadcast %cst_209 : f32 to vector<8x32xf32>
    %636 = arith.mulf %635, %634 : vector<8x32xf32>
    %cst_210 = arith.constant 5.000000e-01 : f32
    %637 = vector.broadcast %cst_210 : f32 to vector<8x32xf32>
    %638 = arith.addf %636, %637 : vector<8x32xf32>
    %639 = vector.extract_strided_slice %628 {offsets = [0, 64], sizes = [8, 32], strides = [1, 1]} : vector<8x256xf32> to vector<8x32xf32>
    %640 = vector.extract_strided_slice %628 {offsets = [0, 96], sizes = [8, 32], strides = [1, 1]} : vector<8x256xf32> to vector<8x32xf32>
    %cst_211 = arith.constant 5.000000e-01 : f32
    %641 = vector.broadcast %cst_211 : f32 to vector<8x32xf32>
    %642 = arith.mulf %641, %640 : vector<8x32xf32>
    %cst_212 = arith.constant 5.000000e-01 : f32
    %643 = vector.broadcast %cst_212 : f32 to vector<8x32xf32>
    %644 = arith.addf %642, %643 : vector<8x32xf32>
    %645 = vector.extract_strided_slice %628 {offsets = [0, 128], sizes = [8, 32], strides = [1, 1]} : vector<8x256xf32> to vector<8x32xf32>
    %cst_213 = arith.constant 5.000000e-01 : f32
    %646 = vector.broadcast %cst_213 : f32 to vector<8x32xf32>
    %647 = arith.mulf %646, %645 : vector<8x32xf32>
    %cst_214 = arith.constant 5.000000e-01 : f32
    %648 = vector.broadcast %cst_214 : f32 to vector<8x32xf32>
    %649 = arith.addf %647, %648 : vector<8x32xf32>
    %650 = vector.extract_strided_slice %628 {offsets = [0, 160], sizes = [8, 32], strides = [1, 1]} : vector<8x256xf32> to vector<8x32xf32>
    %cst_215 = arith.constant 5.000000e-01 : f32
    %651 = vector.broadcast %cst_215 : f32 to vector<8x32xf32>
    %652 = arith.mulf %651, %650 : vector<8x32xf32>
    %cst_216 = arith.constant 5.000000e-01 : f32
    %653 = vector.broadcast %cst_216 : f32 to vector<8x32xf32>
    %654 = arith.addf %652, %653 : vector<8x32xf32>
    %655 = vector.extract_strided_slice %628 {offsets = [0, 192], sizes = [8, 32], strides = [1, 1]} : vector<8x256xf32> to vector<8x32xf32>
    %656 = vector.extract_strided_slice %628 {offsets = [0, 224], sizes = [8, 32], strides = [1, 1]} : vector<8x256xf32> to vector<8x32xf32>
    %cst_217 = arith.constant 5.000000e-01 : f32
    %657 = vector.broadcast %cst_217 : f32 to vector<8x32xf32>
    %658 = arith.mulf %657, %656 : vector<8x32xf32>
    %cst_218 = arith.constant 5.000000e-01 : f32
    %659 = vector.broadcast %cst_218 : f32 to vector<8x32xf32>
    %660 = arith.addf %658, %659 : vector<8x32xf32>
    %661 = vector.extract_strided_slice %603 {offsets = [0, 0], sizes = [8, 32], strides = [1, 1]} : vector<8x64xf32> to vector<8x32xf32>
    %662 = arith.mulf %638, %661 : vector<8x32xf32>
    %663 = arith.mulf %633, %639 : vector<8x32xf32>
    %664 = arith.addf %662, %663 : vector<8x32xf32>
    %665 = vector.extract_strided_slice %603 {offsets = [0, 32], sizes = [8, 32], strides = [1, 1]} : vector<8x64xf32> to vector<8x32xf32>
    %666 = arith.mulf %654, %665 : vector<8x32xf32>
    %667 = arith.mulf %649, %655 : vector<8x32xf32>
    %668 = arith.addf %666, %667 : vector<8x32xf32>
    %669 = tpu.concatenate %664, %668 in 1 : vector<8x32xf32>, vector<8x32xf32> -> vector<8x64xf32>
    %670 = math.tanh %669 : vector<8x64xf32>
    %671 = vector.extract_strided_slice %670 {offsets = [0, 0], sizes = [8, 32], strides = [1, 1]} : vector<8x64xf32> to vector<8x32xf32>
    %672 = arith.mulf %644, %671 : vector<8x32xf32>
    %673 = vector.extract_strided_slice %670 {offsets = [0, 32], sizes = [8, 32], strides = [1, 1]} : vector<8x64xf32> to vector<8x32xf32>
    %674 = arith.mulf %660, %673 : vector<8x32xf32>
    %675 = arith.index_cast %615 : i32 to index
    %c0_219 = arith.constant 0 : index
    %676 = vector.load %arg6[%675, %c0_219] : memref<64x32xf32, #tpu.memory_space<vmem>>, vector<8x32xf32>
    tpu.vector_store %arg6[%675, %c0_219], %672 {strides = array<i32>} : memref<64x32xf32, #tpu.memory_space<vmem>>, vector<8x32xf32>,
    %677 = arith.index_cast %618 : i32 to index
    %c0_220 = arith.constant 0 : index
    %678 = vector.load %arg7[%677, %c0_220] : memref<64x32xf32, #tpu.memory_space<vmem>>, vector<8x32xf32>
    tpu.vector_store %arg7[%677, %c0_220], %674 {strides = array<i32>} : memref<64x32xf32, #tpu.memory_space<vmem>>, vector<8x32xf32>,
    %679 = tpu.concatenate %672, %674 in 1 : vector<8x32xf32>, vector<8x32xf32> -> vector<8x64xf32>
    %c2_i32_221 = arith.constant 2 : i32
    %c8_i32_222 = arith.constant 8 : i32
    %680 = arith.muli %c2_i32_221, %c8_i32_222 : i32
    %681 = tpu.assume_multiple %680, 8 : i32
    %c7_i32_223 = arith.constant 7 : i32
    %682 = arith.subi %c7_i32_223, %c2_i32_221 : i32
    %c8_i32_224 = arith.constant 8 : i32
    %683 = arith.muli %682, %c8_i32_224 : i32
    %684 = tpu.assume_multiple %683, 8 : i32
    %685 = arith.index_cast %681 : i32 to index
    %c0_225 = arith.constant 0 : index
    %686 = vector.load %arg3[%685, %c0_225] : memref<64x256xf32, #tpu.memory_space<vmem>>, vector<8x256xf32>
    %687 = arith.index_cast %684 : i32 to index
    %c0_226 = arith.constant 0 : index
    %688 = vector.load %arg3[%687, %c0_226] : memref<64x256xf32, #tpu.memory_space<vmem>>, vector<8x256xf32>
    %689 = vector.extract_strided_slice %686 {offsets = [0, 0], sizes = [8, 128], strides = [1, 1]} : vector<8x256xf32> to vector<8x128xf32>
    %690 = vector.extract_strided_slice %688 {offsets = [0, 128], sizes = [8, 128], strides = [1, 1]} : vector<8x256xf32> to vector<8x128xf32>
    %691 = tpu.concatenate %689, %690 in 1 : vector<8x128xf32>, vector<8x128xf32> -> vector<8x256xf32>
    %cst_227 = arith.constant dense<0.000000e+00> : vector<8x256xf32>
    %692 = tpu.matmul %679, %546, %cst_227 {dimension_numbers = #tpu.dot_dimension_numbers<[1], [0], [0], [1], [0, 0, 1, 1], [], []>} : vector<8x64xf32>, vector<64x256xf32>, vector<8x256xf32> -> vector<8x256xf32>
    %693 = arith.addf %691, %692 : vector<8x256xf32>
    %694 = math.tanh %693 : vector<8x256xf32>
    %695 = vector.extract_strided_slice %694 {offsets = [0, 0], sizes = [8, 32], strides = [1, 1]} : vector<8x256xf32> to vector<8x32xf32>
    %cst_228 = arith.constant 5.000000e-01 : f32
    %696 = vector.broadcast %cst_228 : f32 to vector<8x32xf32>
    %697 = arith.mulf %696, %695 : vector<8x32xf32>
    %cst_229 = arith.constant 5.000000e-01 : f32
    %698 = vector.broadcast %cst_229 : f32 to vector<8x32xf32>
    %699 = arith.addf %697, %698 : vector<8x32xf32>
    %700 = vector.extract_strided_slice %694 {offsets = [0, 32], sizes = [8, 32], strides = [1, 1]} : vector<8x256xf32> to vector<8x32xf32>
    %cst_230 = arith.constant 5.000000e-01 : f32
    %701 = vector.broadcast %cst_230 : f32 to vector<8x32xf32>
    %702 = arith.mulf %701, %700 : vector<8x32xf32>
    %cst_231 = arith.constant 5.000000e-01 : f32
    %703 = vector.broadcast %cst_231 : f32 to vector<8x32xf32>
    %704 = arith.addf %702, %703 : vector<8x32xf32>
    %705 = vector.extract_strided_slice %694 {offsets = [0, 64], sizes = [8, 32], strides = [1, 1]} : vector<8x256xf32> to vector<8x32xf32>
    %706 = vector.extract_strided_slice %694 {offsets = [0, 96], sizes = [8, 32], strides = [1, 1]} : vector<8x256xf32> to vector<8x32xf32>
    %cst_232 = arith.constant 5.000000e-01 : f32
    %707 = vector.broadcast %cst_232 : f32 to vector<8x32xf32>
    %708 = arith.mulf %707, %706 : vector<8x32xf32>
    %cst_233 = arith.constant 5.000000e-01 : f32
    %709 = vector.broadcast %cst_233 : f32 to vector<8x32xf32>
    %710 = arith.addf %708, %709 : vector<8x32xf32>
    %711 = vector.extract_strided_slice %694 {offsets = [0, 128], sizes = [8, 32], strides = [1, 1]} : vector<8x256xf32> to vector<8x32xf32>
    %cst_234 = arith.constant 5.000000e-01 : f32
    %712 = vector.broadcast %cst_234 : f32 to vector<8x32xf32>
    %713 = arith.mulf %712, %711 : vector<8x32xf32>
    %cst_235 = arith.constant 5.000000e-01 : f32
    %714 = vector.broadcast %cst_235 : f32 to vector<8x32xf32>
    %715 = arith.addf %713, %714 : vector<8x32xf32>
    %716 = vector.extract_strided_slice %694 {offsets = [0, 160], sizes = [8, 32], strides = [1, 1]} : vector<8x256xf32> to vector<8x32xf32>
    %cst_236 = arith.constant 5.000000e-01 : f32
    %717 = vector.broadcast %cst_236 : f32 to vector<8x32xf32>
    %718 = arith.mulf %717, %716 : vector<8x32xf32>
    %cst_237 = arith.constant 5.000000e-01 : f32
    %719 = vector.broadcast %cst_237 : f32 to vector<8x32xf32>
    %720 = arith.addf %718, %719 : vector<8x32xf32>
    %721 = vector.extract_strided_slice %694 {offsets = [0, 192], sizes = [8, 32], strides = [1, 1]} : vector<8x256xf32> to vector<8x32xf32>
    %722 = vector.extract_strided_slice %694 {offsets = [0, 224], sizes = [8, 32], strides = [1, 1]} : vector<8x256xf32> to vector<8x32xf32>
    %cst_238 = arith.constant 5.000000e-01 : f32
    %723 = vector.broadcast %cst_238 : f32 to vector<8x32xf32>
    %724 = arith.mulf %723, %722 : vector<8x32xf32>
    %cst_239 = arith.constant 5.000000e-01 : f32
    %725 = vector.broadcast %cst_239 : f32 to vector<8x32xf32>
    %726 = arith.addf %724, %725 : vector<8x32xf32>
    %727 = vector.extract_strided_slice %669 {offsets = [0, 0], sizes = [8, 32], strides = [1, 1]} : vector<8x64xf32> to vector<8x32xf32>
    %728 = arith.mulf %704, %727 : vector<8x32xf32>
    %729 = arith.mulf %699, %705 : vector<8x32xf32>
    %730 = arith.addf %728, %729 : vector<8x32xf32>
    %731 = vector.extract_strided_slice %669 {offsets = [0, 32], sizes = [8, 32], strides = [1, 1]} : vector<8x64xf32> to vector<8x32xf32>
    %732 = arith.mulf %720, %731 : vector<8x32xf32>
    %733 = arith.mulf %715, %721 : vector<8x32xf32>
    %734 = arith.addf %732, %733 : vector<8x32xf32>
    %735 = tpu.concatenate %730, %734 in 1 : vector<8x32xf32>, vector<8x32xf32> -> vector<8x64xf32>
    %736 = math.tanh %735 : vector<8x64xf32>
    %737 = vector.extract_strided_slice %736 {offsets = [0, 0], sizes = [8, 32], strides = [1, 1]} : vector<8x64xf32> to vector<8x32xf32>
    %738 = arith.mulf %710, %737 : vector<8x32xf32>
    %739 = vector.extract_strided_slice %736 {offsets = [0, 32], sizes = [8, 32], strides = [1, 1]} : vector<8x64xf32> to vector<8x32xf32>
    %740 = arith.mulf %726, %739 : vector<8x32xf32>
    %741 = arith.index_cast %681 : i32 to index
    %c0_240 = arith.constant 0 : index
    %742 = vector.load %arg6[%741, %c0_240] : memref<64x32xf32, #tpu.memory_space<vmem>>, vector<8x32xf32>
    tpu.vector_store %arg6[%741, %c0_240], %738 {strides = array<i32>} : memref<64x32xf32, #tpu.memory_space<vmem>>, vector<8x32xf32>,
    %743 = arith.index_cast %684 : i32 to index
    %c0_241 = arith.constant 0 : index
    %744 = vector.load %arg7[%743, %c0_241] : memref<64x32xf32, #tpu.memory_space<vmem>>, vector<8x32xf32>
    tpu.vector_store %arg7[%743, %c0_241], %740 {strides = array<i32>} : memref<64x32xf32, #tpu.memory_space<vmem>>, vector<8x32xf32>,
    %745 = tpu.concatenate %738, %740 in 1 : vector<8x32xf32>, vector<8x32xf32> -> vector<8x64xf32>
    %c3_i32_242 = arith.constant 3 : i32
    %c8_i32_243 = arith.constant 8 : i32
    %746 = arith.muli %c3_i32_242, %c8_i32_243 : i32
    %747 = tpu.assume_multiple %746, 8 : i32
    %c7_i32_244 = arith.constant 7 : i32
    %748 = arith.subi %c7_i32_244, %c3_i32_242 : i32
    %c8_i32_245 = arith.constant 8 : i32
    %749 = arith.muli %748, %c8_i32_245 : i32
    %750 = tpu.assume_multiple %749, 8 : i32
    %751 = arith.index_cast %747 : i32 to index
    %c0_246 = arith.constant 0 : index
    %752 = vector.load %arg3[%751, %c0_246] : memref<64x256xf32, #tpu.memory_space<vmem>>, vector<8x256xf32>
    %753 = arith.index_cast %750 : i32 to index
    %c0_247 = arith.constant 0 : index
    %754 = vector.load %arg3[%753, %c0_247] : memref<64x256xf32, #tpu.memory_space<vmem>>, vector<8x256xf32>
    %755 = vector.extract_strided_slice %752 {offsets = [0, 0], sizes = [8, 128], strides = [1, 1]} : vector<8x256xf32> to vector<8x128xf32>
    %756 = vector.extract_strided_slice %754 {offsets = [0, 128], sizes = [8, 128], strides = [1, 1]} : vector<8x256xf32> to vector<8x128xf32>
    %757 = tpu.concatenate %755, %756 in 1 : vector<8x128xf32>, vector<8x128xf32> -> vector<8x256xf32>
    %cst_248 = arith.constant dense<0.000000e+00> : vector<8x256xf32>
    %758 = tpu.matmul %745, %546, %cst_248 {dimension_numbers = #tpu.dot_dimension_numbers<[1], [0], [0], [1], [0, 0, 1, 1], [], []>} : vector<8x64xf32>, vector<64x256xf32>, vector<8x256xf32> -> vector<8x256xf32>
    %759 = arith.addf %757, %758 : vector<8x256xf32>
    %760 = math.tanh %759 : vector<8x256xf32>
    %761 = vector.extract_strided_slice %760 {offsets = [0, 0], sizes = [8, 32], strides = [1, 1]} : vector<8x256xf32> to vector<8x32xf32>
    %cst_249 = arith.constant 5.000000e-01 : f32
    %762 = vector.broadcast %cst_249 : f32 to vector<8x32xf32>
    %763 = arith.mulf %762, %761 : vector<8x32xf32>
    %cst_250 = arith.constant 5.000000e-01 : f32
    %764 = vector.broadcast %cst_250 : f32 to vector<8x32xf32>
    %765 = arith.addf %763, %764 : vector<8x32xf32>
    %766 = vector.extract_strided_slice %760 {offsets = [0, 32], sizes = [8, 32], strides = [1, 1]} : vector<8x256xf32> to vector<8x32xf32>
    %cst_251 = arith.constant 5.000000e-01 : f32
    %767 = vector.broadcast %cst_251 : f32 to vector<8x32xf32>
    %768 = arith.mulf %767, %766 : vector<8x32xf32>
    %cst_252 = arith.constant 5.000000e-01 : f32
    %769 = vector.broadcast %cst_252 : f32 to vector<8x32xf32>
    %770 = arith.addf %768, %769 : vector<8x32xf32>
    %771 = vector.extract_strided_slice %760 {offsets = [0, 64], sizes = [8, 32], strides = [1, 1]} : vector<8x256xf32> to vector<8x32xf32>
    %772 = vector.extract_strided_slice %760 {offsets = [0, 96], sizes = [8, 32], strides = [1, 1]} : vector<8x256xf32> to vector<8x32xf32>
    %cst_253 = arith.constant 5.000000e-01 : f32
    %773 = vector.broadcast %cst_253 : f32 to vector<8x32xf32>
    %774 = arith.mulf %773, %772 : vector<8x32xf32>
    %cst_254 = arith.constant 5.000000e-01 : f32
    %775 = vector.broadcast %cst_254 : f32 to vector<8x32xf32>
    %776 = arith.addf %774, %775 : vector<8x32xf32>
    %777 = vector.extract_strided_slice %760 {offsets = [0, 128], sizes = [8, 32], strides = [1, 1]} : vector<8x256xf32> to vector<8x32xf32>
    %cst_255 = arith.constant 5.000000e-01 : f32
    %778 = vector.broadcast %cst_255 : f32 to vector<8x32xf32>
    %779 = arith.mulf %778, %777 : vector<8x32xf32>
    %cst_256 = arith.constant 5.000000e-01 : f32
    %780 = vector.broadcast %cst_256 : f32 to vector<8x32xf32>
    %781 = arith.addf %779, %780 : vector<8x32xf32>
    %782 = vector.extract_strided_slice %760 {offsets = [0, 160], sizes = [8, 32], strides = [1, 1]} : vector<8x256xf32> to vector<8x32xf32>
    %cst_257 = arith.constant 5.000000e-01 : f32
    %783 = vector.broadcast %cst_257 : f32 to vector<8x32xf32>
    %784 = arith.mulf %783, %782 : vector<8x32xf32>
    %cst_258 = arith.constant 5.000000e-01 : f32
    %785 = vector.broadcast %cst_258 : f32 to vector<8x32xf32>
    %786 = arith.addf %784, %785 : vector<8x32xf32>
    %787 = vector.extract_strided_slice %760 {offsets = [0, 192], sizes = [8, 32], strides = [1, 1]} : vector<8x256xf32> to vector<8x32xf32>
    %788 = vector.extract_strided_slice %760 {offsets = [0, 224], sizes = [8, 32], strides = [1, 1]} : vector<8x256xf32> to vector<8x32xf32>
    %cst_259 = arith.constant 5.000000e-01 : f32
    %789 = vector.broadcast %cst_259 : f32 to vector<8x32xf32>
    %790 = arith.mulf %789, %788 : vector<8x32xf32>
    %cst_260 = arith.constant 5.000000e-01 : f32
    %791 = vector.broadcast %cst_260 : f32 to vector<8x32xf32>
    %792 = arith.addf %790, %791 : vector<8x32xf32>
    %793 = vector.extract_strided_slice %735 {offsets = [0, 0], sizes = [8, 32], strides = [1, 1]} : vector<8x64xf32> to vector<8x32xf32>
    %794 = arith.mulf %770, %793 : vector<8x32xf32>
    %795 = arith.mulf %765, %771 : vector<8x32xf32>
    %796 = arith.addf %794, %795 : vector<8x32xf32>
    %797 = vector.extract_strided_slice %735 {offsets = [0, 32], sizes = [8, 32], strides = [1, 1]} : vector<8x64xf32> to vector<8x32xf32>
    %798 = arith.mulf %786, %797 : vector<8x32xf32>
    %799 = arith.mulf %781, %787 : vector<8x32xf32>
    %800 = arith.addf %798, %799 : vector<8x32xf32>
    %801 = tpu.concatenate %796, %800 in 1 : vector<8x32xf32>, vector<8x32xf32> -> vector<8x64xf32>
    %802 = math.tanh %801 : vector<8x64xf32>
    %803 = vector.extract_strided_slice %802 {offsets = [0, 0], sizes = [8, 32], strides = [1, 1]} : vector<8x64xf32> to vector<8x32xf32>
    %804 = arith.mulf %776, %803 : vector<8x32xf32>
    %805 = vector.extract_strided_slice %802 {offsets = [0, 32], sizes = [8, 32], strides = [1, 1]} : vector<8x64xf32> to vector<8x32xf32>
    %806 = arith.mulf %792, %805 : vector<8x32xf32>
    %807 = arith.index_cast %747 : i32 to index
    %c0_261 = arith.constant 0 : index
    %808 = vector.load %arg6[%807, %c0_261] : memref<64x32xf32, #tpu.memory_space<vmem>>, vector<8x32xf32>
    tpu.vector_store %arg6[%807, %c0_261], %804 {strides = array<i32>} : memref<64x32xf32, #tpu.memory_space<vmem>>, vector<8x32xf32>,
    %809 = arith.index_cast %750 : i32 to index
    %c0_262 = arith.constant 0 : index
    %810 = vector.load %arg7[%809, %c0_262] : memref<64x32xf32, #tpu.memory_space<vmem>>, vector<8x32xf32>
    tpu.vector_store %arg7[%809, %c0_262], %806 {strides = array<i32>} : memref<64x32xf32, #tpu.memory_space<vmem>>, vector<8x32xf32>,
    %811 = tpu.concatenate %804, %806 in 1 : vector<8x32xf32>, vector<8x32xf32> -> vector<8x64xf32>
    %c4_i32_263 = arith.constant 4 : i32
    %c8_i32_264 = arith.constant 8 : i32
    %812 = arith.muli %c4_i32_263, %c8_i32_264 : i32
    %813 = tpu.assume_multiple %812, 8 : i32
    %c7_i32_265 = arith.constant 7 : i32
    %814 = arith.subi %c7_i32_265, %c4_i32_263 : i32
    %c8_i32_266 = arith.constant 8 : i32
    %815 = arith.muli %814, %c8_i32_266 : i32
    %816 = tpu.assume_multiple %815, 8 : i32
    %817 = arith.index_cast %813 : i32 to index
    %c0_267 = arith.constant 0 : index
    %818 = vector.load %arg3[%817, %c0_267] : memref<64x256xf32, #tpu.memory_space<vmem>>, vector<8x256xf32>
    %819 = arith.index_cast %816 : i32 to index
    %c0_268 = arith.constant 0 : index
    %820 = vector.load %arg3[%819, %c0_268] : memref<64x256xf32, #tpu.memory_space<vmem>>, vector<8x256xf32>
    %821 = vector.extract_strided_slice %818 {offsets = [0, 0], sizes = [8, 128], strides = [1, 1]} : vector<8x256xf32> to vector<8x128xf32>
    %822 = vector.extract_strided_slice %820 {offsets = [0, 128], sizes = [8, 128], strides = [1, 1]} : vector<8x256xf32> to vector<8x128xf32>
    %823 = tpu.concatenate %821, %822 in 1 : vector<8x128xf32>, vector<8x128xf32> -> vector<8x256xf32>
    %cst_269 = arith.constant dense<0.000000e+00> : vector<8x256xf32>
    %824 = tpu.matmul %811, %546, %cst_269 {dimension_numbers = #tpu.dot_dimension_numbers<[1], [0], [0], [1], [0, 0, 1, 1], [], []>} : vector<8x64xf32>, vector<64x256xf32>, vector<8x256xf32> -> vector<8x256xf32>
    %825 = arith.addf %823, %824 : vector<8x256xf32>
    %826 = math.tanh %825 : vector<8x256xf32>
    %827 = vector.extract_strided_slice %826 {offsets = [0, 0], sizes = [8, 32], strides = [1, 1]} : vector<8x256xf32> to vector<8x32xf32>
    %cst_270 = arith.constant 5.000000e-01 : f32
    %828 = vector.broadcast %cst_270 : f32 to vector<8x32xf32>
    %829 = arith.mulf %828, %827 : vector<8x32xf32>
    %cst_271 = arith.constant 5.000000e-01 : f32
    %830 = vector.broadcast %cst_271 : f32 to vector<8x32xf32>
    %831 = arith.addf %829, %830 : vector<8x32xf32>
    %832 = vector.extract_strided_slice %826 {offsets = [0, 32], sizes = [8, 32], strides = [1, 1]} : vector<8x256xf32> to vector<8x32xf32>
    %cst_272 = arith.constant 5.000000e-01 : f32
    %833 = vector.broadcast %cst_272 : f32 to vector<8x32xf32>
    %834 = arith.mulf %833, %832 : vector<8x32xf32>
    %cst_273 = arith.constant 5.000000e-01 : f32
    %835 = vector.broadcast %cst_273 : f32 to vector<8x32xf32>
    %836 = arith.addf %834, %835 : vector<8x32xf32>
    %837 = vector.extract_strided_slice %826 {offsets = [0, 64], sizes = [8, 32], strides = [1, 1]} : vector<8x256xf32> to vector<8x32xf32>
    %838 = vector.extract_strided_slice %826 {offsets = [0, 96], sizes = [8, 32], strides = [1, 1]} : vector<8x256xf32> to vector<8x32xf32>
    %cst_274 = arith.constant 5.000000e-01 : f32
    %839 = vector.broadcast %cst_274 : f32 to vector<8x32xf32>
    %840 = arith.mulf %839, %838 : vector<8x32xf32>
    %cst_275 = arith.constant 5.000000e-01 : f32
    %841 = vector.broadcast %cst_275 : f32 to vector<8x32xf32>
    %842 = arith.addf %840, %841 : vector<8x32xf32>
    %843 = vector.extract_strided_slice %826 {offsets = [0, 128], sizes = [8, 32], strides = [1, 1]} : vector<8x256xf32> to vector<8x32xf32>
    %cst_276 = arith.constant 5.000000e-01 : f32
    %844 = vector.broadcast %cst_276 : f32 to vector<8x32xf32>
    %845 = arith.mulf %844, %843 : vector<8x32xf32>
    %cst_277 = arith.constant 5.000000e-01 : f32
    %846 = vector.broadcast %cst_277 : f32 to vector<8x32xf32>
    %847 = arith.addf %845, %846 : vector<8x32xf32>
    %848 = vector.extract_strided_slice %826 {offsets = [0, 160], sizes = [8, 32], strides = [1, 1]} : vector<8x256xf32> to vector<8x32xf32>
    %cst_278 = arith.constant 5.000000e-01 : f32
    %849 = vector.broadcast %cst_278 : f32 to vector<8x32xf32>
    %850 = arith.mulf %849, %848 : vector<8x32xf32>
    %cst_279 = arith.constant 5.000000e-01 : f32
    %851 = vector.broadcast %cst_279 : f32 to vector<8x32xf32>
    %852 = arith.addf %850, %851 : vector<8x32xf32>
    %853 = vector.extract_strided_slice %826 {offsets = [0, 192], sizes = [8, 32], strides = [1, 1]} : vector<8x256xf32> to vector<8x32xf32>
    %854 = vector.extract_strided_slice %826 {offsets = [0, 224], sizes = [8, 32], strides = [1, 1]} : vector<8x256xf32> to vector<8x32xf32>
    %cst_280 = arith.constant 5.000000e-01 : f32
    %855 = vector.broadcast %cst_280 : f32 to vector<8x32xf32>
    %856 = arith.mulf %855, %854 : vector<8x32xf32>
    %cst_281 = arith.constant 5.000000e-01 : f32
    %857 = vector.broadcast %cst_281 : f32 to vector<8x32xf32>
    %858 = arith.addf %856, %857 : vector<8x32xf32>
    %859 = vector.extract_strided_slice %801 {offsets = [0, 0], sizes = [8, 32], strides = [1, 1]} : vector<8x64xf32> to vector<8x32xf32>
    %860 = arith.mulf %836, %859 : vector<8x32xf32>
    %861 = arith.mulf %831, %837 : vector<8x32xf32>
    %862 = arith.addf %860, %861 : vector<8x32xf32>
    %863 = vector.extract_strided_slice %801 {offsets = [0, 32], sizes = [8, 32], strides = [1, 1]} : vector<8x64xf32> to vector<8x32xf32>
    %864 = arith.mulf %852, %863 : vector<8x32xf32>
    %865 = arith.mulf %847, %853 : vector<8x32xf32>
    %866 = arith.addf %864, %865 : vector<8x32xf32>
    %867 = tpu.concatenate %862, %866 in 1 : vector<8x32xf32>, vector<8x32xf32> -> vector<8x64xf32>
    %868 = math.tanh %867 : vector<8x64xf32>
    %869 = vector.extract_strided_slice %868 {offsets = [0, 0], sizes = [8, 32], strides = [1, 1]} : vector<8x64xf32> to vector<8x32xf32>
    %870 = arith.mulf %842, %869 : vector<8x32xf32>
    %871 = vector.extract_strided_slice %868 {offsets = [0, 32], sizes = [8, 32], strides = [1, 1]} : vector<8x64xf32> to vector<8x32xf32>
    %872 = arith.mulf %858, %871 : vector<8x32xf32>
    %873 = arith.index_cast %813 : i32 to index
    %c0_282 = arith.constant 0 : index
    %874 = vector.load %arg6[%873, %c0_282] : memref<64x32xf32, #tpu.memory_space<vmem>>, vector<8x32xf32>
    tpu.vector_store %arg6[%873, %c0_282], %870 {strides = array<i32>} : memref<64x32xf32, #tpu.memory_space<vmem>>, vector<8x32xf32>,
    %875 = arith.index_cast %816 : i32 to index
    %c0_283 = arith.constant 0 : index
    %876 = vector.load %arg7[%875, %c0_283] : memref<64x32xf32, #tpu.memory_space<vmem>>, vector<8x32xf32>
    tpu.vector_store %arg7[%875, %c0_283], %872 {strides = array<i32>} : memref<64x32xf32, #tpu.memory_space<vmem>>, vector<8x32xf32>,
    %877 = tpu.concatenate %870, %872 in 1 : vector<8x32xf32>, vector<8x32xf32> -> vector<8x64xf32>
    %c5_i32_284 = arith.constant 5 : i32
    %c8_i32_285 = arith.constant 8 : i32
    %878 = arith.muli %c5_i32_284, %c8_i32_285 : i32
    %879 = tpu.assume_multiple %878, 8 : i32
    %c7_i32_286 = arith.constant 7 : i32
    %880 = arith.subi %c7_i32_286, %c5_i32_284 : i32
    %c8_i32_287 = arith.constant 8 : i32
    %881 = arith.muli %880, %c8_i32_287 : i32
    %882 = tpu.assume_multiple %881, 8 : i32
    %883 = arith.index_cast %879 : i32 to index
    %c0_288 = arith.constant 0 : index
    %884 = vector.load %arg3[%883, %c0_288] : memref<64x256xf32, #tpu.memory_space<vmem>>, vector<8x256xf32>
    %885 = arith.index_cast %882 : i32 to index
    %c0_289 = arith.constant 0 : index
    %886 = vector.load %arg3[%885, %c0_289] : memref<64x256xf32, #tpu.memory_space<vmem>>, vector<8x256xf32>
    %887 = vector.extract_strided_slice %884 {offsets = [0, 0], sizes = [8, 128], strides = [1, 1]} : vector<8x256xf32> to vector<8x128xf32>
    %888 = vector.extract_strided_slice %886 {offsets = [0, 128], sizes = [8, 128], strides = [1, 1]} : vector<8x256xf32> to vector<8x128xf32>
    %889 = tpu.concatenate %887, %888 in 1 : vector<8x128xf32>, vector<8x128xf32> -> vector<8x256xf32>
    %cst_290 = arith.constant dense<0.000000e+00> : vector<8x256xf32>
    %890 = tpu.matmul %877, %546, %cst_290 {dimension_numbers = #tpu.dot_dimension_numbers<[1], [0], [0], [1], [0, 0, 1, 1], [], []>} : vector<8x64xf32>, vector<64x256xf32>, vector<8x256xf32> -> vector<8x256xf32>
    %891 = arith.addf %889, %890 : vector<8x256xf32>
    %892 = math.tanh %891 : vector<8x256xf32>
    %893 = vector.extract_strided_slice %892 {offsets = [0, 0], sizes = [8, 32], strides = [1, 1]} : vector<8x256xf32> to vector<8x32xf32>
    %cst_291 = arith.constant 5.000000e-01 : f32
    %894 = vector.broadcast %cst_291 : f32 to vector<8x32xf32>
    %895 = arith.mulf %894, %893 : vector<8x32xf32>
    %cst_292 = arith.constant 5.000000e-01 : f32
    %896 = vector.broadcast %cst_292 : f32 to vector<8x32xf32>
    %897 = arith.addf %895, %896 : vector<8x32xf32>
    %898 = vector.extract_strided_slice %892 {offsets = [0, 32], sizes = [8, 32], strides = [1, 1]} : vector<8x256xf32> to vector<8x32xf32>
    %cst_293 = arith.constant 5.000000e-01 : f32
    %899 = vector.broadcast %cst_293 : f32 to vector<8x32xf32>
    %900 = arith.mulf %899, %898 : vector<8x32xf32>
    %cst_294 = arith.constant 5.000000e-01 : f32
    %901 = vector.broadcast %cst_294 : f32 to vector<8x32xf32>
    %902 = arith.addf %900, %901 : vector<8x32xf32>
    %903 = vector.extract_strided_slice %892 {offsets = [0, 64], sizes = [8, 32], strides = [1, 1]} : vector<8x256xf32> to vector<8x32xf32>
    %904 = vector.extract_strided_slice %892 {offsets = [0, 96], sizes = [8, 32], strides = [1, 1]} : vector<8x256xf32> to vector<8x32xf32>
    %cst_295 = arith.constant 5.000000e-01 : f32
    %905 = vector.broadcast %cst_295 : f32 to vector<8x32xf32>
    %906 = arith.mulf %905, %904 : vector<8x32xf32>
    %cst_296 = arith.constant 5.000000e-01 : f32
    %907 = vector.broadcast %cst_296 : f32 to vector<8x32xf32>
    %908 = arith.addf %906, %907 : vector<8x32xf32>
    %909 = vector.extract_strided_slice %892 {offsets = [0, 128], sizes = [8, 32], strides = [1, 1]} : vector<8x256xf32> to vector<8x32xf32>
    %cst_297 = arith.constant 5.000000e-01 : f32
    %910 = vector.broadcast %cst_297 : f32 to vector<8x32xf32>
    %911 = arith.mulf %910, %909 : vector<8x32xf32>
    %cst_298 = arith.constant 5.000000e-01 : f32
    %912 = vector.broadcast %cst_298 : f32 to vector<8x32xf32>
    %913 = arith.addf %911, %912 : vector<8x32xf32>
    %914 = vector.extract_strided_slice %892 {offsets = [0, 160], sizes = [8, 32], strides = [1, 1]} : vector<8x256xf32> to vector<8x32xf32>
    %cst_299 = arith.constant 5.000000e-01 : f32
    %915 = vector.broadcast %cst_299 : f32 to vector<8x32xf32>
    %916 = arith.mulf %915, %914 : vector<8x32xf32>
    %cst_300 = arith.constant 5.000000e-01 : f32
    %917 = vector.broadcast %cst_300 : f32 to vector<8x32xf32>
    %918 = arith.addf %916, %917 : vector<8x32xf32>
    %919 = vector.extract_strided_slice %892 {offsets = [0, 192], sizes = [8, 32], strides = [1, 1]} : vector<8x256xf32> to vector<8x32xf32>
    %920 = vector.extract_strided_slice %892 {offsets = [0, 224], sizes = [8, 32], strides = [1, 1]} : vector<8x256xf32> to vector<8x32xf32>
    %cst_301 = arith.constant 5.000000e-01 : f32
    %921 = vector.broadcast %cst_301 : f32 to vector<8x32xf32>
    %922 = arith.mulf %921, %920 : vector<8x32xf32>
    %cst_302 = arith.constant 5.000000e-01 : f32
    %923 = vector.broadcast %cst_302 : f32 to vector<8x32xf32>
    %924 = arith.addf %922, %923 : vector<8x32xf32>
    %925 = vector.extract_strided_slice %867 {offsets = [0, 0], sizes = [8, 32], strides = [1, 1]} : vector<8x64xf32> to vector<8x32xf32>
    %926 = arith.mulf %902, %925 : vector<8x32xf32>
    %927 = arith.mulf %897, %903 : vector<8x32xf32>
    %928 = arith.addf %926, %927 : vector<8x32xf32>
    %929 = vector.extract_strided_slice %867 {offsets = [0, 32], sizes = [8, 32], strides = [1, 1]} : vector<8x64xf32> to vector<8x32xf32>
    %930 = arith.mulf %918, %929 : vector<8x32xf32>
    %931 = arith.mulf %913, %919 : vector<8x32xf32>
    %932 = arith.addf %930, %931 : vector<8x32xf32>
    %933 = tpu.concatenate %928, %932 in 1 : vector<8x32xf32>, vector<8x32xf32> -> vector<8x64xf32>
    %934 = math.tanh %933 : vector<8x64xf32>
    %935 = vector.extract_strided_slice %934 {offsets = [0, 0], sizes = [8, 32], strides = [1, 1]} : vector<8x64xf32> to vector<8x32xf32>
    %936 = arith.mulf %908, %935 : vector<8x32xf32>
    %937 = vector.extract_strided_slice %934 {offsets = [0, 32], sizes = [8, 32], strides = [1, 1]} : vector<8x64xf32> to vector<8x32xf32>
    %938 = arith.mulf %924, %937 : vector<8x32xf32>
    %939 = arith.index_cast %879 : i32 to index
    %c0_303 = arith.constant 0 : index
    %940 = vector.load %arg6[%939, %c0_303] : memref<64x32xf32, #tpu.memory_space<vmem>>, vector<8x32xf32>
    tpu.vector_store %arg6[%939, %c0_303], %936 {strides = array<i32>} : memref<64x32xf32, #tpu.memory_space<vmem>>, vector<8x32xf32>,
    %941 = arith.index_cast %882 : i32 to index
    %c0_304 = arith.constant 0 : index
    %942 = vector.load %arg7[%941, %c0_304] : memref<64x32xf32, #tpu.memory_space<vmem>>, vector<8x32xf32>
    tpu.vector_store %arg7[%941, %c0_304], %938 {strides = array<i32>} : memref<64x32xf32, #tpu.memory_space<vmem>>, vector<8x32xf32>,
    %943 = tpu.concatenate %936, %938 in 1 : vector<8x32xf32>, vector<8x32xf32> -> vector<8x64xf32>
    %c6_i32_305 = arith.constant 6 : i32
    %c8_i32_306 = arith.constant 8 : i32
    %944 = arith.muli %c6_i32_305, %c8_i32_306 : i32
    %945 = tpu.assume_multiple %944, 8 : i32
    %c7_i32_307 = arith.constant 7 : i32
    %946 = arith.subi %c7_i32_307, %c6_i32_305 : i32
    %c8_i32_308 = arith.constant 8 : i32
    %947 = arith.muli %946, %c8_i32_308 : i32
    %948 = tpu.assume_multiple %947, 8 : i32
    %949 = arith.index_cast %945 : i32 to index
    %c0_309 = arith.constant 0 : index
    %950 = vector.load %arg3[%949, %c0_309] : memref<64x256xf32, #tpu.memory_space<vmem>>, vector<8x256xf32>
    %951 = arith.index_cast %948 : i32 to index
    %c0_310 = arith.constant 0 : index
    %952 = vector.load %arg3[%951, %c0_310] : memref<64x256xf32, #tpu.memory_space<vmem>>, vector<8x256xf32>
    %953 = vector.extract_strided_slice %950 {offsets = [0, 0], sizes = [8, 128], strides = [1, 1]} : vector<8x256xf32> to vector<8x128xf32>
    %954 = vector.extract_strided_slice %952 {offsets = [0, 128], sizes = [8, 128], strides = [1, 1]} : vector<8x256xf32> to vector<8x128xf32>
    %955 = tpu.concatenate %953, %954 in 1 : vector<8x128xf32>, vector<8x128xf32> -> vector<8x256xf32>
    %cst_311 = arith.constant dense<0.000000e+00> : vector<8x256xf32>
    %956 = tpu.matmul %943, %546, %cst_311 {dimension_numbers = #tpu.dot_dimension_numbers<[1], [0], [0], [1], [0, 0, 1, 1], [], []>} : vector<8x64xf32>, vector<64x256xf32>, vector<8x256xf32> -> vector<8x256xf32>
    %957 = arith.addf %955, %956 : vector<8x256xf32>
    %958 = math.tanh %957 : vector<8x256xf32>
    %959 = vector.extract_strided_slice %958 {offsets = [0, 0], sizes = [8, 32], strides = [1, 1]} : vector<8x256xf32> to vector<8x32xf32>
    %cst_312 = arith.constant 5.000000e-01 : f32
    %960 = vector.broadcast %cst_312 : f32 to vector<8x32xf32>
    %961 = arith.mulf %960, %959 : vector<8x32xf32>
    %cst_313 = arith.constant 5.000000e-01 : f32
    %962 = vector.broadcast %cst_313 : f32 to vector<8x32xf32>
    %963 = arith.addf %961, %962 : vector<8x32xf32>
    %964 = vector.extract_strided_slice %958 {offsets = [0, 32], sizes = [8, 32], strides = [1, 1]} : vector<8x256xf32> to vector<8x32xf32>
    %cst_314 = arith.constant 5.000000e-01 : f32
    %965 = vector.broadcast %cst_314 : f32 to vector<8x32xf32>
    %966 = arith.mulf %965, %964 : vector<8x32xf32>
    %cst_315 = arith.constant 5.000000e-01 : f32
    %967 = vector.broadcast %cst_315 : f32 to vector<8x32xf32>
    %968 = arith.addf %966, %967 : vector<8x32xf32>
    %969 = vector.extract_strided_slice %958 {offsets = [0, 64], sizes = [8, 32], strides = [1, 1]} : vector<8x256xf32> to vector<8x32xf32>
    %970 = vector.extract_strided_slice %958 {offsets = [0, 96], sizes = [8, 32], strides = [1, 1]} : vector<8x256xf32> to vector<8x32xf32>
    %cst_316 = arith.constant 5.000000e-01 : f32
    %971 = vector.broadcast %cst_316 : f32 to vector<8x32xf32>
    %972 = arith.mulf %971, %970 : vector<8x32xf32>
    %cst_317 = arith.constant 5.000000e-01 : f32
    %973 = vector.broadcast %cst_317 : f32 to vector<8x32xf32>
    %974 = arith.addf %972, %973 : vector<8x32xf32>
    %975 = vector.extract_strided_slice %958 {offsets = [0, 128], sizes = [8, 32], strides = [1, 1]} : vector<8x256xf32> to vector<8x32xf32>
    %cst_318 = arith.constant 5.000000e-01 : f32
    %976 = vector.broadcast %cst_318 : f32 to vector<8x32xf32>
    %977 = arith.mulf %976, %975 : vector<8x32xf32>
    %cst_319 = arith.constant 5.000000e-01 : f32
    %978 = vector.broadcast %cst_319 : f32 to vector<8x32xf32>
    %979 = arith.addf %977, %978 : vector<8x32xf32>
    %980 = vector.extract_strided_slice %958 {offsets = [0, 160], sizes = [8, 32], strides = [1, 1]} : vector<8x256xf32> to vector<8x32xf32>
    %cst_320 = arith.constant 5.000000e-01 : f32
    %981 = vector.broadcast %cst_320 : f32 to vector<8x32xf32>
    %982 = arith.mulf %981, %980 : vector<8x32xf32>
    %cst_321 = arith.constant 5.000000e-01 : f32
    %983 = vector.broadcast %cst_321 : f32 to vector<8x32xf32>
    %984 = arith.addf %982, %983 : vector<8x32xf32>
    %985 = vector.extract_strided_slice %958 {offsets = [0, 192], sizes = [8, 32], strides = [1, 1]} : vector<8x256xf32> to vector<8x32xf32>
    %986 = vector.extract_strided_slice %958 {offsets = [0, 224], sizes = [8, 32], strides = [1, 1]} : vector<8x256xf32> to vector<8x32xf32>
    %cst_322 = arith.constant 5.000000e-01 : f32
    %987 = vector.broadcast %cst_322 : f32 to vector<8x32xf32>
    %988 = arith.mulf %987, %986 : vector<8x32xf32>
    %cst_323 = arith.constant 5.000000e-01 : f32
    %989 = vector.broadcast %cst_323 : f32 to vector<8x32xf32>
    %990 = arith.addf %988, %989 : vector<8x32xf32>
    %991 = vector.extract_strided_slice %933 {offsets = [0, 0], sizes = [8, 32], strides = [1, 1]} : vector<8x64xf32> to vector<8x32xf32>
    %992 = arith.mulf %968, %991 : vector<8x32xf32>
    %993 = arith.mulf %963, %969 : vector<8x32xf32>
    %994 = arith.addf %992, %993 : vector<8x32xf32>
    %995 = vector.extract_strided_slice %933 {offsets = [0, 32], sizes = [8, 32], strides = [1, 1]} : vector<8x64xf32> to vector<8x32xf32>
    %996 = arith.mulf %984, %995 : vector<8x32xf32>
    %997 = arith.mulf %979, %985 : vector<8x32xf32>
    %998 = arith.addf %996, %997 : vector<8x32xf32>
    %999 = tpu.concatenate %994, %998 in 1 : vector<8x32xf32>, vector<8x32xf32> -> vector<8x64xf32>
    %1000 = math.tanh %999 : vector<8x64xf32>
    %1001 = vector.extract_strided_slice %1000 {offsets = [0, 0], sizes = [8, 32], strides = [1, 1]} : vector<8x64xf32> to vector<8x32xf32>
    %1002 = arith.mulf %974, %1001 : vector<8x32xf32>
    %1003 = vector.extract_strided_slice %1000 {offsets = [0, 32], sizes = [8, 32], strides = [1, 1]} : vector<8x64xf32> to vector<8x32xf32>
    %1004 = arith.mulf %990, %1003 : vector<8x32xf32>
    %1005 = arith.index_cast %945 : i32 to index
    %c0_324 = arith.constant 0 : index
    %1006 = vector.load %arg6[%1005, %c0_324] : memref<64x32xf32, #tpu.memory_space<vmem>>, vector<8x32xf32>
    tpu.vector_store %arg6[%1005, %c0_324], %1002 {strides = array<i32>} : memref<64x32xf32, #tpu.memory_space<vmem>>, vector<8x32xf32>,
    %1007 = arith.index_cast %948 : i32 to index
    %c0_325 = arith.constant 0 : index
    %1008 = vector.load %arg7[%1007, %c0_325] : memref<64x32xf32, #tpu.memory_space<vmem>>, vector<8x32xf32>
    tpu.vector_store %arg7[%1007, %c0_325], %1004 {strides = array<i32>} : memref<64x32xf32, #tpu.memory_space<vmem>>, vector<8x32xf32>,
    %1009 = tpu.concatenate %1002, %1004 in 1 : vector<8x32xf32>, vector<8x32xf32> -> vector<8x64xf32>
    %c7_i32_326 = arith.constant 7 : i32
    %c8_i32_327 = arith.constant 8 : i32
    %1010 = arith.muli %c7_i32_326, %c8_i32_327 : i32
    %1011 = tpu.assume_multiple %1010, 8 : i32
    %c7_i32_328 = arith.constant 7 : i32
    %1012 = arith.subi %c7_i32_328, %c7_i32_326 : i32
    %c8_i32_329 = arith.constant 8 : i32
    %1013 = arith.muli %1012, %c8_i32_329 : i32
    %1014 = tpu.assume_multiple %1013, 8 : i32
    %1015 = arith.index_cast %1011 : i32 to index
    %c0_330 = arith.constant 0 : index
    %1016 = vector.load %arg3[%1015, %c0_330] : memref<64x256xf32, #tpu.memory_space<vmem>>, vector<8x256xf32>
    %1017 = arith.index_cast %1014 : i32 to index
    %c0_331 = arith.constant 0 : index
    %1018 = vector.load %arg3[%1017, %c0_331] : memref<64x256xf32, #tpu.memory_space<vmem>>, vector<8x256xf32>
    %1019 = vector.extract_strided_slice %1016 {offsets = [0, 0], sizes = [8, 128], strides = [1, 1]} : vector<8x256xf32> to vector<8x128xf32>
    %1020 = vector.extract_strided_slice %1018 {offsets = [0, 128], sizes = [8, 128], strides = [1, 1]} : vector<8x256xf32> to vector<8x128xf32>
    %1021 = tpu.concatenate %1019, %1020 in 1 : vector<8x128xf32>, vector<8x128xf32> -> vector<8x256xf32>
    %cst_332 = arith.constant dense<0.000000e+00> : vector<8x256xf32>
    %1022 = tpu.matmul %1009, %546, %cst_332 {dimension_numbers = #tpu.dot_dimension_numbers<[1], [0], [0], [1], [0, 0, 1, 1], [], []>} : vector<8x64xf32>, vector<64x256xf32>, vector<8x256xf32> -> vector<8x256xf32>
    %1023 = arith.addf %1021, %1022 : vector<8x256xf32>
    %1024 = math.tanh %1023 : vector<8x256xf32>
    %1025 = vector.extract_strided_slice %1024 {offsets = [0, 0], sizes = [8, 32], strides = [1, 1]} : vector<8x256xf32> to vector<8x32xf32>
    %cst_333 = arith.constant 5.000000e-01 : f32
    %1026 = vector.broadcast %cst_333 : f32 to vector<8x32xf32>
    %1027 = arith.mulf %1026, %1025 : vector<8x32xf32>
    %cst_334 = arith.constant 5.000000e-01 : f32
    %1028 = vector.broadcast %cst_334 : f32 to vector<8x32xf32>
    %1029 = arith.addf %1027, %1028 : vector<8x32xf32>
    %1030 = vector.extract_strided_slice %1024 {offsets = [0, 32], sizes = [8, 32], strides = [1, 1]} : vector<8x256xf32> to vector<8x32xf32>
    %cst_335 = arith.constant 5.000000e-01 : f32
    %1031 = vector.broadcast %cst_335 : f32 to vector<8x32xf32>
    %1032 = arith.mulf %1031, %1030 : vector<8x32xf32>
    %cst_336 = arith.constant 5.000000e-01 : f32
    %1033 = vector.broadcast %cst_336 : f32 to vector<8x32xf32>
    %1034 = arith.addf %1032, %1033 : vector<8x32xf32>
    %1035 = vector.extract_strided_slice %1024 {offsets = [0, 64], sizes = [8, 32], strides = [1, 1]} : vector<8x256xf32> to vector<8x32xf32>
    %1036 = vector.extract_strided_slice %1024 {offsets = [0, 96], sizes = [8, 32], strides = [1, 1]} : vector<8x256xf32> to vector<8x32xf32>
    %cst_337 = arith.constant 5.000000e-01 : f32
    %1037 = vector.broadcast %cst_337 : f32 to vector<8x32xf32>
    %1038 = arith.mulf %1037, %1036 : vector<8x32xf32>
    %cst_338 = arith.constant 5.000000e-01 : f32
    %1039 = vector.broadcast %cst_338 : f32 to vector<8x32xf32>
    %1040 = arith.addf %1038, %1039 : vector<8x32xf32>
    %1041 = vector.extract_strided_slice %1024 {offsets = [0, 128], sizes = [8, 32], strides = [1, 1]} : vector<8x256xf32> to vector<8x32xf32>
    %cst_339 = arith.constant 5.000000e-01 : f32
    %1042 = vector.broadcast %cst_339 : f32 to vector<8x32xf32>
    %1043 = arith.mulf %1042, %1041 : vector<8x32xf32>
    %cst_340 = arith.constant 5.000000e-01 : f32
    %1044 = vector.broadcast %cst_340 : f32 to vector<8x32xf32>
    %1045 = arith.addf %1043, %1044 : vector<8x32xf32>
    %1046 = vector.extract_strided_slice %1024 {offsets = [0, 160], sizes = [8, 32], strides = [1, 1]} : vector<8x256xf32> to vector<8x32xf32>
    %cst_341 = arith.constant 5.000000e-01 : f32
    %1047 = vector.broadcast %cst_341 : f32 to vector<8x32xf32>
    %1048 = arith.mulf %1047, %1046 : vector<8x32xf32>
    %cst_342 = arith.constant 5.000000e-01 : f32
    %1049 = vector.broadcast %cst_342 : f32 to vector<8x32xf32>
    %1050 = arith.addf %1048, %1049 : vector<8x32xf32>
    %1051 = vector.extract_strided_slice %1024 {offsets = [0, 192], sizes = [8, 32], strides = [1, 1]} : vector<8x256xf32> to vector<8x32xf32>
    %1052 = vector.extract_strided_slice %1024 {offsets = [0, 224], sizes = [8, 32], strides = [1, 1]} : vector<8x256xf32> to vector<8x32xf32>
    %cst_343 = arith.constant 5.000000e-01 : f32
    %1053 = vector.broadcast %cst_343 : f32 to vector<8x32xf32>
    %1054 = arith.mulf %1053, %1052 : vector<8x32xf32>
    %cst_344 = arith.constant 5.000000e-01 : f32
    %1055 = vector.broadcast %cst_344 : f32 to vector<8x32xf32>
    %1056 = arith.addf %1054, %1055 : vector<8x32xf32>
    %1057 = vector.extract_strided_slice %999 {offsets = [0, 0], sizes = [8, 32], strides = [1, 1]} : vector<8x64xf32> to vector<8x32xf32>
    %1058 = arith.mulf %1034, %1057 : vector<8x32xf32>
    %1059 = arith.mulf %1029, %1035 : vector<8x32xf32>
    %1060 = arith.addf %1058, %1059 : vector<8x32xf32>
    %1061 = vector.extract_strided_slice %999 {offsets = [0, 32], sizes = [8, 32], strides = [1, 1]} : vector<8x64xf32> to vector<8x32xf32>
    %1062 = arith.mulf %1050, %1061 : vector<8x32xf32>
    %1063 = arith.mulf %1045, %1051 : vector<8x32xf32>
    %1064 = arith.addf %1062, %1063 : vector<8x32xf32>
    %1065 = tpu.concatenate %1060, %1064 in 1 : vector<8x32xf32>, vector<8x32xf32> -> vector<8x64xf32>
    %1066 = math.tanh %1065 : vector<8x64xf32>
    %1067 = vector.extract_strided_slice %1066 {offsets = [0, 0], sizes = [8, 32], strides = [1, 1]} : vector<8x64xf32> to vector<8x32xf32>
    %1068 = arith.mulf %1040, %1067 : vector<8x32xf32>
    %1069 = vector.extract_strided_slice %1066 {offsets = [0, 32], sizes = [8, 32], strides = [1, 1]} : vector<8x64xf32> to vector<8x32xf32>
    %1070 = arith.mulf %1056, %1069 : vector<8x32xf32>
    %1071 = arith.index_cast %1011 : i32 to index
    %c0_345 = arith.constant 0 : index
    %1072 = vector.load %arg6[%1071, %c0_345] : memref<64x32xf32, #tpu.memory_space<vmem>>, vector<8x32xf32>
    tpu.vector_store %arg6[%1071, %c0_345], %1068 {strides = array<i32>} : memref<64x32xf32, #tpu.memory_space<vmem>>, vector<8x32xf32>,
    %1073 = arith.index_cast %1014 : i32 to index
    %c0_346 = arith.constant 0 : index
    %1074 = vector.load %arg7[%1073, %c0_346] : memref<64x32xf32, #tpu.memory_space<vmem>>, vector<8x32xf32>
    tpu.vector_store %arg7[%1073, %c0_346], %1070 {strides = array<i32>} : memref<64x32xf32, #tpu.memory_space<vmem>>, vector<8x32xf32>,
    %1075 = tpu.concatenate %1068, %1070 in 1 : vector<8x32xf32>, vector<8x32xf32> -> vector<8x64xf32>
    %c8_i32_347 = arith.constant 8 : i32
    %c0_348 = arith.constant 0 : index
    %c0_349 = arith.constant 0 : index
    %1076 = vector.load %arg6[%c0_348, %c0_349] : memref<64x32xf32, #tpu.memory_space<vmem>>, vector<64x32xf32>
    %c0_350 = arith.constant 0 : index
    %c0_351 = arith.constant 0 : index
    %1077 = vector.load %arg7[%c0_350, %c0_351] : memref<64x32xf32, #tpu.memory_space<vmem>>, vector<64x32xf32>
    %1078 = tpu.concatenate %1076, %1077 in 1 : vector<64x32xf32>, vector<64x32xf32> -> vector<64x64xf32>
    %c224 = arith.constant 224 : index
    %c0_352 = arith.constant 0 : index
    %1079 = vector.load %arg1[%c224, %c0_352] : memref<296x256xf32, #tpu.memory_space<vmem>>, vector<64x256xf32>
    %1080 = vector.extract_strided_slice %1079 {offsets = [0, 0], sizes = [64, 128], strides = [1, 1]} : vector<64x256xf32> to vector<64x128xf32>
    %c288 = arith.constant 288 : index
    %c0_353 = arith.constant 0 : index
    %1081 = vector.load %arg1[%c288, %c0_353] : memref<296x256xf32, #tpu.memory_space<vmem>>, vector<1x256xf32>
    %1082 = vector.extract_strided_slice %1081 {offsets = [0, 0], sizes = [1, 128], strides = [1, 1]} : vector<1x256xf32> to vector<1x128xf32>
    %cst_354 = arith.constant dense<0.000000e+00> : vector<64x128xf32>
    %1083 = tpu.matmul %1078, %1080, %cst_354 {dimension_numbers = #tpu.dot_dimension_numbers<[1], [0], [0], [1], [0, 0, 1, 1], [], []>} : vector<64x64xf32>, vector<64x128xf32>, vector<64x128xf32> -> vector<64x128xf32>
    %1084 = vector.broadcast %1082 : vector<1x128xf32> to vector<64x128xf32>
    %1085 = arith.addf %1083, %1084 : vector<64x128xf32>
    %cst_355 = arith.constant dense<0xFF800000> : vector<64xf32>
    %1086 = vector.multi_reduction <maximumf>, %1085, %cst_355 [1] : vector<64x128xf32> to vector<64xf32>
    %1087 = vector.shape_cast %1086 : vector<64xf32> to vector<64x1xf32>
    %1088 = vector.broadcast %1087 : vector<64x1xf32> to vector<64x128xf32>
    %1089 = arith.subf %1085, %1088 : vector<64x128xf32>
    %1090 = math.exp %1089 : vector<64x128xf32>
    %cst_356 = arith.constant dense<0.000000e+00> : vector<64xf32>
    %1091 = vector.multi_reduction <add>, %1090, %cst_356 [1] : vector<64x128xf32> to vector<64xf32>
    %1092 = vector.shape_cast %1091 : vector<64xf32> to vector<64x1xf32>
    %1093 = tpu.reciprocal %1092 {approx = true} : vector<64x1xf32> -> vector<64x1xf32>
    %1094 = vector.broadcast %1093 : vector<64x1xf32> to vector<64x128xf32>
    %1095 = arith.mulf %1090, %1094 : vector<64x128xf32>
    %c0_357 = arith.constant 0 : index
    %c0_358 = arith.constant 0 : index
    %1096 = vector.load %arg2[%c0_357, %c0_358] : memref<64x128xf32, #tpu.memory_space<vmem>>, vector<64x128xf32>
    tpu.vector_store %arg2[%c0_357, %c0_358], %1095 {strides = array<i32>} : memref<64x128xf32, #tpu.memory_space<vmem>>, vector<64x128xf32>,
    return
  }
}

</mosaic_0001>

<bundles_post_ra>
// kernel: birnn_forward.1
= control target key start
LH: loop header
LB: loop body
LE: loop exit
PB: predicated region body
PF: predicated region fallthrough
CT: control target
= control target key end

     0   :  { %7 = vsyncpa [#allocation8], 0  ;;  %s2624_s12 = smov [#allocation7]   ;;  %s2625_s14 = smov 256   ;;  %s3523_s0 = inlined_call_operand.vmem [shape: f32[64,16], index: 0, kind: input, shape index: {}]   ;;  %s3524_s1 = inlined_call_operand.hbm [shape: f32[296,256], index: 1, kind: input, shape index: {}]   ;;  %s3525_s2 = inlined_call_operand.vmem [shape: f32[64,128], index: 2, kind: output, shape index: {}]  }
   0x1   :  { %s14_s11 = sshll.u32 %s3524_s1, 4  ;;  %s16_s13 = sshll.u32 %s2624_s12, 4  ;;  %s15_s11 = int_to_ptr.hbm [resolvable:$true] %s14_s11  ;;  %s17_s13 = int_to_ptr.vmem [resolvable:$true] %s16_s13 }
   0x2   :  { %s2626_s15 = smov 16  }
   0x3   :  { %22 = dma.hbm_to_vmem [thread:$0]  %s15_s11, 9472, %s17_s13, [#allocation8], %s2625_s14, %s2625_s14, %s2626_s15  }
   0x4   :  { %2622 = dma.done.wait [#allocation8], 9472  }
   0x5   :  { %2623 = vsyncadd [#allocation8], 4294957824  ;;  %v37_v0 = vld [vmem:[#allocation7 + $0x10] sm:$0xff]  ;;  %v35_v1 = vld [vmem:[#allocation7] sm:$0xff]  ;;  %vm46_vm0 = vcmask 130048   ;;  %v2627_v18 = vmov 0.0  }
   0x6   :  { %85 = vmatpush.msra.mxu1 %v37_v0  ;;  %2459 = vmatpush.msra.mxu2 %v37_v0  ;;  %v27_v2 = vld [vmem:[%s3523_s0] sm:$0xff]  ;;  %v2655_v3 = vld [vmem:[%s3523_s0 + $0x18] sm:$0xff]  ;;  %v2657_v4 = vld [vmem:[#allocation7 + $0x90] sm:$0xff]  ;;  %s2629_s3 = smov 32   ;;  %s2630_s4 = smov 96   ;;  %vm271_vm1 = vcmask 261120  }
   0x7   :  { %2460 = vmatpush.msra.mxu3 %v37_v0  ;;  %659 = vmatpush.msra.mxu0 %v2657_v4  ;;  %v2663_v5 = vld [vmem:[#allocation7 + $0x80] sm:$0xff]  ;;  %v38_v6 = vld [vmem:[#allocation7 + $0x18] sm:$0xff]  ;;  %v36_v7 = vld [vmem:[#allocation7 + $0x8] sm:$0xff]  ;;  %vm193_vm2 = vcmask 523264  }
   0x8   :  { %86 = vmatpush.msra.mxu1 %v35_v1  ;;  %2461 = vmatpush.msra.mxu2 %v35_v1  ;;  %v2666_v8 = vld [vmem:[#allocation7 + $0x70] sm:$0xff]  ;;  %v2670_v9 = vld [vmem:[#allocation7 + $0x60] sm:$0xff]  ;;  %v28_v10 = vld [vmem:[%s3523_s0 + $0x8] sm:$0xff] }
   0x9   :  { %2391 = vmatmul.msk.f32.vlgmr.msra.gmra.mxu1 %vm46_vm0, %v27_v2  ;;  %2394 = vmatmul.msk.f32.vlgmr.msra.gmra.mxu2 %vm46_vm0, %v2655_v3  ;;  %v2680_v11 = vld [vmem:[%s3523_s0 + $0x20] sm:$0xff]  ;;  %v2682_v12 = vld [vmem:[#allocation7 + $0x50] sm:$0xff]  ;;  %v2705_v17 = vld [vmem:[%s3523_s0 + $0x28] sm:$0xff] }
   0xa   :  { %205 = vmatpush.msrb.mxu2 %v2657_v4  ;;  %2462 = vmatpush.msra.mxu3 %v35_v1  ;;  %v2689_v13 = vld [vmem:[#allocation7 + $0x40] sm:$0xff]  ;;  %v2693_v14 = vld [vmem:[#allocation7 + $0x30] sm:$0xff]  ;;  %v2729_v20 = vld [vmem:[#allocation7 + $0x98] sm:$0xff] }
   0xb   :  { %126 = vmatpush.msrb.mxu1 %v38_v6  ;;  %660 = vmatpush.msra.mxu0 %v2663_v5  ;;  %v2697_v15 = vld [vmem:[#allocation7 + $0x20] sm:$0xff]  ;;  %v29_v16 = vld [vmem:[%s3523_s0 + $0x10] sm:$0xff]  ;;  %v2733_v21 = vld [vmem:[#allocation7 + $0x88] sm:$0xff] }
   0xc   :  { %206 = vmatpush.msrb.mxu2 %v2663_v5  ;;  %v2727_v19 = vld [vmem:[%s3523_s0 + $0x30] sm:$0xff]  ;;  %225 = vmatpush.msrb.mxu3 %v2729_v20  ;;  %v2747_v22 = vld [vmem:[#allocation7 + $0x78] sm:$0xff]  ;;  %v2749_v23 = vld [vmem:[#allocation7 + $0x68] sm:$0xff] }
   0xd   :  { %127 = vmatpush.msrb.mxu1 %v36_v7  ;;  %661 = vmatpush.msra.mxu0 %v2666_v8  ;;  %v34_v24 = vld [vmem:[%s3523_s0 + $0x38] sm:$0xff]  ;;  %v2763_v26 = vld [vmem:[#allocation7 + $0x48] sm:$0xff]  ;;  %s2628_s0 = smov 64  }
   0xe   :  { %207 = vmatpush.msrb.mxu2 %v2666_v8  ;;  %2397 = vmatmul.msk.f32.vlgmr.msra.gmra.mxu3 %vm46_vm0, %v2727_v19  ;;  %v2758_v25 = vld [vmem:[#allocation7 + $0x58] sm:$0xff]  ;;  %v2775_v28 = vld [vmem:[#allocation7 + $0x28] sm:$0xff] }
   0xf   :  { %662 = vmatpush.msra.mxu0 %v2670_v9  ;;  %679 = vmatpush.msra.mxu1 %v2729_v20  ;;  %v2773_v27 = vld [vmem:[#allocation7 + $0x38] sm:$0xff]  ;;  %v40_v29 = vld [vmem:[#allocation7 + $0xa0] ss:$8 sm:$0x3] }
  0x10   :  { %208 = vmatpush.msrb.mxu2 %v2670_v9  ;;  %226 = vmatpush.msrb.mxu3 %v2733_v21  ;;  %v42_v31 = vperm.slane %v40_v29, 0  ;;  %v43_v40 = vperm.slane %v40_v29, 1 }
  0x11   :  { %2392 = vmatmul.msk.f32.gmra.mxu1 %vm46_vm0, %v28_v10  ;;  %2395 = vmatmul.msk.f32.gmra.mxu2 %vm46_vm0, %v2680_v11 }
  0x12   :  { %209 = vmatpush.msrb.mxu2 %v2682_v12  ;;  %663 = vmatpush.msra.mxu0 %v2682_v12 }
  0x13   :  { %680 = vmatpush.msra.mxu1 %v2733_v21  ;;  %227 = vmatpush.msrb.mxu3 %v2747_v22 }
  0x14   :  { %210 = vmatpush.msrb.mxu2 %v2689_v13  ;;  %664 = vmatpush.msra.mxu0 %v2689_v13 }
  0x15   :  { %681 = vmatpush.msra.mxu1 %v2747_v22  ;;  %228 = vmatpush.msrb.mxu3 %v2749_v23 }
  0x16   :  { %211 = vmatpush.msrb.mxu2 %v2693_v14  ;;  %665 = vmatpush.msra.mxu0 %v2693_v14 }
  0x17   :  { %2398 = vmatmul.msk.f32.gmra.mxu3 %vm46_vm0, %v34_v24  ;;  %682 = vmatpush.msra.mxu1 %v2749_v23 }
  0x18   :  { %212 = vmatpush.msrb.mxu2 %v2697_v15  ;;  %666 = vmatpush.msra.mxu0 %v2697_v15 }
  0x19   :  { %2393 = vmatmul.msk.f32.gmra.mxu1 %vm46_vm0, %v29_v16  ;;  %2396 = vmatmul.msk.f32.gmra.mxu2 %vm46_vm0, %v2705_v17 }
  0x1a   :  { %317 = vmatpush.msra.mxu2 %v2657_v4  ;;  %879 = vmatpush.msrb.mxu0 %v2657_v4 }
  0x1b   :  { %229 = vmatpush.msrb.mxu3 %v2758_v25  ;;  %683 = vmatpush.msra.mxu1 %v2758_v25 }
  0x1c   :  { %318 = vmatpush.msra.mxu2 %v2663_v5  ;;  %880 = vmatpush.msrb.mxu0 %v2663_v5 }
  0x1d   :  { %230 = vmatpush.msrb.mxu3 %v2763_v26  ;;  %684 = vmatpush.msra.mxu1 %v2763_v26 }
  0x1e   :  { %319 = vmatpush.msra.mxu2 %v2666_v8  ;;  %881 = vmatpush.msrb.mxu0 %v2666_v8 }
  0x1f   :  { %231 = vmatpush.msrb.mxu3 %v2773_v27  ;;  %685 = vmatpush.msra.mxu1 %v2773_v27 }
  0x20   :  { %320 = vmatpush.msra.mxu2 %v2670_v9  ;;  %882 = vmatpush.msrb.mxu0 %v2670_v9 }
  0x21   :  { %2399 = vmatmul.msk.f32.vlgmr.msrb.gmra.mxu1 %vm46_vm0, %v27_v2  ;;  %213 = vmatmul.f32.vlgmr.msrb.gmra.mxu2 %v2627_v18 }
  0x22   :  { %321 = vmatpush.msra.mxu2 %v2682_v12  ;;  %883 = vmatpush.msrb.mxu0 %v2682_v12 }
  0x23   :  { %232 = vmatpush.msrb.mxu3 %v2775_v28  ;;  %686 = vmatpush.msra.mxu1 %v2775_v28 }
  0x24   :  { %322 = vmatpush.msra.mxu2 %v2689_v13  ;;  %884 = vmatpush.msrb.mxu0 %v2689_v13 }
  0x25   :  { %233 = vmatmul.f32.vlgmr.msrb.gmra.mxu3 %v2627_v18  ;;  %899 = vmatpush.msrb.mxu1 %v2729_v20 }
  0x26   :  { %323 = vmatpush.msra.mxu2 %v2693_v14  ;;  %885 = vmatpush.msrb.mxu0 %v2693_v14 }
  0x27   :  { %337 = vmatpush.msra.mxu3 %v2729_v20  ;;  %900 = vmatpush.msrb.mxu1 %v2733_v21 }
  0x28   :  { %324 = vmatpush.msra.mxu2 %v2697_v15  ;;  %886 = vmatpush.msrb.mxu0 %v2697_v15 }
  0x29   :  { %2400 = vmatmul.msk.f32.gmra.mxu1 %vm46_vm0, %v28_v10  ;;  %338 = vmatpush.msra.mxu3 %v2733_v21 }
  0x2a   :  { %433 = vmatpush.msrb.mxu2 %v2657_v4  ;;  %901 = vmatpush.msrb.mxu1 %v2747_v22 }
  0x2b   :  { %339 = vmatpush.msra.mxu3 %v2747_v22 }
  0x2c   :  { %434 = vmatpush.msrb.mxu2 %v2663_v5  ;;  %902 = vmatpush.msrb.mxu1 %v2749_v23 }
  0x2d   :  { %340 = vmatpush.msra.mxu3 %v2749_v23 }
  0x2e   :  { %435 = vmatpush.msrb.mxu2 %v2666_v8  ;;  %903 = vmatpush.msrb.mxu1 %v2758_v25 }
  0x2f   :  { %341 = vmatpush.msra.mxu3 %v2758_v25 }
  0x30   :  { %436 = vmatpush.msrb.mxu2 %v2670_v9  ;;  %904 = vmatpush.msrb.mxu1 %v2763_v26 }
  0x31   :  { %2401 = vmatmul.msk.f32.gmra.mxu1 %vm46_vm0, %v29_v16  ;;  %342 = vmatpush.msra.mxu3 %v2763_v26 }
  0x32   :  { %437 = vmatpush.msrb.mxu2 %v2682_v12  ;;  %905 = vmatpush.msrb.mxu1 %v2773_v27 }
  0x33   :  { %343 = vmatpush.msra.mxu3 %v2773_v27 }
  0x34   :  { %438 = vmatpush.msrb.mxu2 %v2689_v13  ;;  %906 = vmatpush.msrb.mxu1 %v2775_v28 }
  0x35   :  { %344 = vmatpush.msra.mxu3 %v2775_v28 }
  0x36   :  { %439 = vmatpush.msrb.mxu2 %v2693_v14 }
  0x37   :  { %453 = vmatpush.msrb.mxu3 %v2729_v20 }
  0x38   :  { %440 = vmatpush.msrb.mxu2 %v2697_v15 }
  0x39   :  { %2402 = vmatmul.msk.f32.gmra.mxu1 %vm46_vm0, %v2655_v3  ;;  %454 = vmatpush.msrb.mxu3 %v2733_v21 }
  0x3b   :  { %455 = vmatpush.msrb.mxu3 %v2747_v22 }
  0x3d   :  { %456 = vmatpush.msrb.mxu3 %v2749_v23 }
  0x3f   :  { %457 = vmatpush.msrb.mxu3 %v2758_v25 }
  0x41   :  { %2403 = vmatmul.msk.f32.gmra.mxu1 %vm46_vm0, %v2680_v11  ;;  %458 = vmatpush.msrb.mxu3 %v2763_v26 }
  0x43   :  { %459 = vmatpush.msrb.mxu3 %v2773_v27 }
  0x45   :  { %460 = vmatpush.msrb.mxu3 %v2775_v28 }
  0x49   :  { %2404 = vmatmul.msk.f32.gmra.mxu1 %vm46_vm0, %v2705_v17 }
  0x51   :  { %2405 = vmatmul.msk.f32.gmra.mxu1 %vm46_vm0, %v2727_v19 }
  0x59   :  { %2406 = vmatmul.msk.f32.gmra.mxu1 %vm46_vm0, %v34_v24 }
  0x86   :  { %v88_v30 = vpop.f32.mrf.mxu1 }
  0x87   :  { %v89_v45 = vadd.f32 %v88_v30, %v42_v31 }
  0x8c   :  { %v97_v32 = vpop.f32.mrf.mxu2 }
  0x8d   :  { %v2819_v33 = vadd.f32 %v97_v32, %v42_v31 }
  0x8e   :  { %v91_v34 = vpop.f32.mrf.mxu1 }
  0x8f   :  { %v2821_v35 = vadd.f32 %v91_v34, %v42_v31 }
  0x91   :  { %v106_v50 = vpop.f32.mrf.mxu3 }
  0x92   :  { %v2833_v51 = vadd.f32 %v106_v50, %v42_v31 }
  0x94   :  { %v100_v36 = vpop.f32.mrf.mxu2 }
  0x95   :  { %v2823_v37 = vadd.f32 %v100_v36, %v42_v31 }
  0x96   :  { %v94_v38 = vpop.f32.mrf.mxu1 }
  0x97   :  { %v2825_v39 = vadd.f32 %v94_v38, %v42_v31 }
  0x9a   :  { %v109_v55 = vpop.f32.mrf.mxu3 }
  0x9b   :  { %v2838_v56 = vadd.f32 %v109_v55, %v42_v31 }
  0x9c   :  { %v103_v41 = vpop.f32.mrf.mxu2 }
  0x9d   :  { %v2827_v42 = vadd.f32 %v103_v41, %v42_v31 }
  0x9e   :  { %v129_v43 = vpop.f32.mrf.mxu1 }
  0x9f   :  { %v2829_v44 = vadd.f32 %v129_v43, %v43_v40 }
  0xa4   :  { %v214_v46 = vpop.f32.mrf.mxu2 }
  0xa5   :  { %v237_v47 = vadd.f32 %v214_v46, %v89_v45 }
  0xa6   :  { %v132_v48 = vpop.f32.mrf.mxu1 }
  0xa7   :  { %2470 = vtanh.f32 %v237_v47  ;;  %v2831_v49 = vadd.f32 %v132_v48, %v43_v40 }
  0xa8   :  { %v234_v2 = vpop.f32.mrf.mxu3 }
  0xad   :  { %v2471_v52 = vpop.eup %2470 }
  0xae   :  { %v135_v53 = vpop.f32.mrf.mxu1  ;;  %247 = vrot.lane.b32.xlu0 %v2471_v52, %s2628_s0  ;;  %v241_v10 = vmul.f32 0.5, %v2471_v52 }
  0xaf   :  { %v2836_v54 = vadd.f32 %v135_v53, %v43_v40 }
  0xb0   :  { %v242_v11 = vadd.f32 0.5, %v241_v10 }
  0xb2   :  { %v245_v31 = vmul.f32 0.0, %v242_v11 }
  0xb6   :  { %v138_v57 = vpop.f32.mrf.mxu1 }
  0xb7   :  { %v2840_v58 = vadd.f32 %v138_v57, %v43_v40 }
  0xbe   :  { %v141_v59 = vpop.f32.mrf.mxu1 }
  0xbf   :  { %v2842_v60 = vadd.f32 %v141_v59, %v43_v40 }
  0xc6   :  { %v144_v61 = vpop.f32.mrf.mxu1 }
  0xc7   :  { %v2844_v62 = vadd.f32 %v144_v61, %v43_v40 }
  0xce   :  { %v147_v63 = vpop.f32.mrf.mxu1 }
  0xcf   :  { %v2846_v0 = vadd.f32 %v147_v63, %v43_v40 }
  0xd6   :  { %v150_v1 = vpop.f32.mrf.mxu1 }
  0xd7   :  { %v151_v3 = vadd.f32 %v150_v1, %v43_v40 }
  0xd9   :  { %v238_v6 = vadd.f32 %v234_v2, %v151_v3 }
  0xdb   :  { %2472 = vtanh.f32 %v238_v6 }
  0xe1   :  { %v2473_v7 = vpop.eup %2472 }
  0xe2   :  { %258 = vrot.lane.b32.xlu0 %v2473_v7, %s2628_s0  ;;  %v243_v19 = vmul.f32 0.5, %v2473_v7 }
  0xe4   :  { %v244_v24 = vadd.f32 0.5, %v243_v19 }
  0xe6   :  { %v256_v38 = vmul.f32 0.0, %v244_v24 }
 0x120   :  { %v248_v16 = vpop.permute.xlu0 %247 }
 0x121   :  { %v250_v17 = vmul.f32 %v248_v16, %v242_v11 }
 0x123   :  { %252 = vrot.lane.b32.xlu1 %v250_v17, %s2629_s3 }
 0x154   :  { %v259_v29 = vpop.permute.xlu0 %258 }
 0x155   :  { %v261_v30 = vmul.f32 %v259_v29, %v244_v24 }
 0x157   :  { %263 = vrot.lane.b32.xlu1 %v261_v30, %s2629_s3 }
 0x195   :  { %v253_v32 = vpop.permute.xlu1 %252 }
 0x196   :  { %v255_v34 = vadd.f32 %v253_v32, %v245_v31 }
 0x198   :  { %268 = vrot.lane.b32.xlu2 %v255_v34, %s2630_s4 }
 0x1c9   :  { %v264_v36 = vpop.permute.xlu1 %263 }
 0x1ca   :  { %v266_v40 = vadd.f32 %v264_v36, %v256_v38 }
 0x1f2   :  { %v269_v41 = vpop.permute.xlu2 %268 }
 0x1f3   :  { %v272_v43 = vsel %vm271_vm1, %v269_v41, %v266_v40 }
 0x1f4   :  { %2474 = vtanh.f32 %v272_v43 }
 0x1fa   :  { %v2475_v45 = vpop.eup %2474 }
 0x1fb   :  { %279 = vrot.lane.b32.xlu0 %v2475_v45, %s2628_s0  ;;  %275 = vrot.lane.b32.xlu2 %v2475_v45, %s2630_s4 }
 0x255   :  { %v276_v46 = vpop.permute.xlu2 %275 }
 0x256   :  { %v278_v47 = vmul.f32 %v276_v46, %v242_v11 }
 0x258   :  { %284 = vrot.lane.b32.xlu1 %v278_v47, %s2629_s3 }
 0x260   :  { %358 = vrot.lane.b32.xlu1 %v272_v43, %s2629_s3 }
 0x26d   :  { %v280_v48 = vpop.permute.xlu0 %279 }
 0x26e   :  { %v2857_v50 = vmul.f32 %v280_v48, %v244_v24 }
 0x270   :  { %294 = vrot.lane.b32.xlu2 %v2857_v50, %s2628_s0 }
 0x2ca   :  { %v285_v52 = vpop.permute.xlu1 %284  ;;  %v295_v53 = vpop.permute.xlu2 %294 }
 0x2cb   :  { %287 = vst.msk [vmem:[#allocation3] sm:$0xff] %vm271_vm1, %v285_v52  ;;  %v297_v55 = vsel %vm271_vm1, %v285_v52, %v295_v53 }
 0x2cc   :  { %2407 = vmatmul.msk.f32.vlgmr.msra.gmra.mxu2 %vm193_vm2, %v297_v55  ;;  %2408 = vmatmul.msk.f32.vlgmr.msra.gmra.mxu3 %vm193_vm2, %v297_v55 }
 0x2cd   :  { %549 = vmatpush.msra.mxu2 %v2657_v4  ;;  %569 = vmatpush.msra.mxu3 %v2729_v20 }
 0x2cf   :  { %550 = vmatpush.msra.mxu2 %v2663_v5  ;;  %570 = vmatpush.msra.mxu3 %v2733_v21 }
 0x2d1   :  { %551 = vmatpush.msra.mxu2 %v2666_v8  ;;  %571 = vmatpush.msra.mxu3 %v2747_v22 }
 0x2d3   :  { %552 = vmatpush.msra.mxu2 %v2670_v9  ;;  %572 = vmatpush.msra.mxu3 %v2749_v23 }
 0x2d5   :  { %553 = vmatpush.msra.mxu2 %v2682_v12  ;;  %573 = vmatpush.msra.mxu3 %v2758_v25 }
 0x2d7   :  { %554 = vmatpush.msra.mxu2 %v2689_v13  ;;  %574 = vmatpush.msra.mxu3 %v2763_v26 }
 0x2d9   :  { %555 = vmatpush.msra.mxu2 %v2693_v14  ;;  %575 = vmatpush.msra.mxu3 %v2773_v27 }
 0x2db   :  { %556 = vmatpush.msra.mxu2 %v2697_v15  ;;  %576 = vmatpush.msra.mxu3 %v2775_v28 }
 0x34f   :  { %v326_v57 = vpop.f32.mrf.mxu2  ;;  %v346_v59 = vpop.f32.mrf.mxu3 }
 0x350   :  { %v349_v61 = vadd.f32 %v326_v57, %v2821_v35  ;;  %v350_v63 = vadd.f32 %v346_v59, %v2846_v0  ;;  %v359_v0 = vpop.permute.xlu1 %358 }
 0x352   :  { %2476 = vtanh.f32 %v349_v61 }
 0x353   :  { %2478 = vtanh.f32 %v350_v63 }
 0x358   :  { %v2477_v1 = vpop.eup %2476 }
 0x359   :  { %v2479_v2 = vpop.eup %2478  ;;  %363 = vrot.lane.b32.xlu0 %v2477_v1, %s2628_s0  ;;  %v353_v11 = vmul.f32 0.5, %v2477_v1 }
 0x35a   :  { %374 = vrot.lane.b32.xlu2 %v2479_v2, %s2628_s0  ;;  %v355_v3 = vmul.f32 0.5, %v2479_v2 }
 0x35b   :  { %v354_v16 = vadd.f32 0.5, %v353_v11 }
 0x35c   :  { %v356_v6 = vadd.f32 0.5, %v355_v3 }
 0x35d   :  { %v361_v19 = vmul.f32 %v359_v0, %v354_v16 }
 0x35e   :  { %v372_v31 = vmul.f32 %v356_v6, %v272_v43 }
 0x3b4   :  { %v375_v7 = vpop.permute.xlu2 %374 }
 0x3b5   :  { %v377_v10 = vmul.f32 %v375_v7, %v356_v6 }
 0x3b7   :  { %379 = vrot.lane.b32.xlu1 %v377_v10, %s2629_s3 }
 0x3cb   :  { %v364_v17 = vpop.permute.xlu0 %363 }
 0x3cc   :  { %v366_v35 = vmul.f32 %v364_v17, %v354_v16 }
 0x3ce   :  { %368 = vrot.lane.b32.xlu0 %v366_v35, %s2629_s3 }
 0x429   :  { %v380_v30 = vpop.permute.xlu1 %379 }
 0x42a   :  { %v382_v32 = vadd.f32 %v380_v30, %v372_v31 }
 0x440   :  { %v369_v24 = vpop.permute.xlu0 %368 }
 0x441   :  { %v371_v29 = vadd.f32 %v369_v24, %v361_v19 }
 0x443   :  { %384 = vrot.lane.b32.xlu2 %v371_v29, %s2630_s4 }
 0x49d   :  { %v385_v34 = vpop.permute.xlu2 %384 }
 0x49e   :  { %v387_v36 = vsel %vm271_vm1, %v385_v34, %v382_v32 }
 0x49f   :  { %2480 = vtanh.f32 %v387_v36 }
 0x4a5   :  { %v2481_v38 = vpop.eup %2480 }
 0x4a6   :  { %394 = vrot.lane.b32.xlu1 %v2481_v38, %s2628_s0  ;;  %390 = vrot.lane.b32.xlu0 %v2481_v38, %s2630_s4 }
 0x518   :  { %v395_v40 = vpop.permute.xlu1 %394  ;;  %v391_v41 = vpop.permute.xlu0 %390 }
 0x519   :  { %v2891_v45 = vmul.f32 %v395_v40, %v356_v6  ;;  %v393_v46 = vmul.f32 %v391_v41, %v354_v16 }
 0x51b   :  { %410 = vrot.lane.b32.xlu0 %v2891_v45, %s2628_s0  ;;  %399 = vrot.lane.b32.xlu2 %v393_v46, %s2629_s3 }
 0x523   :  { %474 = vrot.lane.b32.xlu2 %v387_v36, %s2629_s3 }
 0x575   :  { %v400_v43 = vpop.permute.xlu2 %399 }
 0x576   :  { %403 = vst.msk [vmem:[#allocation3 + $0x8] sm:$0xff] %vm271_vm1, %v400_v43 }
 0x58d   :  { %v411_v47 = vpop.permute.xlu0 %410 }
 0x58e   :  { %v413_v48 = vsel %vm271_vm1, %v400_v43, %v411_v47 }
 0x58f   :  { %2409 = vmatmul.msk.f32.vlgmr.msrb.gmra.mxu2 %vm193_vm2, %v413_v48  ;;  %2410 = vmatmul.msk.f32.vlgmr.msrb.gmra.mxu3 %vm193_vm2, %v413_v48 }
 0x590   :  { %769 = vmatpush.msrb.mxu2 %v2657_v4  ;;  %789 = vmatpush.msrb.mxu3 %v2729_v20 }
 0x592   :  { %770 = vmatpush.msrb.mxu2 %v2663_v5  ;;  %790 = vmatpush.msrb.mxu3 %v2733_v21 }
 0x594   :  { %771 = vmatpush.msrb.mxu2 %v2666_v8  ;;  %791 = vmatpush.msrb.mxu3 %v2747_v22 }
 0x596   :  { %772 = vmatpush.msrb.mxu2 %v2670_v9  ;;  %792 = vmatpush.msrb.mxu3 %v2749_v23 }
 0x598   :  { %773 = vmatpush.msrb.mxu2 %v2682_v12  ;;  %793 = vmatpush.msrb.mxu3 %v2758_v25 }
 0x59a   :  { %774 = vmatpush.msrb.mxu2 %v2689_v13  ;;  %794 = vmatpush.msrb.mxu3 %v2763_v26 }
 0x59c   :  { %775 = vmatpush.msrb.mxu2 %v2693_v14  ;;  %795 = vmatpush.msrb.mxu3 %v2773_v27 }
 0x59e   :  { %776 = vmatpush.msrb.mxu2 %v2697_v15  ;;  %796 = vmatpush.msrb.mxu3 %v2775_v28 }
 0x612   :  { %v442_v52 = vpop.f32.mrf.mxu2  ;;  %v462_v53 = vpop.f32.mrf.mxu3 }
 0x613   :  { %v465_v55 = vadd.f32 %v442_v52, %v2825_v39  ;;  %v466_v57 = vadd.f32 %v462_v53, %v2844_v62  ;;  %v475_v39 = vpop.permute.xlu2 %474 }
 0x615   :  { %2482 = vtanh.f32 %v465_v55 }
 0x616   :  { %2484 = vtanh.f32 %v466_v57 }
 0x61b   :  { %v2483_v59 = vpop.eup %2482 }
 0x61c   :  { %v2485_v61 = vpop.eup %2484  ;;  %479 = vrot.lane.b32.xlu1 %v2483_v59, %s2628_s0  ;;  %v469_v63 = vmul.f32 0.5, %v2483_v59 }
 0x61d   :  { %490 = vrot.lane.b32.xlu0 %v2485_v61, %s2628_s0  ;;  %v471_v1 = vmul.f32 0.5, %v2485_v61 }
 0x61e   :  { %v470_v2 = vadd.f32 0.5, %v469_v63 }
 0x61f   :  { %v472_v3 = vadd.f32 0.5, %v471_v1 }
 0x620   :  { %v477_v62 = vmul.f32 %v475_v39, %v470_v2 }
 0x621   :  { %v488_v0 = vmul.f32 %v472_v3, %v387_v36 }
 0x68e   :  { %v480_v6 = vpop.permute.xlu1 %479 }
 0x68f   :  { %v491_v7 = vpop.permute.xlu0 %490  ;;  %v482_v10 = vmul.f32 %v480_v6, %v470_v2 }
 0x690   :  { %v493_v11 = vmul.f32 %v491_v7, %v472_v3 }
 0x691   :  { %484 = vrot.lane.b32.xlu1 %v482_v10, %s2629_s3 }
 0x692   :  { %495 = vrot.lane.b32.xlu2 %v493_v11, %s2629_s3 }
 0x6ec   :  { %v496_v35 = vpop.permute.xlu2 %495 }
 0x6ed   :  { %v498_v19 = vadd.f32 %v496_v35, %v488_v0 }
 0x703   :  { %v485_v16 = vpop.permute.xlu1 %484 }
 0x704   :  { %v487_v17 = vadd.f32 %v485_v16, %v477_v62 }
 0x706   :  { %500 = vrot.lane.b32.xlu0 %v487_v17, %s2630_s4 }
 0x778   :  { %v501_v24 = vpop.permute.xlu0 %500 }
 0x779   :  { %v503_v29 = vsel %vm271_vm1, %v501_v24, %v498_v19 }
 0x77a   :  { %2486 = vtanh.f32 %v503_v29 }
 0x780   :  { %v2487_v30 = vpop.eup %2486 }
 0x781   :  { %510 = vrot.lane.b32.xlu2 %v2487_v30, %s2628_s0  ;;  %506 = vrot.lane.b32.xlu1 %v2487_v30, %s2630_s4 }
 0x7db   :  { %v511_v31 = vpop.permute.xlu2 %510 }
 0x7dc   :  { %v2927_v32 = vmul.f32 %v511_v31, %v472_v3 }
 0x7de   :  { %526 = vrot.lane.b32.xlu1 %v2927_v32, %s2628_s0 }
 0x7f3   :  { %v507_v34 = vpop.permute.xlu1 %506 }
 0x7f4   :  { %v509_v38 = vmul.f32 %v507_v34, %v470_v2 }
 0x7f6   :  { %515 = vrot.lane.b32.xlu0 %v509_v38, %s2629_s3 }
 0x7fe   :  { %590 = vrot.lane.b32.xlu0 %v503_v29, %s2629_s3 }
 0x850   :  { %v527_v36 = vpop.permute.xlu1 %526 }
 0x868   :  { %v516_v40 = vpop.permute.xlu0 %515 }
 0x869   :  { %519 = vst.msk [vmem:[#allocation3 + $0x10] sm:$0xff] %vm271_vm1, %v516_v40  ;;  %v529_v41 = vsel %vm271_vm1, %v516_v40, %v527_v36 }
 0x86a   :  { %2411 = vmatmul.msk.f32.vlgmr.msra.gmra.mxu2 %vm193_vm2, %v529_v41  ;;  %2412 = vmatmul.msk.f32.vlgmr.msra.gmra.mxu3 %vm193_vm2, %v529_v41 }
 0x86b   :  { %989 = vmatpush.msra.mxu2 %v2657_v4  ;;  %1009 = vmatpush.msra.mxu3 %v2729_v20 }
 0x86d   :  { %990 = vmatpush.msra.mxu2 %v2663_v5  ;;  %1010 = vmatpush.msra.mxu3 %v2733_v21 }
 0x86f   :  { %991 = vmatpush.msra.mxu2 %v2666_v8  ;;  %1011 = vmatpush.msra.mxu3 %v2747_v22 }
 0x871   :  { %992 = vmatpush.msra.mxu2 %v2670_v9  ;;  %1012 = vmatpush.msra.mxu3 %v2749_v23 }
 0x873   :  { %993 = vmatpush.msra.mxu2 %v2682_v12  ;;  %1013 = vmatpush.msra.mxu3 %v2758_v25 }
 0x875   :  { %994 = vmatpush.msra.mxu2 %v2689_v13  ;;  %1014 = vmatpush.msra.mxu3 %v2763_v26 }
 0x877   :  { %995 = vmatpush.msra.mxu2 %v2693_v14  ;;  %1015 = vmatpush.msra.mxu3 %v2773_v27  ;;  %v591_v27 = vpop.permute.xlu0 %590 }
 0x879   :  { %996 = vmatpush.msra.mxu2 %v2697_v15  ;;  %1016 = vmatpush.msra.mxu3 %v2775_v28 }
 0x8ed   :  { %v558_v4 = vpop.f32.mrf.mxu2  ;;  %v578_v5 = vpop.f32.mrf.mxu3 }
 0x8ee   :  { %v581_v8 = vadd.f32 %v558_v4, %v2819_v33  ;;  %v582_v9 = vadd.f32 %v578_v5, %v2842_v60 }
 0x8f0   :  { %2488 = vtanh.f32 %v581_v8 }
 0x8f1   :  { %2490 = vtanh.f32 %v582_v9 }
 0x8f6   :  { %v2489_v12 = vpop.eup %2488 }
 0x8f7   :  { %v2491_v13 = vpop.eup %2490  ;;  %595 = vrot.lane.b32.xlu2 %v2489_v12, %s2628_s0  ;;  %v585_v14 = vmul.f32 0.5, %v2489_v12 }
 0x8f8   :  { %606 = vrot.lane.b32.xlu1 %v2491_v13, %s2628_s0  ;;  %v587_v22 = vmul.f32 0.5, %v2491_v13 }
 0x8f9   :  { %v586_v20 = vadd.f32 0.5, %v585_v14 }
 0x8fa   :  { %v588_v23 = vadd.f32 0.5, %v587_v22 }
 0x8fb   :  { %v593_v28 = vmul.f32 %v591_v27, %v586_v20 }
 0x8fc   :  { %v604_v43 = vmul.f32 %v588_v23, %v503_v29 }
 0x951   :  { %v596_v21 = vpop.permute.xlu2 %595 }
 0x952   :  { %v598_v15 = vmul.f32 %v596_v21, %v586_v20 }
 0x954   :  { %600 = vrot.lane.b32.xlu2 %v598_v15, %s2629_s3 }
 0x96a   :  { %v607_v25 = vpop.permute.xlu1 %606 }
 0x96b   :  { %v609_v26 = vmul.f32 %v607_v25, %v588_v23 }
 0x96d   :  { %611 = vrot.lane.b32.xlu0 %v609_v26, %s2629_s3 }
 0x9ae   :  { %v601_v33 = vpop.permute.xlu2 %600 }
 0x9af   :  { %v603_v60 = vadd.f32 %v601_v33, %v593_v28 }
 0x9b1   :  { %616 = vrot.lane.b32.xlu1 %v603_v60, %s2630_s4 }
 0x9df   :  { %v612_v46 = vpop.permute.xlu0 %611 }
 0x9e0   :  { %v614_v47 = vadd.f32 %v612_v46, %v604_v43 }
 0xa23   :  { %v617_v48 = vpop.permute.xlu1 %616 }
 0xa24   :  { %v619_v52 = vsel %vm271_vm1, %v617_v48, %v614_v47 }
 0xa25   :  { %2492 = vtanh.f32 %v619_v52 }
 0xa2b   :  { %v2493_v53 = vpop.eup %2492 }
 0xa2c   :  { %626 = vrot.lane.b32.xlu0 %v2493_v53, %s2628_s0  ;;  %622 = vrot.lane.b32.xlu2 %v2493_v53, %s2630_s4 }
 0xa86   :  { %v623_v55 = vpop.permute.xlu2 %622 }
 0xa87   :  { %v625_v57 = vmul.f32 %v623_v55, %v586_v20 }
 0xa89   :  { %631 = vrot.lane.b32.xlu1 %v625_v57, %s2629_s3 }
 0xa91   :  { %700 = vrot.lane.b32.xlu1 %v619_v52, %s2629_s3 }
 0xa9e   :  { %v627_v59 = vpop.permute.xlu0 %626 }
 0xa9f   :  { %v2965_v61 = vmul.f32 %v627_v59, %v588_v23 }
 0xaa1   :  { %642 = vrot.lane.b32.xlu2 %v2965_v61, %s2628_s0 }
 0xafb   :  { %v632_v63 = vpop.permute.xlu1 %631  ;;  %v643_v1 = vpop.permute.xlu2 %642 }
 0xafc   :  { %635 = vst.msk [vmem:[#allocation3 + $0x18] sm:$0xff] %vm271_vm1, %v632_v63  ;;  %v645_v2 = vsel %vm271_vm1, %v632_v63, %v643_v1 }
 0xafd   :  { %2413 = vmatmul.msk.f32.vlgmr.msra.gmra.mxu0 %vm193_vm2, %v645_v2  ;;  %2414 = vmatmul.msk.f32.vlgmr.msra.gmra.mxu1 %vm193_vm2, %v645_v2 }
 0xb7a   :  { %v668_v3 = vpop.f32.mrf.mxu0  ;;  %v688_v6 = vpop.f32.mrf.mxu1 }
 0xb7b   :  { %v691_v7 = vadd.f32 %v668_v3, %v2823_v37  ;;  %v692_v10 = vadd.f32 %v688_v6, %v2840_v58  ;;  %v701_v58 = vpop.permute.xlu1 %700 }
 0xb7d   :  { %2494 = vtanh.f32 %v691_v7 }
 0xb7e   :  { %2496 = vtanh.f32 %v692_v10 }
 0xb83   :  { %v2495_v11 = vpop.eup %2494 }
 0xb84   :  { %v2497_v39 = vpop.eup %2496  ;;  %705 = vrot.lane.b32.xlu0 %v2495_v11, %s2628_s0  ;;  %v695_v0 = vmul.f32 0.5, %v2495_v11 }
 0xb85   :  { %716 = vrot.lane.b32.xlu2 %v2497_v39, %s2628_s0  ;;  %v697_v62 = vmul.f32 0.5, %v2497_v39 }
 0xb86   :  { %v696_v19 = vadd.f32 0.5, %v695_v0 }
 0xb87   :  { %v698_v16 = vadd.f32 0.5, %v697_v62 }
 0xb88   :  { %v703_v29 = vmul.f32 %v701_v58, %v696_v19 }
 0xb89   :  { %v714_v38 = vmul.f32 %v698_v16, %v619_v52 }
 0xbdf   :  { %v717_v17 = vpop.permute.xlu2 %716 }
 0xbe0   :  { %v719_v35 = vmul.f32 %v717_v17, %v698_v16 }
 0xbe2   :  { %721 = vrot.lane.b32.xlu1 %v719_v35, %s2629_s3 }
 0xbf6   :  { %v706_v24 = vpop.permute.xlu0 %705 }
 0xbf7   :  { %v708_v37 = vmul.f32 %v706_v24, %v696_v19 }
 0xbf9   :  { %710 = vrot.lane.b32.xlu0 %v708_v37, %s2629_s3 }
 0xc54   :  { %v722_v34 = vpop.permute.xlu1 %721 }
 0xc55   :  { %v724_v36 = vadd.f32 %v722_v34, %v714_v38 }
 0xc6b   :  { %v711_v30 = vpop.permute.xlu0 %710 }
 0xc6c   :  { %v713_v31 = vadd.f32 %v711_v30, %v703_v29 }
 0xc6e   :  { %726 = vrot.lane.b32.xlu2 %v713_v31, %s2630_s4 }
 0xcc8   :  { %v727_v40 = vpop.permute.xlu2 %726 }
 0xcc9   :  { %v729_v41 = vsel %vm271_vm1, %v727_v40, %v724_v36 }
 0xcca   :  { %2498 = vtanh.f32 %v729_v41 }
 0xcd0   :  { %v2499_v4 = vpop.eup %2498 }
 0xcd1   :  { %736 = vrot.lane.b32.xlu1 %v2499_v4, %s2628_s0  ;;  %732 = vrot.lane.b32.xlu0 %v2499_v4, %s2630_s4 }
 0xd43   :  { %v737_v5 = vpop.permute.xlu1 %736  ;;  %v733_v8 = vpop.permute.xlu0 %732 }
 0xd44   :  { %v2983_v9 = vmul.f32 %v737_v5, %v698_v16  ;;  %v735_v12 = vmul.f32 %v733_v8, %v696_v19 }
 0xd46   :  { %752 = vrot.lane.b32.xlu0 %v2983_v9, %s2628_s0  ;;  %741 = vrot.lane.b32.xlu2 %v735_v12, %s2629_s3 }
 0xd4e   :  { %810 = vrot.lane.b32.xlu2 %v729_v41, %s2629_s3 }
 0xda0   :  { %v742_v13 = vpop.permute.xlu2 %741 }
 0xda1   :  { %745 = vst.msk [vmem:[#allocation3 + $0x20] sm:$0xff] %vm271_vm1, %v742_v13 }
 0xdb8   :  { %v753_v14 = vpop.permute.xlu0 %752 }
 0xdb9   :  { %v755_v20 = vsel %vm271_vm1, %v742_v13, %v753_v14 }
 0xdba   :  { %2415 = vmatmul.msk.f32.vlgmr.msrb.gmra.mxu2 %vm193_vm2, %v755_v20  ;;  %2416 = vmatmul.msk.f32.vlgmr.msrb.gmra.mxu3 %vm193_vm2, %v755_v20 }
 0xe3d   :  { %v778_v21 = vpop.f32.mrf.mxu2  ;;  %v798_v15 = vpop.f32.mrf.mxu3 }
 0xe3e   :  { %v801_v22 = vadd.f32 %v778_v21, %v2827_v42  ;;  %v802_v23 = vadd.f32 %v798_v15, %v2836_v54  ;;  %v811_v42 = vpop.permute.xlu2 %810 }
 0xe40   :  { %2500 = vtanh.f32 %v801_v22 }
 0xe41   :  { %2502 = vtanh.f32 %v802_v23 }
 0xe46   :  { %v2501_v25 = vpop.eup %2500 }
 0xe47   :  { %v2503_v26 = vpop.eup %2502  ;;  %815 = vrot.lane.b32.xlu1 %v2501_v25, %s2628_s0  ;;  %v805_v27 = vmul.f32 0.5, %v2501_v25 }
 0xe48   :  { %826 = vrot.lane.b32.xlu0 %v2503_v26, %s2628_s0  ;;  %v807_v28 = vmul.f32 0.5, %v2503_v26 }
 0xe49   :  { %v806_v33 = vadd.f32 0.5, %v805_v27 }
 0xe4a   :  { %v808_v60 = vadd.f32 0.5, %v807_v28 }
 0xe4b   :  { %v813_v54 = vmul.f32 %v811_v42, %v806_v33 }
 0xe4c   :  { %v824_v57 = vmul.f32 %v808_v60, %v729_v41 }
 0xeb9   :  { %v816_v46 = vpop.permute.xlu1 %815 }
 0xeba   :  { %v827_v43 = vpop.permute.xlu0 %826  ;;  %v818_v47 = vmul.f32 %v816_v46, %v806_v33 }
 0xebb   :  { %v829_v48 = vmul.f32 %v827_v43, %v808_v60 }
 0xebc   :  { %820 = vrot.lane.b32.xlu1 %v818_v47, %s2629_s3 }
 0xebd   :  { %831 = vrot.lane.b32.xlu2 %v829_v48, %s2629_s3 }
 0xf17   :  { %v832_v55 = vpop.permute.xlu2 %831 }
 0xf18   :  { %v834_v59 = vadd.f32 %v832_v55, %v824_v57 }
 0xf2e   :  { %v821_v52 = vpop.permute.xlu1 %820 }
 0xf2f   :  { %v823_v53 = vadd.f32 %v821_v52, %v813_v54 }
 0xf31   :  { %836 = vrot.lane.b32.xlu0 %v823_v53, %s2630_s4 }
 0xfa3   :  { %v837_v63 = vpop.permute.xlu0 %836 }
 0xfa4   :  { %v839_v1 = vsel %vm271_vm1, %v837_v63, %v834_v59 }
 0xfa5   :  { %2504 = vtanh.f32 %v839_v1 }
 0xfab   :  { %v2505_v2 = vpop.eup %2504 }
 0xfac   :  { %846 = vrot.lane.b32.xlu2 %v2505_v2, %s2628_s0  ;;  %842 = vrot.lane.b32.xlu1 %v2505_v2, %s2630_s4 }
0x1006   :  { %v847_v3 = vpop.permute.xlu2 %846 }
0x1007   :  { %v3003_v6 = vmul.f32 %v847_v3, %v808_v60 }
0x1009   :  { %862 = vrot.lane.b32.xlu1 %v3003_v6, %s2628_s0 }
0x101e   :  { %v843_v7 = vpop.permute.xlu1 %842 }
0x101f   :  { %v845_v10 = vmul.f32 %v843_v7, %v806_v33 }
0x1021   :  { %851 = vrot.lane.b32.xlu0 %v845_v10, %s2629_s3 }
0x1029   :  { %920 = vrot.lane.b32.xlu0 %v839_v1, %s2629_s3 }
0x107b   :  { %v863_v11 = vpop.permute.xlu1 %862 }
0x1093   :  { %v852_v39 = vpop.permute.xlu0 %851 }
0x1094   :  { %855 = vst.msk [vmem:[#allocation3 + $0x28] sm:$0xff] %vm271_vm1, %v852_v39  ;;  %v865_v62 = vsel %vm271_vm1, %v852_v39, %v863_v11 }
0x1095   :  { %2417 = vmatmul.msk.f32.vlgmr.msrb.gmra.mxu0 %vm193_vm2, %v865_v62  ;;  %2418 = vmatmul.msk.f32.vlgmr.msrb.gmra.mxu1 %vm193_vm2, %v865_v62 }
0x1112   :  { %v888_v16 = vpop.f32.mrf.mxu0  ;;  %v908_v17 = vpop.f32.mrf.mxu1 }
0x1113   :  { %v911_v35 = vadd.f32 %v888_v16, %v2833_v51  ;;  %v912_v0 = vadd.f32 %v908_v17, %v2831_v49  ;;  %v921_v49 = vpop.permute.xlu0 %920 }
0x1115   :  { %2506 = vtanh.f32 %v911_v35 }
0x1116   :  { %2508 = vtanh.f32 %v912_v0 }
0x111b   :  { %v2507_v19 = vpop.eup %2506 }
0x111c   :  { %v2509_v24 = vpop.eup %2508  ;;  %925 = vrot.lane.b32.xlu2 %v2507_v19, %s2628_s0  ;;  %v915_v37 = vmul.f32 0.5, %v2507_v19 }
0x111d   :  { %936 = vrot.lane.b32.xlu1 %v2509_v24, %s2628_s0  ;;  %v917_v31 = vmul.f32 0.5, %v2509_v24 }
0x111e   :  { %v916_v58 = vadd.f32 0.5, %v915_v37 }
0x111f   :  { %v918_v34 = vadd.f32 0.5, %v917_v31  ;;  %v1149_v31 = vld [vmem:[#allocation7 + $0x110] sm:$0xff] }
0x1120   :  { %v923_v36 = vmul.f32 %v921_v49, %v916_v58  ;;  %v1148_v49 = vld [vmem:[#allocation7 + $0x108] sm:$0xff] }
0x1121   :  { %v934_v5 = vmul.f32 %v918_v34, %v839_v1 }
0x1176   :  { %v926_v29 = vpop.permute.xlu2 %925 }
0x1177   :  { %v928_v30 = vmul.f32 %v926_v29, %v916_v58  ;;  %v3072_v29 = vld [vmem:[#allocation7 + $0x190] sm:$0xff] }
0x1179   :  { %930 = vrot.lane.b32.xlu2 %v928_v30, %s2629_s3  ;;  %v1152_v30 = vld [vmem:[#allocation7 + $0x128] sm:$0xff] }
0x117a   :  { %1233 = vmatpush.msra.mxu1 %v1152_v30 }
0x118f   :  { %v937_v38 = vpop.permute.xlu1 %936 }
0x1190   :  { %v939_v51 = vmul.f32 %v937_v38, %v918_v34  ;;  %v1150_v38 = vld [vmem:[#allocation7 + $0x118] sm:$0xff] }
0x1191   :  { %1234 = vmatpush.msra.mxu1 %v1150_v38 }
0x1192   :  { %941 = vrot.lane.b32.xlu0 %v939_v51, %s2629_s3  ;;  %v1147_v51 = vld [vmem:[#allocation7 + $0x100] sm:$0xff] }
0x1193   :  { %1235 = vmatpush.msra.mxu1 %v1148_v49 }
0x11d3   :  { %v931_v40 = vpop.permute.xlu2 %930 }
0x11d4   :  { %v933_v41 = vadd.f32 %v931_v40, %v923_v36  ;;  %v3078_v36 = vld [vmem:[#allocation7 + $0x170] sm:$0xff] }
0x11d5   :  { %v1145_v40 = vld [vmem:[#allocation7 + $0xf0] sm:$0xff] }
0x11d6   :  { %946 = vrot.lane.b32.xlu1 %v933_v41, %s2630_s4  ;;  %v1146_v41 = vld [vmem:[#allocation7 + $0xf8] sm:$0xff] }
0x11d7   :  { %1236 = vmatpush.msra.mxu1 %v1146_v41 }
0x1204   :  { %v942_v4 = vpop.permute.xlu0 %941 }
0x1205   :  { %v944_v8 = vadd.f32 %v942_v4, %v934_v5  ;;  %v3081_v4 = vld [vmem:[#allocation7 + $0x160] sm:$0xff] }
0x1206   :  { %v1143_v5 = vld [vmem:[#allocation7 + $0xe0] sm:$0xff] }
0x1248   :  { %v947_v12 = vpop.permute.xlu1 %946 }
0x1249   :  { %v949_v13 = vsel %vm271_vm1, %v947_v12, %v944_v8 }
0x124a   :  { %2510 = vtanh.f32 %v949_v13 }
0x1250   :  { %v2511_v14 = vpop.eup %2510 }
0x1251   :  { %956 = vrot.lane.b32.xlu0 %v2511_v14, %s2628_s0  ;;  %952 = vrot.lane.b32.xlu2 %v2511_v14, %s2630_s4  ;;  %v3086_v14 = vld [vmem:[#allocation7 + $0x150] sm:$0xff] }
0x12ab   :  { %v953_v20 = vpop.permute.xlu2 %952 }
0x12ac   :  { %v955_v21 = vmul.f32 %v953_v20, %v916_v58  ;;  %v3070_v58 = vld [vmem:[#allocation7 + $0x1a0] sm:$0xff]  ;;  %v1141_v20 = vld [vmem:[#allocation7 + $0xd0] sm:$0xff] }
0x12ad   :  { %1308 = vmatpush.msrb.mxu2 %v3070_v58 }
0x12ae   :  { %961 = vrot.lane.b32.xlu1 %v955_v21, %s2629_s3  ;;  %v1142_v21 = vld [vmem:[#allocation7 + $0xd8] sm:$0xff] }
0x12af   :  { %1309 = vmatpush.msrb.mxu2 %v3072_v29 }
0x12b6   :  { %1030 = vrot.lane.b32.xlu1 %v949_v13, %s2629_s3 }
0x12c3   :  { %v957_v15 = vpop.permute.xlu0 %956 }
0x12c4   :  { %v959_v22 = vmul.f32 %v957_v15, %v918_v34  ;;  %v3075_v34 = vld [vmem:[#allocation7 + $0x180] sm:$0xff] }
0x12c5   :  { %1310 = vmatpush.msrb.mxu2 %v3075_v34  ;;  %v3089_v15 = vld [vmem:[#allocation7 + $0x140] sm:$0xff] }
0x12c6   :  { %972 = vrot.lane.b32.xlu2 %v959_v22, %s2628_s0 }
0x12c7   :  { %1311 = vmatpush.msrb.mxu2 %v3078_v36 }
0x12c9   :  { %1312 = vmatpush.msrb.mxu2 %v3081_v4 }
0x12cb   :  { %1313 = vmatpush.msrb.mxu2 %v3086_v14 }
0x12cd   :  { %1314 = vmatpush.msrb.mxu2 %v3089_v15 }
0x1320   :  { %v962_v23 = vpop.permute.xlu1 %961  ;;  %v973_v25 = vpop.permute.xlu2 %972 }
0x1321   :  { %965 = vst.msk [vmem:[#allocation3 + $0x30] sm:$0xff] %vm271_vm1, %v962_v23  ;;  %v975_v26 = vsel %vm271_vm1, %v962_v23, %v973_v25  ;;  %v1140_v23 = vld [vmem:[#allocation7 + $0xc8] sm:$0xff]  ;;  %v3092_v25 = vld [vmem:[#allocation7 + $0x130] sm:$0xff] }
0x1322   :  { %2419 = vmatmul.msk.f32.vlgmr.msra.gmra.mxu2 %vm193_vm2, %v975_v26  ;;  %2420 = vmatmul.msk.f32.vlgmr.msra.gmra.mxu3 %vm193_vm2, %v975_v26 }
0x1323   :  { %1315 = vmatpush.msrb.mxu2 %v3092_v25 }
0x1325   :  { %1413 = vmatpush.msra.mxu2 %v3070_v58 }
0x1327   :  { %1414 = vmatpush.msra.mxu2 %v3072_v29 }
0x1328   :  { %v1031_v55 = vpop.permute.xlu1 %1030 }
0x1329   :  { %1415 = vmatpush.msra.mxu2 %v3075_v34 }
0x132a   :  { %1316 = vmatmul.f32.vlgmr.msrb.gmra.mxu2 %v2627_v18 }
0x132b   :  { %1416 = vmatpush.msra.mxu2 %v3078_v36 }
0x132d   :  { %1417 = vmatpush.msra.mxu2 %v3081_v4 }
0x132f   :  { %1418 = vmatpush.msra.mxu2 %v3086_v14 }
0x1331   :  { %1419 = vmatpush.msra.mxu2 %v3089_v15 }
0x1333   :  { %1420 = vmatpush.msra.mxu2 %v3092_v25 }
0x1335   :  { %1523 = vmatpush.msrb.mxu2 %v3070_v58 }
0x1337   :  { %1524 = vmatpush.msrb.mxu2 %v3072_v29 }
0x1339   :  { %1525 = vmatpush.msrb.mxu2 %v3075_v34 }
0x133b   :  { %1526 = vmatpush.msrb.mxu2 %v3078_v36 }
0x133d   :  { %1527 = vmatpush.msrb.mxu2 %v3081_v4 }
0x133f   :  { %1528 = vmatpush.msrb.mxu2 %v3086_v14 }
0x1341   :  { %1529 = vmatpush.msrb.mxu2 %v3089_v15 }
0x1343   :  { %1530 = vmatpush.msrb.mxu2 %v3092_v25 }
0x13a5   :  { %v998_v27 = vpop.f32.mrf.mxu2  ;;  %v1018_v28 = vpop.f32.mrf.mxu3 }
0x13a6   :  { %v1021_v33 = vadd.f32 %v998_v27, %v2838_v56  ;;  %v1022_v60 = vadd.f32 %v1018_v28, %v2829_v44 }
0x13a8   :  { %2512 = vtanh.f32 %v1021_v33 }
0x13a9   :  { %2514 = vtanh.f32 %v1022_v60  ;;  %v1137_v60 = vld [vmem:[#allocation7 + $0xb0] sm:$0xff] }
0x13ae   :  { %v2513_v46 = vpop.eup %2512 }
0x13af   :  { %v2515_v43 = vpop.eup %2514  ;;  %1035 = vrot.lane.b32.xlu0 %v2513_v46, %s2628_s0  ;;  %v1025_v52 = vmul.f32 0.5, %v2513_v46  ;;  %v1138_v46 = vld [vmem:[#allocation7 + $0xb8] sm:$0xff] }
0x13b0   :  { %1046 = vrot.lane.b32.xlu2 %v2515_v43, %s2628_s0  ;;  %v1027_v47 = vmul.f32 0.5, %v2515_v43  ;;  %v1081_v43 = vld [vmem:[#allocation3] sm:$0xff] }
0x13b1   :  { %v3035_v53 = vadd.f32 0.5, %v1025_v52 }
0x13b2   :  { %v1028_v48 = vadd.f32 0.5, %v1027_v47 }
0x13b3   :  { %v1033_v57 = vmul.f32 %v1031_v55, %v3035_v53  ;;  %v3144_v55 = vld [vmem:[#allocation7 + $0x178] sm:$0xff] }
0x13b4   :  { %v1044_v2 = vmul.f32 %v1028_v48, %v949_v13  ;;  %v1144_v13 = vld [vmem:[#allocation7 + $0xe8] sm:$0xff] }
0x13b5   :  { %1237 = vmatpush.msra.mxu1 %v1144_v13 }
0x13b7   :  { %1238 = vmatpush.msra.mxu1 %v1142_v21 }
0x13b9   :  { %1239 = vmatpush.msra.mxu1 %v1140_v23 }
0x13bb   :  { %1240 = vmatpush.msra.mxu1 %v1138_v46 }
0x140a   :  { %v1047_v42 = vpop.permute.xlu2 %1046 }
0x140b   :  { %v1049_v54 = vmul.f32 %v1047_v42, %v1028_v48  ;;  %v3128_v42 = vld [vmem:[#allocation7 + $0x1a8] sm:$0xff] }
0x140c   :  { %1328 = vmatpush.msrb.mxu3 %v3128_v42  ;;  %1763 = vmatpush.msrb.mxu1 %v3128_v42 }
0x140d   :  { %1051 = vrot.lane.b32.xlu1 %v1049_v54, %s2629_s3  ;;  %v3130_v54 = vld [vmem:[#allocation7 + $0x198] sm:$0xff] }
0x140e   :  { %1329 = vmatpush.msrb.mxu3 %v3130_v54  ;;  %1764 = vmatpush.msrb.mxu1 %v3130_v54 }
0x1421   :  { %v1036_v56 = vpop.permute.xlu0 %1035 }
0x1422   :  { %v1038_v44 = vmul.f32 %v1036_v56, %v3035_v53 }
0x1424   :  { %1040 = vrot.lane.b32.xlu0 %v1038_v44, %s2629_s3  ;;  %v3142_v44 = vld [vmem:[#allocation7 + $0x188] sm:$0xff] }
0x1425   :  { %1330 = vmatpush.msrb.mxu3 %v3142_v44  ;;  %1765 = vmatpush.msrb.mxu1 %v3142_v44 }
0x1427   :  { %1331 = vmatpush.msrb.mxu3 %v3144_v55  ;;  %1766 = vmatpush.msrb.mxu1 %v3144_v55 }
0x147f   :  { %v1052_v1 = vpop.permute.xlu1 %1051 }
0x1480   :  { %v1054_v3 = vadd.f32 %v1052_v1, %v1044_v2  ;;  %v1083_v2 = vld [vmem:[#allocation3 + $0x10] sm:$0xff] }
0x1496   :  { %v1041_v59 = vpop.permute.xlu0 %1040 }
0x1497   :  { %v1043_v63 = vadd.f32 %v1041_v59, %v1033_v57  ;;  %v3148_v57 = vld [vmem:[#allocation7 + $0x168] sm:$0xff] }
0x1498   :  { %1332 = vmatpush.msrb.mxu3 %v3148_v57  ;;  %1767 = vmatpush.msrb.mxu1 %v3148_v57 }
0x1499   :  { %1056 = vrot.lane.b32.xlu2 %v1043_v63, %s2630_s4  ;;  %v3153_v63 = vld [vmem:[#allocation7 + $0x158] sm:$0xff] }
0x149a   :  { %1333 = vmatpush.msrb.mxu3 %v3153_v63  ;;  %1768 = vmatpush.msrb.mxu1 %v3153_v63 }
0x14a1   :  { %967 = vrot.lane.b32.xlu2 %v959_v22, %s2629_s3  ;;  %v1139_v22 = vld [vmem:[#allocation7 + $0xc0] sm:$0xff] }
0x14a9   :  { %637 = vrot.lane.b32.xlu2 %v2965_v61, %s2629_s3 }
0x14b1   :  { %405 = vrot.lane.b32.xlu2 %v2891_v45, %s2629_s3 }
0x14b9   :  { %289 = vrot.lane.b32.xlu2 %v2857_v50, %s2629_s3 }
0x14f3   :  { %v1057_v7 = vpop.permute.xlu2 %1056 }
0x14f4   :  { %v1059_v10 = vsel %vm271_vm1, %v1057_v7, %v1054_v3  ;;  %v3164_v7 = vld [vmem:[#allocation7 + $0x148] sm:$0xff] }
0x14f5   :  { %2516 = vtanh.f32 %v1059_v10  ;;  %v3166_v10 = vld [vmem:[#allocation7 + $0x138] sm:$0xff]  ;;  %1334 = vmatpush.msrb.mxu3 %v3164_v7  ;;  %1769 = vmatpush.msrb.mxu1 %v3164_v7 }
0x14f7   :  { %1335 = vmatpush.msrb.mxu3 %v3166_v10  ;;  %1770 = vmatpush.msrb.mxu1 %v3166_v10 }
0x14f8   :  { %1336 = vmatmul.f32.vlgmr.msrb.gmra.mxu3 %v2627_v18 }
0x14f9   :  { %1433 = vmatpush.msra.mxu3 %v3128_v42 }
0x14fb   :  { %v2517_v11 = vpop.eup %2516  ;;  %v968_v39 = vpop.permute.xlu2 %967  ;;  %1434 = vmatpush.msra.mxu3 %v3130_v54 }
0x14fc   :  { %971 = vst.msk [vmem:[#allocation4 + $0x8] sm:$0xff] %vm271_vm1, %v968_v39  ;;  %1066 = vrot.lane.b32.xlu0 %v2517_v11, %s2628_s0  ;;  %v1084_v39 = vld [vmem:[#allocation3 + $0x18] sm:$0xff] }
0x14fd   :  { %1435 = vmatpush.msra.mxu3 %v3142_v44 }
0x14ff   :  { %1436 = vmatpush.msra.mxu3 %v3144_v55 }
0x1501   :  { %1437 = vmatpush.msra.mxu3 %v3148_v57 }
0x1503   :  { %v638_v61 = vpop.permute.xlu2 %637  ;;  %v1090_v26 = vld [vmem:[#allocation4 + $0x8] sm:$0xff]  ;;  %1438 = vmatpush.msra.mxu3 %v3153_v63 }
0x1504   :  { %641 = vst.msk [vmem:[#allocation4 + $0x20] sm:$0xff] %vm271_vm1, %v638_v61  ;;  %857 = vrot.lane.b32.xlu0 %v3003_v6, %s2629_s3 }
0x1505   :  { %1439 = vmatpush.msra.mxu3 %v3164_v7 }
0x1507   :  { %1440 = vmatpush.msra.mxu3 %v3166_v10 }
0x1509   :  { %1543 = vmatpush.msrb.mxu3 %v3128_v42 }
0x150b   :  { %v406_v50 = vpop.permute.xlu2 %405  ;;  %v1093_v45 = vld [vmem:[#allocation4 + $0x20] sm:$0xff]  ;;  %1544 = vmatpush.msrb.mxu3 %v3130_v54 }
0x150c   :  { %409 = vst.msk [vmem:[#allocation4 + $0x30] sm:$0xff] %vm271_vm1, %v406_v50  ;;  %521 = vrot.lane.b32.xlu0 %v2927_v32, %s2629_s3  ;;  %1113 = vrot.lane.b32.xlu2 %v1093_v45, %s2629_s3  ;;  %v1085_v50 = vld [vmem:[#allocation3 + $0x20] sm:$0xff] }
0x150d   :  { %1545 = vmatpush.msrb.mxu3 %v3142_v44 }
0x150f   :  { %1546 = vmatpush.msrb.mxu3 %v3144_v55 }
0x1511   :  { %1547 = vmatpush.msrb.mxu3 %v3148_v57 }
0x1513   :  { %v290_v62 = vpop.permute.xlu2 %289  ;;  %v1095_v16 = vld [vmem:[#allocation4 + $0x30] sm:$0xff]  ;;  %1548 = vmatpush.msrb.mxu3 %v3153_v63 }
0x1514   :  { %293 = vst.msk [vmem:[#allocation4 + $0x38] sm:$0xff] %vm271_vm1, %v290_v62  ;;  %1062 = vrot.lane.b32.xlu0 %v2517_v11, %s2630_s4  ;;  %1117 = vrot.lane.b32.xlu2 %v1095_v16, %s2629_s3  ;;  %v1086_v16 = vld [vmem:[#allocation3 + $0x28] sm:$0xff] }
0x1515   :  { %1549 = vmatpush.msrb.mxu3 %v3164_v7 }
0x1517   :  { %1550 = vmatpush.msrb.mxu3 %v3166_v10 }
0x151b   :  { %v1096_v24 = vld [vmem:[#allocation4 + $0x38] sm:$0xff] }
0x1566   :  { %v1114_v18 = vpop.permute.xlu2 %1113 }
0x1567   :  { %v1133_v45 = vsel %vm271_vm1, %v1085_v50, %v1114_v18 }
0x156e   :  { %v1067_v17 = vpop.permute.xlu0 %1066 }
0x156f   :  { %v1069_v35 = vmul.f32 %v1067_v17, %v1028_v48 }
0x1571   :  { %1077 = vrot.lane.b32.xlu1 %v1069_v35, %s2629_s3  ;;  %v1118_v35 = vpop.permute.xlu2 %1117 }
0x1576   :  { %v858_v6 = vpop.permute.xlu0 %857 }
0x1577   :  { %861 = vst.msk [vmem:[#allocation4 + $0x10] sm:$0xff] %vm271_vm1, %v858_v6  ;;  %v1087_v6 = vld [vmem:[#allocation3 + $0x30] sm:$0xff] }
0x1579   :  { %747 = vrot.lane.b32.xlu1 %v2983_v9, %s2629_s3  ;;  %v1151_v9 = vld [vmem:[#allocation7 + $0x120] sm:$0xff] }
0x157a   :  { %1192 = vmatpush.msra.mxu0 %v1151_v9 }
0x157c   :  { %1193 = vmatpush.msra.mxu0 %v1149_v31  ;;  %v1317_v31 = vpop.f32.mrf.mxu2 }
0x157e   :  { %v522_v32 = vpop.permute.xlu0 %521  ;;  %v1091_v0 = vld [vmem:[#allocation4 + $0x10] sm:$0xff]  ;;  %1194 = vmatpush.msra.mxu0 %v1147_v51 }
0x157f   :  { %525 = vst.msk [vmem:[#allocation4 + $0x28] sm:$0xff] %vm271_vm1, %v522_v32  ;;  %1109 = vrot.lane.b32.xlu0 %v1091_v0, %s2629_s3  ;;  %v1135_v32 = vsel %vm271_vm1, %v1087_v6, %v1118_v35 }
0x1580   :  { %1195 = vmatpush.msra.mxu0 %v1145_v40 }
0x1582   :  { %1196 = vmatpush.msra.mxu0 %v1143_v5 }
0x1584   :  { %1197 = vmatpush.msra.mxu0 %v1141_v20 }
0x1586   :  { %v1094_v19 = vld [vmem:[#allocation4 + $0x28] sm:$0xff]  ;;  %1198 = vmatpush.msra.mxu0 %v1139_v22  ;;  %v1063_v28 = vpop.permute.xlu0 %1062 }
0x1587   :  { %1115 = vrot.lane.b32.xlu0 %v1094_v19, %s2629_s3  ;;  %v1065_v33 = vmul.f32 %v1063_v28, %v3035_v53  ;;  %v1082_v53 = vld [vmem:[#allocation3 + $0x8] sm:$0xff] }
0x1588   :  { %1199 = vmatpush.msra.mxu0 %v1137_v60 }
0x158a   :  { %1743 = vmatpush.msrb.mxu0 %v3070_v58 }
0x158c   :  { %1744 = vmatpush.msrb.mxu0 %v3072_v29 }
0x158e   :  { %1745 = vmatpush.msrb.mxu0 %v3075_v34 }
0x158f   :  { %1119 = vrot.lane.b32.xlu0 %v1096_v24, %s2629_s3 }
0x1590   :  { %1746 = vmatpush.msrb.mxu0 %v3078_v36 }
0x1592   :  { %1747 = vmatpush.msrb.mxu0 %v3081_v4 }
0x1594   :  { %1748 = vmatpush.msrb.mxu0 %v3086_v14 }
0x1596   :  { %1749 = vmatpush.msrb.mxu0 %v3089_v15 }
0x1598   :  { %1750 = vmatpush.msrb.mxu0 %v3092_v25 }
0x15e3   :  { %v1078_v37 = vpop.permute.xlu1 %1077 }
0x15e4   :  { %1080 = vst.msk [vmem:[#allocation4] sm:$0xff] %vm271_vm1, %v1078_v37  ;;  %v1154_v37 = vld [vmem:[#allocation7 + $0x1b0] ss:$8 sm:$0x3] }
0x15e5   :  { %v3215_v9 = vperm.slane %v1154_v37, 0  ;;  %v1157_v30 = vperm.slane %v1154_v37, 1 }
0x15eb   :  { %v748_v8 = vpop.permute.xlu1 %747  ;;  %v1089_v12 = vld [vmem:[#allocation4] sm:$0xff] }
0x15ec   :  { %751 = vst.msk [vmem:[#allocation4 + $0x18] sm:$0xff] %vm271_vm1, %v748_v8  ;;  %1105 = vrot.lane.b32.xlu1 %v1089_v12, %s2629_s3 }
0x15f1   :  { %v1110_v59 = vpop.permute.xlu0 %1109 }
0x15f2   :  { %v1131_v3 = vsel %vm271_vm1, %v1083_v2, %v1110_v59  ;;  %v1337_v2 = vpop.f32.mrf.mxu3 }
0x15f3   :  { %v1092_v27 = vld [vmem:[#allocation4 + $0x18] sm:$0xff] }
0x15f4   :  { %1107 = vrot.lane.b32.xlu1 %v1090_v26, %s2629_s3 }
0x15f9   :  { %v1116_v62 = vpop.permute.xlu0 %1115 }
0x15fa   :  { %v1134_v17 = vsel %vm271_vm1, %v1086_v16, %v1116_v62 }
0x15fc   :  { %1111 = vrot.lane.b32.xlu1 %v1092_v27, %s2629_s3 }
0x1601   :  { %v1120_v19 = vpop.permute.xlu0 %1119 }
0x1604   :  { %1071 = vrot.lane.b32.xlu1 %v1065_v33, %s2629_s3 }
0x165e   :  { %v1106_v47 = vpop.permute.xlu1 %1105 }
0x165f   :  { %v1129_v48 = vsel %vm271_vm1, %v1081_v43, %v1106_v47 }
0x1660   :  { %2421 = vmatmul.msk.f32.vlgmr.msra.gmra.mxu0 %vm193_vm2, %v1129_v48  ;;  %2429 = vmatmul.msk.f32.vlgmr.msra.gmra.mxu1 %vm193_vm2, %v1129_v48 }
0x1661   :  { %1963 = vmatpush.msra.mxu0 %v3070_v58  ;;  %1983 = vmatpush.msra.mxu1 %v3128_v42 }
0x1663   :  { %1964 = vmatpush.msra.mxu0 %v3072_v29  ;;  %1984 = vmatpush.msra.mxu1 %v3130_v54 }
0x1665   :  { %1965 = vmatpush.msra.mxu0 %v3075_v34  ;;  %1985 = vmatpush.msra.mxu1 %v3142_v44 }
0x1666   :  { %v1108_v52 = vpop.permute.xlu1 %1107 }
0x1667   :  { %v1130_v56 = vsel %vm271_vm1, %v1082_v53, %v1108_v52  ;;  %1966 = vmatpush.msra.mxu0 %v3078_v36  ;;  %1986 = vmatpush.msra.mxu1 %v3144_v55 }
0x1668   :  { %2422 = vmatmul.msk.f32.gmra.mxu0 %vm193_vm2, %v1130_v56  ;;  %2430 = vmatmul.msk.f32.gmra.mxu1 %vm193_vm2, %v1130_v56 }
0x1669   :  { %1967 = vmatpush.msra.mxu0 %v3081_v4  ;;  %1987 = vmatpush.msra.mxu1 %v3148_v57 }
0x166b   :  { %1968 = vmatpush.msra.mxu0 %v3086_v14  ;;  %1988 = vmatpush.msra.mxu1 %v3153_v63 }
0x166d   :  { %1969 = vmatpush.msra.mxu0 %v3089_v15  ;;  %1989 = vmatpush.msra.mxu1 %v3164_v7 }
0x166e   :  { %v1112_v1 = vpop.permute.xlu1 %1111 }
0x166f   :  { %1970 = vmatpush.msra.mxu0 %v3092_v25  ;;  %v1132_v61 = vsel %vm271_vm1, %v1084_v39, %v1112_v1  ;;  %1990 = vmatpush.msra.mxu1 %v3166_v10 }
0x1670   :  { %2423 = vmatmul.msk.f32.gmra.mxu0 %vm193_vm2, %v1131_v3  ;;  %2431 = vmatmul.msk.f32.gmra.mxu1 %vm193_vm2, %v1131_v3 }
0x1676   :  { %v1072_v11 = vpop.permute.xlu1 %1071 }
0x1677   :  { %1075 = vst.msk [vmem:[#allocation3 + $0x38] sm:$0xff] %vm271_vm1, %v1072_v11 }
0x1678   :  { %2424 = vmatmul.msk.f32.gmra.mxu0 %vm193_vm2, %v1132_v61  ;;  %2432 = vmatmul.msk.f32.gmra.mxu1 %vm193_vm2, %v1132_v61 }
0x167e   :  { %v1088_v0 = vld [vmem:[#allocation3 + $0x38] sm:$0xff] }
0x167f   :  { %v1136_v24 = vsel %vm271_vm1, %v1088_v0, %v1120_v19 }
0x1680   :  { %2425 = vmatmul.msk.f32.gmra.mxu0 %vm193_vm2, %v1133_v45  ;;  %2433 = vmatmul.msk.f32.gmra.mxu1 %vm193_vm2, %v1133_v45 }
0x1688   :  { %2426 = vmatmul.msk.f32.gmra.mxu0 %vm193_vm2, %v1134_v17  ;;  %2434 = vmatmul.msk.f32.gmra.mxu1 %vm193_vm2, %v1134_v17 }
0x1690   :  { %2427 = vmatmul.msk.f32.gmra.mxu0 %vm193_vm2, %v1135_v32  ;;  %2435 = vmatmul.msk.f32.gmra.mxu1 %vm193_vm2, %v1135_v32 }
0x1698   :  { %2428 = vmatmul.msk.f32.gmra.mxu0 %vm193_vm2, %v1136_v24  ;;  %2436 = vmatmul.msk.f32.gmra.mxu1 %vm193_vm2, %v1136_v24 }
0x16dd   :  { %v1201_v38 = vpop.f32.mrf.mxu0  ;;  %v1242_v51 = vpop.f32.mrf.mxu1 }
0x16de   :  { %v1202_v49 = vadd.f32 %v1201_v38, %v3215_v9  ;;  %v3218_v40 = vadd.f32 %v1242_v51, %v1157_v30 }
0x16e0   :  { %v1340_v41 = vadd.f32 %v1317_v31, %v1202_v49 }
0x16e2   :  { %2518 = vtanh.f32 %v1340_v41 }
0x16e5   :  { %v3220_v5 = vpop.f32.mrf.mxu0  ;;  %v1245_v8 = vpop.f32.mrf.mxu1 }
0x16e6   :  { %v3222_v12 = vadd.f32 %v1245_v8, %v1157_v30 }
0x16e8   :  { %v2519_v13 = vpop.eup %2518 }
0x16e9   :  { %1350 = vrot.lane.b32.xlu1 %v2519_v13, %s2628_s0  ;;  %v1344_v61 = vmul.f32 0.5, %v2519_v13 }
0x16eb   :  { %v1345_v18 = vadd.f32 0.5, %v1344_v61 }
0x16ed   :  { %v3225_v20 = vpop.f32.mrf.mxu0  ;;  %v1248_v21 = vpop.f32.mrf.mxu1  ;;  %v1348_v6 = vmul.f32 0.0, %v1345_v18 }
0x16ee   :  { %v3227_v22 = vadd.f32 %v1248_v21, %v1157_v30 }
0x16f5   :  { %v3229_v23 = vpop.f32.mrf.mxu0  ;;  %v1251_v26 = vpop.f32.mrf.mxu1 }
0x16f6   :  { %v3231_v27 = vadd.f32 %v1251_v26, %v1157_v30 }
0x16fd   :  { %v3233_v28 = vpop.f32.mrf.mxu0  ;;  %v1254_v33 = vpop.f32.mrf.mxu1 }
0x16fe   :  { %v3235_v60 = vadd.f32 %v1254_v33, %v1157_v30  ;;  %v1205_v33 = vadd.f32 %v3220_v5, %v3215_v9 }
0x1705   :  { %v1216_v46 = vpop.f32.mrf.mxu0  ;;  %v1257_v43 = vpop.f32.mrf.mxu1 }
0x1706   :  { %v3238_v47 = vadd.f32 %v1216_v46, %v3215_v9  ;;  %v3240_v48 = vadd.f32 %v1257_v43, %v1157_v30 }
0x170d   :  { %v1219_v52 = vpop.f32.mrf.mxu0  ;;  %v1260_v53 = vpop.f32.mrf.mxu1 }
0x170e   :  { %v3243_v56 = vadd.f32 %v1219_v52, %v3215_v9  ;;  %v3245_v59 = vadd.f32 %v1260_v53, %v1157_v30 }
0x1715   :  { %v1263_v1 = vpop.f32.mrf.mxu1 }
0x1716   :  { %v1264_v3 = vadd.f32 %v1263_v1, %v1157_v30 }
0x1718   :  { %v1341_v11 = vadd.f32 %v1337_v2, %v1264_v3 }
0x171a   :  { %2520 = vtanh.f32 %v1341_v11 }
0x1720   :  { %v2521_v39 = vpop.eup %2520 }
0x1721   :  { %1361 = vrot.lane.b32.xlu2 %v2521_v39, %s2628_s0  ;;  %v1346_v62 = vmul.f32 0.5, %v2521_v39 }
0x1723   :  { %v1347_v16 = vadd.f32 0.5, %v1346_v62 }
0x1725   :  { %v1359_v24 = vmul.f32 0.0, %v1347_v16 }
0x175b   :  { %v1351_v50 = vpop.permute.xlu1 %1350 }
0x175c   :  { %v1353_v45 = vmul.f32 %v1351_v50, %v1345_v18 }
0x175e   :  { %1355 = vrot.lane.b32.xlu0 %v1353_v45, %s2629_s3 }
0x177b   :  { %v1362_v17 = vpop.permute.xlu2 %1361 }
0x177c   :  { %v1364_v35 = vmul.f32 %v1362_v17, %v1347_v16 }
0x177e   :  { %1366 = vrot.lane.b32.xlu1 %v1364_v35, %s2629_s3 }
0x17d0   :  { %v1356_v32 = vpop.permute.xlu0 %1355 }
0x17d1   :  { %v1358_v0 = vadd.f32 %v1356_v32, %v1348_v6 }
0x17d3   :  { %1371 = vrot.lane.b32.xlu2 %v1358_v0, %s2630_s4 }
0x17f0   :  { %v1367_v19 = vpop.permute.xlu1 %1366 }
0x17f1   :  { %v1369_v37 = vadd.f32 %v1367_v19, %v1359_v24 }
0x182d   :  { %v1372_v30 = vpop.permute.xlu2 %1371 }
0x182e   :  { %v1374_v31 = vsel %vm271_vm1, %v1372_v30, %v1369_v37 }
0x182f   :  { %2522 = vtanh.f32 %v1374_v31 }
0x1835   :  { %v2523_v38 = vpop.eup %2522 }
0x1836   :  { %1381 = vrot.lane.b32.xlu1 %v2523_v38, %s2628_s0  ;;  %1377 = vrot.lane.b32.xlu0 %v2523_v38, %s2630_s4 }
0x18a8   :  { %v1382_v51 = vpop.permute.xlu1 %1381  ;;  %v1378_v49 = vpop.permute.xlu0 %1377 }
0x18a9   :  { %v3254_v41 = vmul.f32 %v1382_v51, %v1347_v16  ;;  %v1380_v8 = vmul.f32 %v1378_v49, %v1345_v18 }
0x18ab   :  { %1396 = vrot.lane.b32.xlu0 %v3254_v41, %s2628_s0  ;;  %1386 = vrot.lane.b32.xlu2 %v1380_v8, %s2629_s3 }
0x18b3   :  { %1454 = vrot.lane.b32.xlu2 %v1374_v31, %s2629_s3 }
0x1905   :  { %v1387_v13 = vpop.permute.xlu2 %1386 }
0x1906   :  { %1389 = vst.msk [vmem:[#allocation5] sm:$0xff] %vm271_vm1, %v1387_v13 }
0x191d   :  { %v1397_v21 = vpop.permute.xlu0 %1396 }
0x191e   :  { %v1399_v26 = vsel %vm271_vm1, %v1387_v13, %v1397_v21  ;;  %v1208_v13 = vadd.f32 %v3225_v20, %v3215_v9 }
0x191f   :  { %2437 = vmatmul.msk.f32.vlgmr.msra.gmra.mxu2 %vm193_vm2, %v1399_v26  ;;  %2438 = vmatmul.msk.f32.vlgmr.msra.gmra.mxu3 %vm193_vm2, %v1399_v26 }
0x1920   :  { %1633 = vmatpush.msra.mxu2 %v3070_v58  ;;  %1653 = vmatpush.msra.mxu3 %v3128_v42 }
0x1922   :  { %1634 = vmatpush.msra.mxu2 %v3072_v29  ;;  %1654 = vmatpush.msra.mxu3 %v3130_v54 }
0x1924   :  { %1635 = vmatpush.msra.mxu2 %v3075_v34  ;;  %1655 = vmatpush.msra.mxu3 %v3142_v44 }
0x1926   :  { %1636 = vmatpush.msra.mxu2 %v3078_v36  ;;  %1656 = vmatpush.msra.mxu3 %v3144_v55 }
0x1928   :  { %1637 = vmatpush.msra.mxu2 %v3081_v4  ;;  %1657 = vmatpush.msra.mxu3 %v3148_v57 }
0x192a   :  { %1638 = vmatpush.msra.mxu2 %v3086_v14  ;;  %1658 = vmatpush.msra.mxu3 %v3153_v63 }
0x192c   :  { %1639 = vmatpush.msra.mxu2 %v3089_v15  ;;  %1659 = vmatpush.msra.mxu3 %v3164_v7 }
0x192e   :  { %1640 = vmatpush.msra.mxu2 %v3092_v25  ;;  %1660 = vmatpush.msra.mxu3 %v3166_v10 }
0x19a2   :  { %v1422_v46 = vpop.f32.mrf.mxu2  ;;  %v1442_v43 = vpop.f32.mrf.mxu3 }
0x19a3   :  { %v1445_v52 = vadd.f32 %v1422_v46, %v1205_v33  ;;  %v1446_v53 = vadd.f32 %v1442_v43, %v3245_v59  ;;  %v1455_v59 = vpop.permute.xlu2 %1454 }
0x19a5   :  { %2524 = vtanh.f32 %v1445_v52 }
0x19a6   :  { %2526 = vtanh.f32 %v1446_v53 }
0x19ab   :  { %v2525_v1 = vpop.eup %2524 }
0x19ac   :  { %v2527_v2 = vpop.eup %2526  ;;  %1459 = vrot.lane.b32.xlu1 %v2525_v1, %s2628_s0  ;;  %v1449_v3 = vmul.f32 0.5, %v2525_v1 }
0x19ad   :  { %1470 = vrot.lane.b32.xlu0 %v2527_v2, %s2628_s0  ;;  %v1451_v11 = vmul.f32 0.5, %v2527_v2 }
0x19ae   :  { %v1450_v39 = vadd.f32 0.5, %v1449_v3 }
0x19af   :  { %v1452_v18 = vadd.f32 0.5, %v1451_v11 }
0x19b0   :  { %v1457_v62 = vmul.f32 %v1455_v59, %v1450_v39 }
0x19b1   :  { %v1468_v6 = vmul.f32 %v1452_v18, %v1374_v31 }
0x1a1e   :  { %v1460_v61 = vpop.permute.xlu1 %1459 }
0x1a1f   :  { %v1462_v50 = vmul.f32 %v1460_v61, %v1450_v39  ;;  %v1471_v5 = vpop.permute.xlu0 %1470 }
0x1a20   :  { %v1473_v45 = vmul.f32 %v1471_v5, %v1452_v18 }
0x1a21   :  { %1464 = vrot.lane.b32.xlu1 %v1462_v50, %s2629_s3 }
0x1a22   :  { %1475 = vrot.lane.b32.xlu2 %v1473_v45, %s2629_s3 }
0x1a7c   :  { %v1476_v35 = vpop.permute.xlu2 %1475 }
0x1a7d   :  { %v1478_v32 = vadd.f32 %v1476_v35, %v1468_v6 }
0x1a93   :  { %v1465_v16 = vpop.permute.xlu1 %1464 }
0x1a94   :  { %v1467_v17 = vadd.f32 %v1465_v16, %v1457_v62 }
0x1a96   :  { %1480 = vrot.lane.b32.xlu0 %v1467_v17, %s2630_s4 }
0x1b08   :  { %v1481_v0 = vpop.permute.xlu0 %1480 }
0x1b09   :  { %v1483_v19 = vsel %vm271_vm1, %v1481_v0, %v1478_v32 }
0x1b0a   :  { %2528 = vtanh.f32 %v1483_v19 }
0x1b10   :  { %v2529_v24 = vpop.eup %2528 }
0x1b11   :  { %1490 = vrot.lane.b32.xlu2 %v2529_v24, %s2628_s0  ;;  %1486 = vrot.lane.b32.xlu1 %v2529_v24, %s2630_s4 }
0x1b6b   :  { %v1491_v37 = vpop.permute.xlu2 %1490 }
0x1b6c   :  { %v3291_v30 = vmul.f32 %v1491_v37, %v1452_v18 }
0x1b6e   :  { %1506 = vrot.lane.b32.xlu1 %v3291_v30, %s2628_s0 }
0x1b83   :  { %v1487_v38 = vpop.permute.xlu1 %1486 }
0x1b84   :  { %v1489_v51 = vmul.f32 %v1487_v38, %v1450_v39 }
0x1b86   :  { %1495 = vrot.lane.b32.xlu0 %v1489_v51, %s2629_s3 }
0x1b8e   :  { %1564 = vrot.lane.b32.xlu0 %v1483_v19, %s2629_s3 }
0x1be0   :  { %v1507_v31 = vpop.permute.xlu1 %1506 }
0x1bf8   :  { %v1496_v49 = vpop.permute.xlu0 %1495 }
0x1bf9   :  { %1499 = vst.msk [vmem:[#allocation5 + $0x8] sm:$0xff] %vm271_vm1, %v1496_v49  ;;  %v1509_v8 = vsel %vm271_vm1, %v1496_v49, %v1507_v31 }
0x1bfa   :  { %2439 = vmatmul.msk.f32.vlgmr.msrb.gmra.mxu2 %vm193_vm2, %v1509_v8  ;;  %2440 = vmatmul.msk.f32.vlgmr.msrb.gmra.mxu3 %vm193_vm2, %v1509_v8 }
0x1bfb   :  { %1853 = vmatpush.msrb.mxu2 %v3070_v58  ;;  %1873 = vmatpush.msrb.mxu3 %v3128_v42 }
0x1bfd   :  { %1854 = vmatpush.msrb.mxu2 %v3072_v29  ;;  %1874 = vmatpush.msrb.mxu3 %v3130_v54 }
0x1bff   :  { %1855 = vmatpush.msrb.mxu2 %v3075_v34  ;;  %1875 = vmatpush.msrb.mxu3 %v3142_v44 }
0x1c01   :  { %1856 = vmatpush.msrb.mxu2 %v3078_v36  ;;  %1876 = vmatpush.msrb.mxu3 %v3144_v55 }
0x1c03   :  { %1857 = vmatpush.msrb.mxu2 %v3081_v4  ;;  %1877 = vmatpush.msrb.mxu3 %v3148_v57 }
0x1c05   :  { %1858 = vmatpush.msrb.mxu2 %v3086_v14  ;;  %1878 = vmatpush.msrb.mxu3 %v3153_v63 }
0x1c07   :  { %1859 = vmatpush.msrb.mxu2 %v3089_v15  ;;  %1879 = vmatpush.msrb.mxu3 %v3164_v7 }
0x1c09   :  { %1860 = vmatpush.msrb.mxu2 %v3092_v25  ;;  %1880 = vmatpush.msrb.mxu3 %v3166_v10 }
0x1c7d   :  { %v1532_v21 = vpop.f32.mrf.mxu2  ;;  %v1552_v26 = vpop.f32.mrf.mxu3 }
0x1c7e   :  { %v1555_v33 = vadd.f32 %v1532_v21, %v1208_v13  ;;  %v1556_v46 = vadd.f32 %v1552_v26, %v3240_v48  ;;  %v1565_v48 = vpop.permute.xlu0 %1564 }
0x1c80   :  { %2530 = vtanh.f32 %v1555_v33 }
0x1c81   :  { %2532 = vtanh.f32 %v1556_v46 }
0x1c86   :  { %v2531_v43 = vpop.eup %2530 }
0x1c87   :  { %v2533_v52 = vpop.eup %2532  ;;  %1569 = vrot.lane.b32.xlu2 %v2531_v43, %s2628_s0  ;;  %v1559_v53 = vmul.f32 0.5, %v2531_v43 }
0x1c88   :  { %1580 = vrot.lane.b32.xlu1 %v2533_v52, %s2628_s0  ;;  %v1561_v20 = vmul.f32 0.5, %v2533_v52 }
0x1c89   :  { %v1560_v1 = vadd.f32 0.5, %v1559_v53 }
0x1c8a   :  { %v1562_v11 = vadd.f32 0.5, %v1561_v20  ;;  %v1214_v20 = vadd.f32 %v3233_v28, %v3215_v9 }
0x1c8b   :  { %v1567_v18 = vmul.f32 %v1565_v48, %v1560_v1 }
0x1c8c   :  { %v1578_v59 = vmul.f32 %v1562_v11, %v1483_v19 }
0x1ce1   :  { %v1570_v2 = vpop.permute.xlu2 %1569 }
0x1ce2   :  { %v1572_v3 = vmul.f32 %v1570_v2, %v1560_v1 }
0x1ce4   :  { %1574 = vrot.lane.b32.xlu2 %v1572_v3, %s2629_s3  ;;  %v3375_v3 = vpop.f32.mrf.mxu0 }
0x1cfa   :  { %v1581_v39 = vpop.permute.xlu1 %1580 }
0x1cfb   :  { %v1583_v61 = vmul.f32 %v1581_v39, %v1562_v11 }
0x1cfd   :  { %1585 = vrot.lane.b32.xlu0 %v1583_v61, %s2629_s3 }
0x1d3e   :  { %v1575_v50 = vpop.permute.xlu2 %1574 }
0x1d3f   :  { %v1577_v5 = vadd.f32 %v1575_v50, %v1567_v18 }
0x1d41   :  { %1590 = vrot.lane.b32.xlu1 %v1577_v5, %s2630_s4 }
0x1d6f   :  { %v1586_v45 = vpop.permute.xlu0 %1585 }
0x1d70   :  { %v1588_v62 = vadd.f32 %v1586_v45, %v1578_v59 }
0x1db3   :  { %v1591_v16 = vpop.permute.xlu1 %1590 }
0x1db4   :  { %v1593_v17 = vsel %vm271_vm1, %v1591_v16, %v1588_v62 }
0x1db5   :  { %2534 = vtanh.f32 %v1593_v17 }
0x1dbb   :  { %v2535_v35 = vpop.eup %2534 }
0x1dbc   :  { %1600 = vrot.lane.b32.xlu0 %v2535_v35, %s2628_s0  ;;  %1596 = vrot.lane.b32.xlu2 %v2535_v35, %s2630_s4 }
0x1e16   :  { %v1597_v6 = vpop.permute.xlu2 %1596 }
0x1e17   :  { %v1599_v32 = vmul.f32 %v1597_v6, %v1560_v1 }
0x1e19   :  { %1605 = vrot.lane.b32.xlu1 %v1599_v32, %s2629_s3 }
0x1e21   :  { %1674 = vrot.lane.b32.xlu1 %v1593_v17, %s2629_s3 }
0x1e2e   :  { %v1601_v0 = vpop.permute.xlu0 %1600 }
0x1e2f   :  { %v3330_v24 = vmul.f32 %v1601_v0, %v1562_v11 }
0x1e31   :  { %1616 = vrot.lane.b32.xlu2 %v3330_v24, %s2628_s0 }
0x1e8b   :  { %v1606_v19 = vpop.permute.xlu1 %1605  ;;  %v1617_v37 = vpop.permute.xlu2 %1616 }
0x1e8c   :  { %1609 = vst.msk [vmem:[#allocation5 + $0x10] sm:$0xff] %vm271_vm1, %v1606_v19  ;;  %v1619_v38 = vsel %vm271_vm1, %v1606_v19, %v1617_v37 }
0x1e8d   :  { %2441 = vmatmul.msk.f32.vlgmr.msra.gmra.mxu2 %vm193_vm2, %v1619_v38  ;;  %2442 = vmatmul.msk.f32.vlgmr.msra.gmra.mxu3 %vm193_vm2, %v1619_v38 }
0x1e8e   :  { %2073 = vmatpush.msra.mxu2 %v3070_v58  ;;  %2093 = vmatpush.msra.mxu3 %v3128_v42  ;;  %v1211_v58 = vadd.f32 %v3229_v23, %v3215_v9 }
0x1e90   :  { %2074 = vmatpush.msra.mxu2 %v3072_v29  ;;  %2094 = vmatpush.msra.mxu3 %v3130_v54 }
0x1e92   :  { %2075 = vmatpush.msra.mxu2 %v3075_v34  ;;  %2095 = vmatpush.msra.mxu3 %v3142_v44 }
0x1e94   :  { %2076 = vmatpush.msra.mxu2 %v3078_v36  ;;  %2096 = vmatpush.msra.mxu3 %v3144_v55 }
0x1e96   :  { %2077 = vmatpush.msra.mxu2 %v3081_v4  ;;  %2097 = vmatpush.msra.mxu3 %v3148_v57 }
0x1e98   :  { %2078 = vmatpush.msra.mxu2 %v3086_v14  ;;  %2098 = vmatpush.msra.mxu3 %v3153_v63 }
0x1e9a   :  { %2079 = vmatpush.msra.mxu2 %v3089_v15  ;;  %2099 = vmatpush.msra.mxu3 %v3164_v7 }
0x1e9c   :  { %2080 = vmatpush.msra.mxu2 %v3092_v25  ;;  %2100 = vmatpush.msra.mxu3 %v3166_v10  ;;  %v1675_v10 = vpop.permute.xlu1 %1674 }
0x1f10   :  { %v1642_v29 = vpop.f32.mrf.mxu2  ;;  %v1662_v34 = vpop.f32.mrf.mxu3 }
0x1f11   :  { %v1665_v36 = vadd.f32 %v1642_v29, %v1211_v58  ;;  %v1666_v4 = vadd.f32 %v1662_v34, %v3235_v60 }
0x1f13   :  { %2536 = vtanh.f32 %v1665_v36 }
0x1f14   :  { %2538 = vtanh.f32 %v1666_v4 }
0x1f19   :  { %v2537_v14 = vpop.eup %2536 }
0x1f1a   :  { %v2539_v42 = vpop.eup %2538  ;;  %1679 = vrot.lane.b32.xlu0 %v2537_v14, %s2628_s0  ;;  %v1669_v55 = vmul.f32 0.5, %v2537_v14 }
0x1f1b   :  { %1690 = vrot.lane.b32.xlu2 %v2539_v42, %s2628_s0  ;;  %v1671_v15 = vmul.f32 0.5, %v2539_v42 }
0x1f1c   :  { %v1670_v57 = vadd.f32 0.5, %v1669_v55 }
0x1f1d   :  { %v1672_v25 = vadd.f32 0.5, %v1671_v15 }
0x1f1e   :  { %v1677_v23 = vmul.f32 %v1675_v10, %v1670_v57 }
0x1f1f   :  { %v1688_v49 = vmul.f32 %v1672_v25, %v1593_v17 }
0x1f75   :  { %v1691_v54 = vpop.permute.xlu2 %1690 }
0x1f76   :  { %v1693_v44 = vmul.f32 %v1691_v54, %v1672_v25 }
0x1f78   :  { %1695 = vrot.lane.b32.xlu1 %v1693_v44, %s2629_s3 }
0x1f8c   :  { %v1680_v63 = vpop.permute.xlu0 %1679 }
0x1f8d   :  { %v1682_v7 = vmul.f32 %v1680_v63, %v1670_v57 }
0x1f8f   :  { %1684 = vrot.lane.b32.xlu0 %v1682_v7, %s2629_s3 }
0x1fea   :  { %v1696_v31 = vpop.permute.xlu1 %1695 }
0x1feb   :  { %v1698_v8 = vadd.f32 %v1696_v31, %v1688_v49 }
0x2001   :  { %v1685_v60 = vpop.permute.xlu0 %1684 }
0x2002   :  { %v1687_v51 = vadd.f32 %v1685_v60, %v1677_v23 }
0x2004   :  { %1700 = vrot.lane.b32.xlu2 %v1687_v51, %s2630_s4 }
0x205e   :  { %v1701_v13 = vpop.permute.xlu2 %1700 }
0x205f   :  { %v1703_v21 = vsel %vm271_vm1, %v1701_v13, %v1698_v8 }
0x2060   :  { %2540 = vtanh.f32 %v1703_v21 }
0x2066   :  { %v2541_v26 = vpop.eup %2540 }
0x2067   :  { %1710 = vrot.lane.b32.xlu1 %v2541_v26, %s2628_s0  ;;  %1706 = vrot.lane.b32.xlu0 %v2541_v26, %s2630_s4 }
0x20d9   :  { %v1711_v33 = vpop.permute.xlu1 %1710  ;;  %v1707_v46 = vpop.permute.xlu0 %1706 }
0x20da   :  { %v3365_v43 = vmul.f32 %v1711_v33, %v1672_v25  ;;  %v1709_v52 = vmul.f32 %v1707_v46, %v1670_v57 }
0x20dc   :  { %1726 = vrot.lane.b32.xlu0 %v3365_v43, %s2628_s0  ;;  %1715 = vrot.lane.b32.xlu2 %v1709_v52, %s2629_s3 }
0x20e4   :  { %1784 = vrot.lane.b32.xlu2 %v1703_v21, %s2629_s3 }
0x2136   :  { %v1716_v53 = vpop.permute.xlu2 %1715 }
0x2137   :  { %1719 = vst.msk [vmem:[#allocation5 + $0x18] sm:$0xff] %vm271_vm1, %v1716_v53 }
0x214e   :  { %v1727_v1 = vpop.permute.xlu0 %1726 }
0x214f   :  { %v1729_v2 = vsel %vm271_vm1, %v1716_v53, %v1727_v1 }
0x2150   :  { %2443 = vmatmul.msk.f32.vlgmr.msrb.gmra.mxu0 %vm193_vm2, %v1729_v2  ;;  %2444 = vmatmul.msk.f32.vlgmr.msrb.gmra.mxu1 %vm193_vm2, %v1729_v2 }
0x21cd   :  { %v1752_v11 = vpop.f32.mrf.mxu0  ;;  %v1772_v39 = vpop.f32.mrf.mxu1 }
0x21ce   :  { %v1775_v61 = vadd.f32 %v1752_v11, %v1214_v20  ;;  %v1776_v48 = vadd.f32 %v1772_v39, %v3231_v27  ;;  %v1785_v27 = vpop.permute.xlu2 %1784 }
0x21d0   :  { %2542 = vtanh.f32 %v1775_v61 }
0x21d1   :  { %2544 = vtanh.f32 %v1776_v48 }
0x21d6   :  { %v2543_v18 = vpop.eup %2542 }
0x21d7   :  { %v2545_v50 = vpop.eup %2544  ;;  %1789 = vrot.lane.b32.xlu1 %v2543_v18, %s2628_s0  ;;  %v1779_v5 = vmul.f32 0.5, %v2543_v18 }
0x21d8   :  { %1800 = vrot.lane.b32.xlu0 %v2545_v50, %s2628_s0  ;;  %v1781_v45 = vmul.f32 0.5, %v2545_v50 }
0x21d9   :  { %v1780_v59 = vadd.f32 0.5, %v1779_v5 }
0x21da   :  { %v1782_v62 = vadd.f32 0.5, %v1781_v45 }
0x21db   :  { %v1787_v6 = vmul.f32 %v1785_v27, %v1780_v59 }
0x21dc   :  { %v1798_v37 = vmul.f32 %v1782_v62, %v1703_v21 }
0x2249   :  { %v1790_v16 = vpop.permute.xlu1 %1789 }
0x224a   :  { %v1801_v17 = vpop.permute.xlu0 %1800  ;;  %v1792_v28 = vmul.f32 %v1790_v16, %v1780_v59 }
0x224b   :  { %v1803_v35 = vmul.f32 %v1801_v17, %v1782_v62 }
0x224c   :  { %1794 = vrot.lane.b32.xlu1 %v1792_v28, %s2629_s3 }
0x224d   :  { %1805 = vrot.lane.b32.xlu2 %v1803_v35, %s2629_s3 }
0x22a7   :  { %v1806_v19 = vpop.permute.xlu2 %1805 }
0x22a8   :  { %v1808_v38 = vadd.f32 %v1806_v19, %v1798_v37 }
0x22be   :  { %v1795_v32 = vpop.permute.xlu1 %1794 }
0x22bf   :  { %v1797_v0 = vadd.f32 %v1795_v32, %v1787_v6 }
0x22c1   :  { %1810 = vrot.lane.b32.xlu0 %v1797_v0, %s2630_s4 }
0x2333   :  { %v1811_v58 = vpop.permute.xlu0 %1810 }
0x2334   :  { %v1813_v29 = vsel %vm271_vm1, %v1811_v58, %v1808_v38 }
0x2335   :  { %2546 = vtanh.f32 %v1813_v29 }
0x233b   :  { %v2547_v34 = vpop.eup %2546 }
0x233c   :  { %1820 = vrot.lane.b32.xlu2 %v2547_v34, %s2628_s0  ;;  %1816 = vrot.lane.b32.xlu1 %v2547_v34, %s2630_s4 }
0x2396   :  { %v1821_v36 = vpop.permute.xlu2 %1820 }
0x2397   :  { %v3388_v4 = vmul.f32 %v1821_v36, %v1782_v62 }
0x2399   :  { %1836 = vrot.lane.b32.xlu1 %v3388_v4, %s2628_s0 }
0x23ae   :  { %v1817_v14 = vpop.permute.xlu1 %1816 }
0x23af   :  { %v1819_v42 = vmul.f32 %v1817_v14, %v1780_v59 }
0x23b1   :  { %1825 = vrot.lane.b32.xlu0 %v1819_v42, %s2629_s3 }
0x23b9   :  { %1894 = vrot.lane.b32.xlu0 %v1813_v29, %s2629_s3 }
0x240b   :  { %v1837_v15 = vpop.permute.xlu1 %1836 }
0x2423   :  { %v1826_v25 = vpop.permute.xlu0 %1825 }
0x2424   :  { %1829 = vst.msk [vmem:[#allocation5 + $0x20] sm:$0xff] %vm271_vm1, %v1826_v25  ;;  %v1839_v54 = vsel %vm271_vm1, %v1826_v25, %v1837_v15 }
0x2425   :  { %2445 = vmatmul.msk.f32.vlgmr.msrb.gmra.mxu2 %vm193_vm2, %v1839_v54  ;;  %2446 = vmatmul.msk.f32.vlgmr.msrb.gmra.mxu3 %vm193_vm2, %v1839_v54 }
0x24a8   :  { %v1862_v44 = vpop.f32.mrf.mxu2  ;;  %v1882_v55 = vpop.f32.mrf.mxu3 }
0x24a9   :  { %v1885_v57 = vadd.f32 %v1862_v44, %v3238_v47  ;;  %v1886_v63 = vadd.f32 %v1882_v55, %v3227_v22  ;;  %v1895_v22 = vpop.permute.xlu0 %1894 }
0x24ab   :  { %2548 = vtanh.f32 %v1885_v57 }
0x24ac   :  { %2550 = vtanh.f32 %v1886_v63 }
0x24b1   :  { %v2549_v7 = vpop.eup %2548 }
0x24b2   :  { %v2551_v10 = vpop.eup %2550  ;;  %1899 = vrot.lane.b32.xlu2 %v2549_v7, %s2628_s0  ;;  %v1889_v23 = vmul.f32 0.5, %v2549_v7 }
0x24b3   :  { %1910 = vrot.lane.b32.xlu1 %v2551_v10, %s2628_s0  ;;  %v1891_v49 = vmul.f32 0.5, %v2551_v10 }
0x24b4   :  { %v1890_v60 = vadd.f32 0.5, %v1889_v23  ;;  %v1223_v23 = vadd.f32 %v3375_v3, %v3215_v9 }
0x24b5   :  { %v1892_v8 = vadd.f32 0.5, %v1891_v49 }
0x24b6   :  { %v1897_v21 = vmul.f32 %v1895_v22, %v1890_v60 }
0x24b7   :  { %v1908_v52 = vmul.f32 %v1892_v8, %v1813_v29 }
0x250c   :  { %v1900_v51 = vpop.permute.xlu2 %1899 }
0x250d   :  { %v1902_v31 = vmul.f32 %v1900_v51, %v1890_v60 }
0x250f   :  { %1904 = vrot.lane.b32.xlu2 %v1902_v31, %s2629_s3 }
0x2525   :  { %v1911_v13 = vpop.permute.xlu1 %1910 }
0x2526   :  { %v1913_v47 = vmul.f32 %v1911_v13, %v1892_v8 }
0x2528   :  { %1915 = vrot.lane.b32.xlu0 %v1913_v47, %s2629_s3 }
0x2569   :  { %v1905_v26 = vpop.permute.xlu2 %1904 }
0x256a   :  { %v1907_v33 = vadd.f32 %v1905_v26, %v1897_v21 }
0x256c   :  { %1920 = vrot.lane.b32.xlu1 %v1907_v33, %s2630_s4 }
0x259a   :  { %v1916_v46 = vpop.permute.xlu0 %1915 }
0x259b   :  { %v1918_v53 = vadd.f32 %v1916_v46, %v1908_v52 }
0x25de   :  { %v1921_v1 = vpop.permute.xlu1 %1920 }
0x25df   :  { %v1923_v2 = vsel %vm271_vm1, %v1921_v1, %v1918_v53 }
0x25e0   :  { %2552 = vtanh.f32 %v1923_v2 }
0x25e6   :  { %v2553_v20 = vpop.eup %2552 }
0x25e7   :  { %1930 = vrot.lane.b32.xlu0 %v2553_v20, %s2628_s0  ;;  %1926 = vrot.lane.b32.xlu2 %v2553_v20, %s2630_s4 }
0x2641   :  { %v1927_v11 = vpop.permute.xlu2 %1926 }
0x2642   :  { %v1929_v39 = vmul.f32 %v1927_v11, %v1890_v60 }
0x2644   :  { %1935 = vrot.lane.b32.xlu1 %v1929_v39, %s2629_s3 }
0x264c   :  { %2004 = vrot.lane.b32.xlu1 %v1923_v2, %s2629_s3 }
0x2659   :  { %v1931_v61 = vpop.permute.xlu0 %1930 }
0x265a   :  { %v3410_v48 = vmul.f32 %v1931_v61, %v1892_v8 }
0x265c   :  { %1946 = vrot.lane.b32.xlu2 %v3410_v48, %s2628_s0 }
0x26b6   :  { %v1936_v18 = vpop.permute.xlu1 %1935  ;;  %v1947_v50 = vpop.permute.xlu2 %1946 }
0x26b7   :  { %1939 = vst.msk [vmem:[#allocation5 + $0x28] sm:$0xff] %vm271_vm1, %v1936_v18  ;;  %v1949_v5 = vsel %vm271_vm1, %v1936_v18, %v1947_v50 }
0x26b8   :  { %2447 = vmatmul.msk.f32.vlgmr.msra.gmra.mxu0 %vm193_vm2, %v1949_v5  ;;  %2448 = vmatmul.msk.f32.vlgmr.msra.gmra.mxu1 %vm193_vm2, %v1949_v5 }
0x2735   :  { %v1972_v45 = vpop.f32.mrf.mxu0  ;;  %v1992_v59 = vpop.f32.mrf.mxu1 }
0x2736   :  { %v1995_v62 = vadd.f32 %v1972_v45, %v3243_v56  ;;  %v1996_v16 = vadd.f32 %v1992_v59, %v3222_v12  ;;  %v2005_v12 = vpop.permute.xlu1 %2004 }
0x2738   :  { %2554 = vtanh.f32 %v1995_v62 }
0x2739   :  { %2556 = vtanh.f32 %v1996_v16 }
0x273e   :  { %v2555_v17 = vpop.eup %2554 }
0x273f   :  { %v2557_v28 = vpop.eup %2556  ;;  %2009 = vrot.lane.b32.xlu0 %v2555_v17, %s2628_s0  ;;  %v1999_v0 = vmul.f32 0.5, %v2555_v17 }
0x2740   :  { %2020 = vrot.lane.b32.xlu2 %v2557_v28, %s2628_s0  ;;  %v2001_v35 = vmul.f32 0.5, %v2557_v28 }
0x2741   :  { %v2000_v19 = vadd.f32 0.5, %v1999_v0  ;;  %v2227_v0 = vld [vmem:[#allocation7 + $0x220] sm:$0xff] }
0x2742   :  { %v2002_v27 = vadd.f32 0.5, %v2001_v35 }
0x2743   :  { %v2007_v38 = vmul.f32 %v2005_v12, %v2000_v19 }
0x2744   :  { %v2018_v36 = vmul.f32 %v2002_v27, %v1923_v2 }
0x279a   :  { %v2021_v6 = vpop.permute.xlu2 %2020 }
0x279b   :  { %v2023_v32 = vmul.f32 %v2021_v6, %v2002_v27 }
0x279d   :  { %2025 = vrot.lane.b32.xlu1 %v2023_v32, %s2629_s3  ;;  %v2228_v32 = vld [vmem:[#allocation7 + $0x230] sm:$0xff] }
0x279e   :  { %2266 = vmatpush.msrb.mxu0 %v2228_v32 }
0x27a0   :  { %2267 = vmatpush.msrb.mxu0 %v2227_v0 }
0x27b1   :  { %v2010_v37 = vpop.permute.xlu0 %2009 }
0x27b2   :  { %v2012_v56 = vmul.f32 %v2010_v37, %v2000_v19  ;;  %v2226_v37 = vld [vmem:[#allocation7 + $0x210] sm:$0xff] }
0x27b3   :  { %2268 = vmatpush.msrb.mxu0 %v2226_v37 }
0x27b4   :  { %2014 = vrot.lane.b32.xlu0 %v2012_v56, %s2629_s3  ;;  %v2225_v56 = vld [vmem:[#allocation7 + $0x200] sm:$0xff] }
0x27b5   :  { %2269 = vmatpush.msrb.mxu0 %v2225_v56 }
0x280f   :  { %v2026_v34 = vpop.permute.xlu1 %2025 }
0x2810   :  { %v2028_v14 = vadd.f32 %v2026_v34, %v2018_v36  ;;  %v2222_v34 = vld [vmem:[#allocation7 + $0x1d0] sm:$0xff]  ;;  %v2221_v36 = vld [vmem:[#allocation7 + $0x1c0] sm:$0xff] }
0x2826   :  { %v2015_v58 = vpop.permute.xlu0 %2014 }
0x2827   :  { %v2017_v29 = vadd.f32 %v2015_v58, %v2007_v38  ;;  %v2224_v38 = vld [vmem:[#allocation7 + $0x1f0] sm:$0xff]  ;;  %v2223_v58 = vld [vmem:[#allocation7 + $0x1e0] sm:$0xff] }
0x2828   :  { %2270 = vmatpush.msrb.mxu0 %v2224_v38 }
0x2829   :  { %2030 = vrot.lane.b32.xlu2 %v2017_v29, %s2630_s4 }
0x282a   :  { %2271 = vmatpush.msrb.mxu0 %v2223_v58 }
0x282c   :  { %2272 = vmatpush.msrb.mxu0 %v2222_v34 }
0x282e   :  { %2273 = vmatpush.msrb.mxu0 %v2221_v36 }
0x2883   :  { %v2031_v42 = vpop.permute.xlu2 %2030 }
0x2884   :  { %v2033_v15 = vsel %vm271_vm1, %v2031_v42, %v2028_v14  ;;  %v2165_v14 = vld [vmem:[#allocation5] sm:$0xff] }
0x2885   :  { %2558 = vtanh.f32 %v2033_v15 }
0x288b   :  { %v2559_v25 = vpop.eup %2558 }
0x288c   :  { %2040 = vrot.lane.b32.xlu1 %v2559_v25, %s2628_s0  ;;  %2036 = vrot.lane.b32.xlu0 %v2559_v25, %s2630_s4 }
0x28fe   :  { %v2041_v54 = vpop.permute.xlu1 %2040  ;;  %v2037_v44 = vpop.permute.xlu0 %2036 }
0x28ff   :  { %v2043_v55 = vmul.f32 %v2041_v54, %v2002_v27  ;;  %v2039_v57 = vmul.f32 %v2037_v44, %v2000_v19  ;;  %v2166_v54 = vld [vmem:[#allocation5 + $0x8] sm:$0xff] }
0x2901   :  { %2056 = vrot.lane.b32.xlu0 %v2043_v55, %s2628_s0  ;;  %2045 = vrot.lane.b32.xlu2 %v2039_v57, %s2629_s3 }
0x2909   :  { %2114 = vrot.lane.b32.xlu2 %v2033_v15, %s2629_s3 }
0x295b   :  { %v2046_v63 = vpop.permute.xlu2 %2045 }
0x295c   :  { %2049 = vst.msk [vmem:[#allocation5 + $0x30] sm:$0xff] %vm271_vm1, %v2046_v63 }
0x2973   :  { %v2057_v7 = vpop.permute.xlu0 %2056 }
0x2974   :  { %v2059_v10 = vsel %vm271_vm1, %v2046_v63, %v2057_v7  ;;  %v2167_v63 = vld [vmem:[#allocation5 + $0x10] sm:$0xff] }
0x2975   :  { %2449 = vmatmul.msk.f32.vlgmr.msra.gmra.mxu2 %vm193_vm2, %v2059_v10  ;;  %2450 = vmatmul.msk.f32.vlgmr.msra.gmra.mxu3 %vm193_vm2, %v2059_v10 }
0x29f8   :  { %v2082_v60 = vpop.f32.mrf.mxu2  ;;  %v2102_v51 = vpop.f32.mrf.mxu3 }
0x29f9   :  { %v2105_v31 = vadd.f32 %v2082_v60, %v1223_v23  ;;  %v2106_v49 = vadd.f32 %v2102_v51, %v3218_v40  ;;  %v2115_v40 = vpop.permute.xlu2 %2114  ;;  %v2168_v23 = vld [vmem:[#allocation5 + $0x18] sm:$0xff] }
0x29fb   :  { %2560 = vtanh.f32 %v2105_v31  ;;  %v2169_v31 = vld [vmem:[#allocation5 + $0x20] sm:$0xff] }
0x29fc   :  { %2562 = vtanh.f32 %v2106_v49 }
0x2a01   :  { %v2561_v8 = vpop.eup %2560 }
0x2a02   :  { %v2563_v13 = vpop.eup %2562  ;;  %2119 = vrot.lane.b32.xlu1 %v2561_v8, %s2628_s0  ;;  %v2109_v47 = vmul.f32 0.5, %v2561_v8 }
0x2a03   :  { %2130 = vrot.lane.b32.xlu0 %v2563_v13, %s2628_s0  ;;  %v2111_v22 = vmul.f32 0.5, %v2563_v13  ;;  %v2170_v13 = vld [vmem:[#allocation5 + $0x28] sm:$0xff] }
0x2a04   :  { %v3440_v21 = vadd.f32 0.5, %v2109_v47 }
0x2a05   :  { %v2112_v26 = vadd.f32 0.5, %v2111_v22 }
0x2a06   :  { %v2117_v52 = vmul.f32 %v2115_v40, %v3440_v21 }
0x2a07   :  { %v2128_v20 = vmul.f32 %v2112_v26, %v2033_v15 }
0x2a74   :  { %v2120_v33 = vpop.permute.xlu1 %2119 }
0x2a75   :  { %v2131_v9 = vpop.permute.xlu0 %2130  ;;  %v2122_v3 = vmul.f32 %v2120_v33, %v3440_v21 }
0x2a76   :  { %v2133_v46 = vmul.f32 %v2131_v9, %v2112_v26 }
0x2a77   :  { %2124 = vrot.lane.b32.xlu1 %v2122_v3, %s2629_s3 }
0x2a78   :  { %2135 = vrot.lane.b32.xlu2 %v2133_v46, %s2629_s3  ;;  %v2230_v46 = vld [vmem:[#allocation7 + $0x240] ss:$8 sm:$0x3] }
0x2a79   :  { %v2232_v40 = vperm.slane %v2230_v46, 0 }
0x2ad2   :  { %v2136_v2 = vpop.permute.xlu2 %2135 }
0x2ad3   :  { %v2138_v11 = vadd.f32 %v2136_v2, %v2128_v20 }
0x2ae9   :  { %v2125_v53 = vpop.permute.xlu1 %2124 }
0x2aea   :  { %v2127_v1 = vadd.f32 %v2125_v53, %v2117_v52 }
0x2aec   :  { %2140 = vrot.lane.b32.xlu0 %v2127_v1, %s2630_s4 }
0x2af4   :  { %2051 = vrot.lane.b32.xlu0 %v2043_v55, %s2629_s3 }
0x2afc   :  { %1721 = vrot.lane.b32.xlu0 %v3365_v43, %s2629_s3 }
0x2b04   :  { %1501 = vrot.lane.b32.xlu0 %v3291_v30, %s2629_s3 }
0x2b0c   :  { %1391 = vrot.lane.b32.xlu0 %v3254_v41, %s2629_s3 }
0x2b5e   :  { %v2141_v39 = vpop.permute.xlu0 %2140 }
0x2b5f   :  { %v2143_v61 = vsel %vm271_vm1, %v2141_v39, %v2138_v11 }
0x2b60   :  { %2564 = vtanh.f32 %v2143_v61 }
0x2b66   :  { %v2565_v18 = vpop.eup %2564  ;;  %v2052_v50 = vpop.permute.xlu0 %2051 }
0x2b67   :  { %2055 = vst.msk [vmem:[#allocation6 + $0x8] sm:$0xff] %vm271_vm1, %v2052_v50  ;;  %2150 = vrot.lane.b32.xlu1 %v2565_v18, %s2628_s0 }
0x2b6e   :  { %v1722_v43 = vpop.permute.xlu0 %1721 }
0x2b6f   :  { %1725 = vst.msk [vmem:[#allocation6 + $0x20] sm:$0xff] %vm271_vm1, %v1722_v43  ;;  %1941 = vrot.lane.b32.xlu1 %v3410_v48, %s2629_s3 }
0x2b76   :  { %v1502_v41 = vpop.permute.xlu0 %1501  ;;  %v2177_v30 = vld [vmem:[#allocation6 + $0x20] sm:$0xff] }
0x2b77   :  { %1505 = vst.msk [vmem:[#allocation6 + $0x30] sm:$0xff] %vm271_vm1, %v1502_v41  ;;  %1611 = vrot.lane.b32.xlu1 %v3330_v24, %s2629_s3  ;;  %2197 = vrot.lane.b32.xlu0 %v2177_v30, %s2629_s3 }
0x2b7e   :  { %v1392_v5 = vpop.permute.xlu0 %1391  ;;  %v2179_v45 = vld [vmem:[#allocation6 + $0x30] sm:$0xff] }
0x2b7f   :  { %1395 = vst.msk [vmem:[#allocation6 + $0x38] sm:$0xff] %vm271_vm1, %v1392_v5  ;;  %2146 = vrot.lane.b32.xlu1 %v2565_v18, %s2630_s4  ;;  %2201 = vrot.lane.b32.xlu0 %v2179_v45, %s2629_s3 }
0x2b86   :  { %v2180_v28 = vld [vmem:[#allocation6 + $0x38] sm:$0xff] }
0x2bd9   :  { %v2151_v59 = vpop.permute.xlu1 %2150 }
0x2bda   :  { %v2153_v62 = vmul.f32 %v2151_v59, %v2112_v26 }
0x2bdc   :  { %2161 = vrot.lane.b32.xlu2 %v2153_v62, %s2629_s3 }
0x2be1   :  { %v1942_v48 = vpop.permute.xlu1 %1941 }
0x2be2   :  { %1945 = vst.msk [vmem:[#allocation6 + $0x10] sm:$0xff] %vm271_vm1, %v1942_v48 }
0x2be4   :  { %1831 = vrot.lane.b32.xlu2 %v3388_v4, %s2629_s3  ;;  %v2174_v4 = vld [vmem:[#allocation6 + $0x8] sm:$0xff] }
0x2be9   :  { %v1612_v24 = vpop.permute.xlu1 %1611  ;;  %v2175_v16 = vld [vmem:[#allocation6 + $0x10] sm:$0xff]  ;;  %v2198_v51 = vpop.permute.xlu0 %2197 }
0x2bea   :  { %1615 = vst.msk [vmem:[#allocation6 + $0x28] sm:$0xff] %vm271_vm1, %v1612_v24  ;;  %2193 = vrot.lane.b32.xlu1 %v2175_v16, %s2629_s3  ;;  %v2217_v49 = vsel %vm271_vm1, %v2169_v31, %v2198_v51 }
0x2bf1   :  { %v2178_v17 = vld [vmem:[#allocation6 + $0x28] sm:$0xff]  ;;  %v2147_v12 = vpop.permute.xlu1 %2146  ;;  %v2202_v22 = vpop.permute.xlu0 %2201 }
0x2bf2   :  { %2199 = vrot.lane.b32.xlu1 %v2178_v17, %s2629_s3  ;;  %v2149_v29 = vmul.f32 %v2147_v12, %v3440_v21  ;;  %v2171_v21 = vld [vmem:[#allocation5 + $0x30] sm:$0xff] }
0x2bf3   :  { %v2219_v26 = vsel %vm271_vm1, %v2171_v21, %v2202_v22 }
0x2bfa   :  { %2203 = vrot.lane.b32.xlu1 %v2180_v28, %s2629_s3 }
0x2c36   :  { %v2162_v35 = vpop.permute.xlu2 %2161 }
0x2c37   :  { %2164 = vst.msk [vmem:[#allocation6] sm:$0xff] %vm271_vm1, %v2162_v35 }
0x2c3e   :  { %v1832_v27 = vpop.permute.xlu2 %1831  ;;  %v2173_v6 = vld [vmem:[#allocation6] sm:$0xff] }
0x2c3f   :  { %1835 = vst.msk [vmem:[#allocation6 + $0x18] sm:$0xff] %vm271_vm1, %v1832_v27  ;;  %2189 = vrot.lane.b32.xlu2 %v2173_v6, %s2629_s3 }
0x2c46   :  { %v2176_v19 = vld [vmem:[#allocation6 + $0x18] sm:$0xff] }
0x2c47   :  { %2191 = vrot.lane.b32.xlu2 %v2174_v4, %s2629_s3 }
0x2c4f   :  { %2195 = vrot.lane.b32.xlu2 %v2176_v19, %s2629_s3 }
0x2c57   :  { %2155 = vrot.lane.b32.xlu2 %v2149_v29, %s2629_s3 }
0x2c5c   :  { %v2194_v55 = vpop.permute.xlu1 %2193 }
0x2c5d   :  { %v2215_v7 = vsel %vm271_vm1, %v2167_v63, %v2194_v55 }
0x2c64   :  { %v2200_v8 = vpop.permute.xlu1 %2199 }
0x2c65   :  { %v2218_v47 = vsel %vm271_vm1, %v2170_v13, %v2200_v8 }
0x2c6c   :  { %v2204_v9 = vpop.permute.xlu1 %2203 }
0x2c99   :  { %v2190_v42 = vpop.permute.xlu2 %2189 }
0x2c9a   :  { %v2213_v15 = vsel %vm271_vm1, %v2165_v14, %v2190_v42 }
0x2c9b   :  { %2451 = vmatmul.msk.f32.vlgmr.msrb.gmra.mxu0 %vm193_vm2, %v2213_v15 }
0x2ca1   :  { %v2192_v25 = vpop.permute.xlu2 %2191 }
0x2ca2   :  { %v2214_v44 = vsel %vm271_vm1, %v2166_v54, %v2192_v25 }
0x2ca3   :  { %2452 = vmatmul.msk.f32.gmra.mxu0 %vm193_vm2, %v2214_v44 }
0x2ca9   :  { %v2196_v57 = vpop.permute.xlu2 %2195 }
0x2caa   :  { %v2216_v60 = vsel %vm271_vm1, %v2168_v23, %v2196_v57 }
0x2cab   :  { %2453 = vmatmul.msk.f32.gmra.mxu0 %vm193_vm2, %v2215_v7 }
0x2cb1   :  { %v2156_v10 = vpop.permute.xlu2 %2155 }
0x2cb2   :  { %2159 = vst.msk [vmem:[#allocation5 + $0x38] sm:$0xff] %vm271_vm1, %v2156_v10 }
0x2cb3   :  { %2454 = vmatmul.msk.f32.gmra.mxu0 %vm193_vm2, %v2216_v60 }
0x2cb9   :  { %v2172_v33 = vld [vmem:[#allocation5 + $0x38] sm:$0xff] }
0x2cba   :  { %v2220_v3 = vsel %vm271_vm1, %v2172_v33, %v2204_v9 }
0x2cbb   :  { %2455 = vmatmul.msk.f32.gmra.mxu0 %vm193_vm2, %v2217_v49 }
0x2cc3   :  { %2456 = vmatmul.msk.f32.gmra.mxu0 %vm193_vm2, %v2218_v47 }
0x2ccb   :  { %2457 = vmatmul.msk.f32.gmra.mxu0 %vm193_vm2, %v2219_v26 }
0x2cd3   :  { %2458 = vmatmul.msk.f32.gmra.mxu0 %vm193_vm2, %v2220_v3 }
0x2d18   :  { %v2275_v52 = vpop.f32.mrf.mxu0 }
0x2d19   :  { %v2276_v53 = vadd.f32 %v2275_v52, %v2232_v40 }
0x2d1b   :  { %2299 = vmax.xlane.f32.xlu2 %v2276_v53 }
0x2d20   :  { %v2278_v1 = vpop.f32.mrf.mxu0 }
0x2d21   :  { %v2279_v2 = vadd.f32 %v2278_v1, %v2232_v40 }
0x2d23   :  { %2301 = vmax.xlane.f32.xlu0 %v2279_v2 }
0x2d28   :  { %v2281_v20 = vpop.f32.mrf.mxu0 }
0x2d29   :  { %v2282_v11 = vadd.f32 %v2281_v20, %v2232_v40 }
0x2d2b   :  { %2303 = vmax.xlane.f32.xlu1 %v2282_v11 }
0x2d30   :  { %v2284_v39 = vpop.f32.mrf.mxu0 }
0x2d31   :  { %v2285_v61 = vadd.f32 %v2284_v39, %v2232_v40 }
0x2d33   :  { %2305 = vmax.xlane.f32.xlu2 %v2285_v61 }
0x2d38   :  { %v2287_v18 = vpop.f32.mrf.mxu0 }
0x2d39   :  { %v2288_v50 = vadd.f32 %v2287_v18, %v2232_v40 }
0x2d3b   :  { %2307 = vmax.xlane.f32.xlu2 %v2288_v50 }
0x2d40   :  { %v2290_v43 = vpop.f32.mrf.mxu0 }
0x2d41   :  { %v2291_v41 = vadd.f32 %v2290_v43, %v2232_v40 }
0x2d43   :  { %2309 = vmax.xlane.f32.xlu0 %v2291_v41 }
0x2d48   :  { %v2293_v30 = vpop.f32.mrf.mxu0 }
0x2d49   :  { %v2294_v5 = vadd.f32 %v2293_v30, %v2232_v40 }
0x2d4b   :  { %2311 = vmax.xlane.f32.xlu1 %v2294_v5 }
0x2d50   :  { %v2296_v45 = vpop.f32.mrf.mxu0 }
0x2d51   :  { %v2297_v59 = vadd.f32 %v2296_v45, %v2232_v40 }
0x2d53   :  { %2313 = vmax.xlane.f32.xlu2 %v2297_v59 }
0x2d8e   :  { %v2300_v62 = vpop.xlane.xlu2 %2299 }
0x2d8f   :  { %v2315_v48 = vsub.f32 %v2276_v53, %v2300_v62 }
0x2d91   :  { %v2323_v24 = vmul.f32 1.442695, %v2315_v48 }
0x2d93   :  { %2566 = vpow2.f32 %v2323_v24 }
0x2d96   :  { %v2302_v16 = vpop.xlane.xlu0 %2301 }
0x2d97   :  { %v2316_v17 = vsub.f32 %v2279_v2, %v2302_v16 }
0x2d99   :  { %v2567_v28 = vpop.eup %2566  ;;  %v2325_v35 = vmul.f32 1.442695, %v2316_v17 }
0x2d9a   :  { %2339 = vadd.xlane.f32.xlu0 %v2567_v28 }
0x2d9b   :  { %2568 = vpow2.f32 %v2325_v35 }
0x2d9e   :  { %v2304_v27 = vpop.xlane.xlu1 %2303 }
0x2d9f   :  { %v2317_v6 = vsub.f32 %v2282_v11, %v2304_v27 }
0x2da1   :  { %v2569_v4 = vpop.eup %2568  ;;  %v2327_v32 = vmul.f32 1.442695, %v2317_v6 }
0x2da2   :  { %2341 = vadd.xlane.f32.xlu1 %v2569_v4 }
0x2da3   :  { %2570 = vpow2.f32 %v2327_v32 }
0x2da6   :  { %v2306_v0 = vpop.xlane.xlu2 %2305 }
0x2da7   :  { %v2318_v19 = vsub.f32 %v2285_v61, %v2306_v0 }
0x2da9   :  { %v2571_v37 = vpop.eup %2570  ;;  %v2329_v56 = vmul.f32 1.442695, %v2318_v19 }
0x2daa   :  { %2343 = vadd.xlane.f32.xlu2 %v2571_v37 }
0x2dab   :  { %2572 = vpow2.f32 %v2329_v56 }
0x2dae   :  { %v2308_v12 = vpop.xlane.xlu2 %2307 }
0x2daf   :  { %v2319_v38 = vsub.f32 %v2288_v50, %v2308_v12 }
0x2db1   :  { %v2573_v58 = vpop.eup %2572  ;;  %v2331_v29 = vmul.f32 1.442695, %v2319_v38 }
0x2db2   :  { %2345 = vadd.xlane.f32.xlu0 %v2573_v58 }
0x2db3   :  { %2574 = vpow2.f32 %v2331_v29 }
0x2db6   :  { %v2310_v34 = vpop.xlane.xlu0 %2309 }
0x2db7   :  { %v2320_v36 = vsub.f32 %v2291_v41, %v2310_v34 }
0x2db9   :  { %v2575_v14 = vpop.eup %2574  ;;  %v2333_v42 = vmul.f32 1.442695, %v2320_v36 }
0x2dba   :  { %2347 = vadd.xlane.f32.xlu1 %v2575_v14 }
0x2dbb   :  { %2576 = vpow2.f32 %v2333_v42 }
0x2dbe   :  { %v2312_v15 = vpop.xlane.xlu1 %2311 }
0x2dbf   :  { %v2321_v25 = vsub.f32 %v2294_v5, %v2312_v15 }
0x2dc1   :  { %v2577_v54 = vpop.eup %2576  ;;  %v2335_v44 = vmul.f32 1.442695, %v2321_v25 }
0x2dc2   :  { %2349 = vadd.xlane.f32.xlu2 %v2577_v54 }
0x2dc3   :  { %2578 = vpow2.f32 %v2335_v44 }
0x2dc6   :  { %v2314_v55 = vpop.xlane.xlu2 %2313 }
0x2dc7   :  { %v2322_v57 = vsub.f32 %v2297_v59, %v2314_v55 }
0x2dc9   :  { %v2579_v63 = vpop.eup %2578  ;;  %v2337_v7 = vmul.f32 1.442695, %v2322_v57 }
0x2dca   :  { %2351 = vadd.xlane.f32.xlu0 %v2579_v63 }
0x2dcb   :  { %2580 = vpow2.f32 %v2337_v7 }
0x2dd1   :  { %v2581_v10 = vpop.eup %2580 }
0x2dd2   :  { %2353 = vadd.xlane.f32.xlu1 %v2581_v10 }
0x2e0d   :  { %v2340_v23 = vpop.xlane.xlu0 %2339 }
0x2e0e   :  { %2582 = vrcp.f32 %v2340_v23 }
0x2e14   :  { %v2583_v60 = vpop.eup %2582 }
0x2e15   :  { %v2363_v51 = vmul.f32 %v2583_v60, %v2567_v28  ;;  %v2342_v31 = vpop.xlane.xlu1 %2341 }
0x2e16   :  { %2584 = vrcp.f32 %v2342_v31 }
0x2e17   :  { %2371 = vst [vmem:[%s3525_s2] sm:$0xff] %v2363_v51 }
0x2e1c   :  { %v2585_v49 = vpop.eup %2584 }
0x2e1d   :  { %v2364_v8 = vmul.f32 %v2585_v49, %v2569_v4  ;;  %v2344_v13 = vpop.xlane.xlu2 %2343 }
0x2e1e   :  { %2586 = vrcp.f32 %v2344_v13 }
0x2e1f   :  { %2372 = vst [vmem:[%s3525_s2 + $0x8] sm:$0xff] %v2364_v8 }
0x2e24   :  { %v2587_v47 = vpop.eup %2586 }
0x2e25   :  { %v2365_v22 = vmul.f32 %v2587_v47, %v2571_v37  ;;  %v2346_v21 = vpop.xlane.xlu0 %2345 }
0x2e26   :  { %2588 = vrcp.f32 %v2346_v21 }
0x2e27   :  { %2373 = vst [vmem:[%s3525_s2 + $0x10] sm:$0xff] %v2365_v22 }
0x2e2c   :  { %v2589_v26 = vpop.eup %2588 }
0x2e2d   :  { %v2366_v33 = vmul.f32 %v2589_v26, %v2573_v58  ;;  %v2348_v9 = vpop.xlane.xlu1 %2347 }
0x2e2e   :  { %2590 = vrcp.f32 %v2348_v9 }
0x2e2f   :  { %2374 = vst [vmem:[%s3525_s2 + $0x18] sm:$0xff] %v2366_v33 }
0x2e34   :  { %v2591_v3 = vpop.eup %2590 }
0x2e35   :  { %v2367_v46 = vmul.f32 %v2591_v3, %v2575_v14  ;;  %v2350_v40 = vpop.xlane.xlu2 %2349 }
0x2e36   :  { %2592 = vrcp.f32 %v2350_v40 }
0x2e37   :  { %2375 = vst [vmem:[%s3525_s2 + $0x20] sm:$0xff] %v2367_v46 }
0x2e3c   :  { %v2593_v52 = vpop.eup %2592 }
0x2e3d   :  { %v2368_v53 = vmul.f32 %v2593_v52, %v2577_v54  ;;  %v2352_v1 = vpop.xlane.xlu0 %2351 }
0x2e3e   :  { %2594 = vrcp.f32 %v2352_v1 }
0x2e3f   :  { %2376 = vst [vmem:[%s3525_s2 + $0x28] sm:$0xff] %v2368_v53 }
0x2e44   :  { %v2595_v2 = vpop.eup %2594 }
0x2e45   :  { %v2369_v20 = vmul.f32 %v2595_v2, %v2579_v63  ;;  %v2354_v11 = vpop.xlane.xlu1 %2353 }
0x2e46   :  { %2596 = vrcp.f32 %v2354_v11 }
0x2e47   :  { %2377 = vst [vmem:[%s3525_s2 + $0x30] sm:$0xff] %v2369_v20 }
0x2e4c   :  { %v2597_v39 = vpop.eup %2596 }
0x2e4d   :  { %v2370_v61 = vmul.f32 %v2597_v39, %v2581_v10 }
0x2e4f   :  { %2378 = vst [vmem:[%s3525_s2 + $0x38] sm:$0xff] %v2370_v61 }
0x2e50   :  { %2383 = vsyncpa [#allocation8], 1 }

</bundles_post_ra>
